<compile_context>
chip_gen: v5e
topology: v5e:2x2
jax: 0.10.0
libtpu: 0.0.40
codegen_flags: <defaults>
</compile_context>

<pallas_src>
import functools

import numpy as np
import jax
import jax.numpy as jnp
from jax.experimental import pallas as pl
from jax.experimental.pallas import tpu as pltpu


# ----------------------------------------------------------------------------
# Fused forward kernel: encoder -> projector -> separator -> heads -> decoder
# ----------------------------------------------------------------------------

def _fused_forward_kernel(*refs, num_stages, num_heads, num_spks):
    """Whole model forward on the folded (B*T, ...) layout.

    All intermediates live in VMEM; time down/up-sampling is done with
    constant selection-matrix matmuls, so the kernel body is pure matmul +
    elementwise and never reshapes across the sublane dimension.
    """
    (fr_ref, we_ref, be_ref, lng_ref, lnb_ref, wp_ref, bp_ref,
     w1_ref, b1_ref, w2_ref, b2_ref) = refs[:11]
    d_refs = refs[11:11 + num_stages]
    u_refs = refs[11 + num_stages:11 + 2 * num_stages]
    (wg_ref, bg_ref, wo_ref, bo_ref, wm_ref, bm_ref, wdb_ref,
     out_ref) = refs[11 + 2 * num_stages:]

    f32 = jnp.float32

    # --- AudioEncoder: Conv1d-as-matmul + ReLU -------------------------------
    frames = fr_ref[...]                                           # (BT, K)
    enc = jnp.dot(frames, we_ref[...], preferred_element_type=f32)
    enc = jnp.maximum(enc + be_ref[...], 0.0)                      # (BT, C)

    # --- FeatureProjector: channel LayerNorm + 1x1 conv ----------------------
    mu = jnp.mean(enc, axis=-1, keepdims=True)
    var = jnp.mean((enc - mu) ** 2, axis=-1, keepdims=True)
    normed = (enc - mu) * jax.lax.rsqrt(var + 1e-5) * lng_ref[...] + lnb_ref[...]
    cur = jnp.dot(normed, wp_ref[...], preferred_element_type=f32) + bp_ref[...]

    # --- Separator: (downsample-by-2 as selection matmul) + residual FFN -----
    ups = []
    for s in range(num_stages):
        cur = jnp.dot(d_refs[s][...], cur, preferred_element_type=f32)
        hid = jnp.dot(cur, w1_ref[s], preferred_element_type=f32) + b1_ref[s]
        hid = jnp.maximum(hid, 0.0)
        cur = cur + jnp.dot(hid, w2_ref[s], preferred_element_type=f32) + b2_ref[s]
        # nearest-neighbour upsample back to T rows (selection matmul)
        ups.append(jnp.dot(u_refs[s][...], cur, preferred_element_type=f32))

    head_inputs = [ups[-1]] + ups                                  # main + aux heads

    # Encoder tiled along lanes once; shared by all heads / speakers.
    enc_tiled = jnp.concatenate([enc] * num_spks, axis=-1)         # (BT, spks*C)

    # --- Output heads + ReLU-mask * encoder + per-speaker decoder matmul -----
    # TODO(synk): reference builds aux heads with masking=True; both variants
    # here use identical ReLU-mask semantics (same as the accepted baseline).
    decs = []
    for h in range(num_heads):
        x = head_inputs[h]
        gate = jnp.tanh(jnp.dot(x, wg_ref[h], preferred_element_type=f32)
                        + bg_ref[h])
        outp = jax.nn.sigmoid(jnp.dot(x, wo_ref[h], preferred_element_type=f32)
                              + bo_ref[h])
        gated = gate * outp                                        # (BT, F)
        mask = jnp.dot(gated, wm_ref[h], preferred_element_type=f32) + bm_ref[h]
        mask = jnp.maximum(mask, 0.0)                              # (BT, spks*C)
        masked = mask * enc_tiled
        # block-diag(Wd,...,Wd): one matmul decodes all speakers, lanes laid
        # out as [spk0 | spk1 | ...].
        decs.append(jnp.dot(masked, wdb_ref[h], preferred_element_type=f32))

    out_ref[...] = jnp.concatenate(decs, axis=-1).astype(out_ref.dtype)


def fused_forward(frames2d, prep):
    """frames2d (B*T, K) -> decoder frames (B*T, H*spks*Kd), one launch."""
    BT, _ = frames2d.shape
    H = prep["num_heads"]
    num_spks = prep["num_spks"]
    Kd = prep["dec_k"]
    out_lanes = H * num_spks * Kd

    inputs = [frames2d, prep["We"], prep["be"], prep["ln_g"], prep["ln_b"],
              prep["Wp"], prep["bp"], prep["W1"], prep["b1"], prep["W2"],
              prep["b2"]]
    inputs += list(prep["D"]) + list(prep["U"])
    inputs += [prep["Wg"], prep["bg"], prep["Wo"], prep["bo"],
               prep["Wm"], prep["bm"], prep["Wdb"]]

    def full_spec(a):
        nd = a.ndim
        return pl.BlockSpec(tuple(a.shape), lambda i: (0,) * nd)

    kernel = functools.partial(
        _fused_forward_kernel,
        num_stages=prep["num_stages"], num_heads=H, num_spks=num_spks)

    return pl.pallas_call(
        kernel,
        out_shape=jax.ShapeDtypeStruct((BT, out_lanes), frames2d.dtype),
        grid=(1,),
        in_specs=[full_spec(a) for a in inputs],
        out_specs=pl.BlockSpec((BT, out_lanes), lambda i: (0, 0)),
        compiler_params=pltpu.CompilerParams(
            dimension_semantics=("arbitrary",)),
    )(*inputs)


# ----------------------------------------------------------------------------
# Plain-JAX glue (layout only: framing in, overlap-add out)
# ----------------------------------------------------------------------------

def frame_signal(x, kernel, stride):
    """(B, L) -> (B, T, K) overlapping frames via strided reshape (no gather)."""
    assert kernel % stride == 0, "framing requires stride to divide kernel"
    B, L = x.shape
    T = (L - kernel) // stride + 1
    n_taps = kernel // stride
    Lp = -(-L // stride) * stride
    xp = jnp.pad(x, ((0, 0), (0, Lp - L)))
    chunks = xp.reshape(B, Lp // stride, stride)
    return jnp.concatenate([chunks[:, i:i + T] for i in range(n_taps)], axis=-1)


def overlap_add(frames, stride):
    """ConvTranspose1d overlap-add via pad + add (no scatter). frames (...,T,K)."""
    *lead, T, K = frames.shape
    n_taps = K // stride
    n_chunks = T + n_taps - 1
    out = None
    for i in range(n_taps):
        slab = frames[..., i * stride:(i + 1) * stride]            # (..., T, S)
        pad = [(0, 0)] * len(lead) + [(i, n_taps - 1 - i), (0, 0)]
        slab = jnp.pad(slab, pad)
        out = slab if out is None else out + slab
    return out.reshape(*lead, n_chunks * stride)


# ----------------------------------------------------------------------------
# One-time parameter preparation (weight stacking, selection matrices)
# ----------------------------------------------------------------------------

def _block_select_matrix(idx, t_in, batch):
    """Block-diagonal row-selection matrix for the folded (B*T, ·) layout."""
    idx = np.asarray(idx)
    t_out = idx.shape[0]
    m = np.zeros((batch * t_out, batch * t_in), np.float32)
    for b in range(batch):
        m[b * t_out + np.arange(t_out), b * t_in + idx] = 1.0
    return jnp.asarray(m)


def _speaker_block_diag(wd, num_spks):
    c, k = wd.shape
    out = jnp.zeros((num_spks * c, num_spks * k), wd.dtype)
    for s in range(num_spks):
        out = out.at[s * c:(s + 1) * c, s * k:(s + 1) * k].set(wd)
    return out


def prepare_forward(params, batch, length):
    """Hoists all per-forward weight stacking / derived constants."""
    enc_p, proj_p, dec_p = params["enc"], params["proj"], params["dec"]
    kernel, stride = enc_p["kernel"], enc_p["stride"]
    assert kernel % stride == 0, "framing requires stride to divide kernel"
    T = (length - kernel) // stride + 1
    num_spks = params["num_spks"]
    num_stages = len(params["sep"])
    C = enc_p["We"].shape[1]
    F = proj_p["Wp"].shape[1]
    Kd = dec_p["Wd"].shape[1]

    # Per-stage down/up-sampling as block-diagonal selection matrices.
    D, U, t_cur = [], [], T
    for _ in range(num_stages):
        ds_idx = np.arange(0, t_cur, 2)
        D.append(_block_select_matrix(ds_idx, t_cur, batch))
        t_cur = ds_idx.shape[0]
        up_idx = (np.arange(T) * t_cur) // T                      # nearest upsample
        U.append(_block_select_matrix(up_idx, t_cur, batch))

    out_heads = [params["out"]] + list(params["out_bn"])
    dec_heads = [dec_p] + list(params["dec_bn"])

    prep = dict(
        We=enc_p["We"], be=enc_p["be"].reshape(1, C),
        ln_g=proj_p["ln_g"].reshape(1, C), ln_b=proj_p["ln_b"].reshape(1, C),
        Wp=proj_p["Wp"], bp=proj_p["bp"].reshape(1, F),
        W1=jnp.stack([s["W1"] for s in params["sep"]]),
        b1=jnp.stack([s["b1"].reshape(1, -1) for s in params["sep"]]),
        W2=jnp.stack([s["W2"] for s in params["sep"]]),
        b2=jnp.stack([s["b2"].reshape(1, -1) for s in params["sep"]]),
        D=D, U=U,
        Wg=jnp.stack([p["Wg"] for p in out_heads]),
        bg=jnp.stack([p["bg"].reshape(1, -1) for p in out_heads]),
        Wo=jnp.stack([p["Wo"] for p in out_heads]),
        bo=jnp.stack([p["bo"].reshape(1, -1) for p in out_heads]),
        Wm=jnp.stack([p["Wm"] for p in out_heads]),
        bm=jnp.stack([p["bm"].reshape(1, -1) for p in out_heads]),
        Wdb=jnp.stack([_speaker_block_diag(p["Wd"], num_spks)
                       for p in dec_heads]),
        bd=jnp.stack([jnp.asarray(p["bd"], jnp.float32) for p in dec_heads]),
        # static configuration
        num_spks=num_spks, num_stages=num_stages, num_heads=1 + num_stages,
        T=T, kernel=kernel, stride=stride,
        dec_k=Kd, dec_stride=dec_p["stride"],
    )
    return prep


# ----------------------------------------------------------------------------
# Model forward
# ----------------------------------------------------------------------------

def model_forward(x, prep):
    B, L = x.shape
    T = prep["T"]
    num_spks = prep["num_spks"]
    H = prep["num_heads"]
    Kd = prep["dec_k"]

    # --- framing (layout-only XLA glue), fold batch into matmul M -----------
    frames = frame_signal(x, prep["kernel"], prep["stride"])       # (B, T, K)
    frames2d = frames.reshape(B * T, frames.shape[-1])             # (B*T, K)

    # --- fused forward: 1 pallas launch, everything in VMEM -----------------
    dec_frames = fused_forward(frames2d, prep)                     # (B*T, H*spks*Kd)

    # --- overlap-add epilogue (pad+add, tiny tensors) ------------------------
    f = dec_frames.reshape(B, T, H, num_spks, Kd).transpose(2, 3, 0, 1, 4)
    waves = overlap_add(f, prep["dec_stride"])                     # (H, spks, B, Ldec)
    waves = waves + prep["bd"][:, None, None, None]

    audio = [waves[0, s] for s in range(num_spks)]
    audio_aux = [[waves[1 + i, s][:, :L] for s in range(num_spks)]
                 for i in range(prep["num_stages"])]
    return audio, audio_aux


# ----------------------------------------------------------------------------
# Deterministic parameter initialization (synthetic, not a checkpoint)
# ----------------------------------------------------------------------------

def init_params(key, *, enc_dim=32, feat_dim=32, hidden=64, kernel=16,
                stride=8, num_spks=2, num_stages=2):
    keys = iter(jax.random.split(key, 128))

    def w(shape):
        fan_in = shape[0]
        return (jax.random.normal(next(keys), shape, jnp.float32)
                / jnp.sqrt(jnp.float32(fan_in)))

    def out_layer_params():
        return dict(
            Wg=w((feat_dim, feat_dim)), bg=jnp.zeros((feat_dim,), jnp.float32),
            Wo=w((feat_dim, feat_dim)), bo=jnp.zeros((feat_dim,), jnp.float32),
            Wm=w((feat_dim, num_spks * enc_dim)),
            bm=jnp.zeros((num_spks * enc_dim,), jnp.float32),
        )

    def decoder_params():
        return dict(Wd=w((enc_dim, kernel)), bd=jnp.float32(0.0),
                    kernel=kernel, stride=stride)

    params = dict(
        num_spks=num_spks,
        enc=dict(We=w((kernel, enc_dim)),
                 be=jnp.zeros((enc_dim,), jnp.float32),
                 kernel=kernel, stride=stride),
        proj=dict(ln_g=jnp.ones((enc_dim,), jnp.float32),
                  ln_b=jnp.zeros((enc_dim,), jnp.float32),
                  Wp=w((enc_dim, feat_dim)),
                  bp=jnp.zeros((feat_dim,), jnp.float32)),
        sep=[dict(W1=w((feat_dim, hidden)), b1=jnp.zeros((hidden,), jnp.float32),
                  W2=w((hidden, feat_dim)), b2=jnp.zeros((feat_dim,), jnp.float32))
             for _ in range(num_stages)],
        out=out_layer_params(),
        dec=decoder_params(),
        out_bn=[out_layer_params() for _ in range(num_stages)],
        dec_bn=[decoder_params() for _ in range(num_stages)],
    )
    return params


# ----------------------------------------------------------------------------
if __name__ == "__main__":
    key = jax.random.PRNGKey(0)
    k_param, k_x = jax.random.split(key)

    B, L = 2, 512                      # small waveform batch
    params = init_params(k_param, enc_dim=32, feat_dim=32, hidden=64,
                         kernel=16, stride=8, num_spks=2, num_stages=2)
    x = jax.random.normal(k_x, (B, L), jnp.float32)

    prep = prepare_forward(params, B, L)
    fwd = jax.jit(lambda inp: model_forward(inp, prep))
    audio, audio_aux = fwd(x)
    jax.tree_util.tree_map(jax.block_until_ready, (audio, audio_aux))

    assert len(audio) == 2 and audio[0].shape == (B, L)
    assert len(audio_aux) == 2 and len(audio_aux[0]) == 2
    assert audio_aux[0][0].shape == (B, L)
    print("KERNEL_OK")
</pallas_src>

<mosaic_0001>
module attributes {stable_mosaic.version = 11 : i64} {
  func.func @_fused_forward_kernel(%arg0: i32, %arg1: memref<126x16xf32, #tpu.memory_space<vmem>>, %arg2: memref<16x32xf32, #tpu.memory_space<vmem>>, %arg3: memref<1x32xf32, #tpu.memory_space<vmem>>, %arg4: memref<1x32xf32, #tpu.memory_space<vmem>>, %arg5: memref<1x32xf32, #tpu.memory_space<vmem>>, %arg6: memref<32x32xf32, #tpu.memory_space<vmem>>, %arg7: memref<1x32xf32, #tpu.memory_space<vmem>>, %arg8: memref<2x32x64xf32, #tpu.memory_space<vmem>>, %arg9: memref<2x1x64xf32, #tpu.memory_space<vmem>>, %arg10: memref<2x64x32xf32, #tpu.memory_space<vmem>>, %arg11: memref<2x1x32xf32, #tpu.memory_space<vmem>>, %arg12: memref<64x126xf32, #tpu.memory_space<vmem>>, %arg13: memref<32x64xf32, #tpu.memory_space<vmem>>, %arg14: memref<126x64xf32, #tpu.memory_space<vmem>>, %arg15: memref<126x32xf32, #tpu.memory_space<vmem>>, %arg16: memref<3x32x32xf32, #tpu.memory_space<vmem>>, %arg17: memref<3x1x32xf32, #tpu.memory_space<vmem>>, %arg18: memref<3x32x32xf32, #tpu.memory_space<vmem>>, %arg19: memref<3x1x32xf32, #tpu.memory_space<vmem>>, %arg20: memref<3x32x64xf32, #tpu.memory_space<vmem>>, %arg21: memref<3x1x64xf32, #tpu.memory_space<vmem>>, %arg22: memref<3x64x32xf32, #tpu.memory_space<vmem>>, %arg23: memref<126x96xf32, #tpu.memory_space<vmem>>) attributes {dimension_semantics = [#tpu.dimension_semantics<arbitrary>], iteration_bounds = array<i64: 1>, scalar_prefetch = 0 : i64, scratch_operands = 0 : i64, tpu.core_type = #tpu.core_type<tc>, window_params = [{pipeline_mode = #tpu.pipeline_mode<synchronous>, transform_indices = @transform_0, window_bounds = array<i64: 126, 16>}, {pipeline_mode = #tpu.pipeline_mode<synchronous>, transform_indices = @transform_1, window_bounds = array<i64: 16, 32>}, {pipeline_mode = #tpu.pipeline_mode<synchronous>, transform_indices = @transform_2, window_bounds = array<i64: 1, 32>}, {pipeline_mode = #tpu.pipeline_mode<synchronous>, transform_indices = @transform_3, window_bounds = array<i64: 1, 32>}, {pipeline_mode = #tpu.pipeline_mode<synchronous>, transform_indices = @transform_4, window_bounds = array<i64: 1, 32>}, {pipeline_mode = #tpu.pipeline_mode<synchronous>, transform_indices = @transform_5, window_bounds = array<i64: 32, 32>}, {pipeline_mode = #tpu.pipeline_mode<synchronous>, transform_indices = @transform_6, window_bounds = array<i64: 1, 32>}, {pipeline_mode = #tpu.pipeline_mode<synchronous>, transform_indices = @transform_7, window_bounds = array<i64: 2, 32, 64>}, {pipeline_mode = #tpu.pipeline_mode<synchronous>, transform_indices = @transform_8, window_bounds = array<i64: 2, 1, 64>}, {pipeline_mode = #tpu.pipeline_mode<synchronous>, transform_indices = @transform_9, window_bounds = array<i64: 2, 64, 32>}, {pipeline_mode = #tpu.pipeline_mode<synchronous>, transform_indices = @transform_10, window_bounds = array<i64: 2, 1, 32>}, {pipeline_mode = #tpu.pipeline_mode<synchronous>, transform_indices = @transform_11, window_bounds = array<i64: 64, 126>}, {pipeline_mode = #tpu.pipeline_mode<synchronous>, transform_indices = @transform_12, window_bounds = array<i64: 32, 64>}, {pipeline_mode = #tpu.pipeline_mode<synchronous>, transform_indices = @transform_13, window_bounds = array<i64: 126, 64>}, {pipeline_mode = #tpu.pipeline_mode<synchronous>, transform_indices = @transform_14, window_bounds = array<i64: 126, 32>}, {pipeline_mode = #tpu.pipeline_mode<synchronous>, transform_indices = @transform_15, window_bounds = array<i64: 3, 32, 32>}, {pipeline_mode = #tpu.pipeline_mode<synchronous>, transform_indices = @transform_16, window_bounds = array<i64: 3, 1, 32>}, {pipeline_mode = #tpu.pipeline_mode<synchronous>, transform_indices = @transform_17, window_bounds = array<i64: 3, 32, 32>}, {pipeline_mode = #tpu.pipeline_mode<synchronous>, transform_indices = @transform_18, window_bounds = array<i64: 3, 1, 32>}, {pipeline_mode = #tpu.pipeline_mode<synchronous>, transform_indices = @transform_19, window_bounds = array<i64: 3, 32, 64>}, {pipeline_mode = #tpu.pipeline_mode<synchronous>, transform_indices = @transform_20, window_bounds = array<i64: 3, 1, 64>}, {pipeline_mode = #tpu.pipeline_mode<synchronous>, transform_indices = @transform_21, window_bounds = array<i64: 3, 64, 32>}, {pipeline_mode = #tpu.pipeline_mode<synchronous>, transform_indices = @transform_22, window_bounds = array<i64: 126, 96>}]} {
    %c0 = arith.constant 0 : index
    %c0_0 = arith.constant 0 : index
    %0 = vector.load %arg1[%c0, %c0_0] : memref<126x16xf32, #tpu.memory_space<vmem>>, vector<126x16xf32>
    %c0_1 = arith.constant 0 : index
    %c0_2 = arith.constant 0 : index
    %1 = vector.load %arg2[%c0_1, %c0_2] : memref<16x32xf32, #tpu.memory_space<vmem>>, vector<16x32xf32>
    %cst = arith.constant dense<0.000000e+00> : vector<126x32xf32>
    %2 = tpu.matmul %0, %1, %cst {dimension_numbers = #tpu.dot_dimension_numbers<[1], [0], [0], [1], [0, 0, 1, 1], [], []>} : vector<126x16xf32>, vector<16x32xf32>, vector<126x32xf32> -> vector<126x32xf32>
    %c0_3 = arith.constant 0 : index
    %c0_4 = arith.constant 0 : index
    %3 = vector.load %arg3[%c0_3, %c0_4] : memref<1x32xf32, #tpu.memory_space<vmem>>, vector<1x32xf32>
    %4 = vector.broadcast %3 : vector<1x32xf32> to vector<126x32xf32>
    %5 = arith.addf %2, %4 : vector<126x32xf32>
    %cst_5 = arith.constant 0.000000e+00 : f32
    %6 = vector.broadcast %cst_5 : f32 to vector<126x32xf32>
    %7 = arith.maximumf %5, %6 : vector<126x32xf32>
    %cst_6 = arith.constant dense<0.000000e+00> : vector<126xf32>
    %8 = vector.multi_reduction <add>, %7, %cst_6 [1] : vector<126x32xf32> to vector<126xf32>
    %9 = vector.shape_cast %8 : vector<126xf32> to vector<126x1xf32>
    %cst_7 = arith.constant 3.200000e+01 : f32
    %10 = vector.broadcast %cst_7 : f32 to vector<126x1xf32>
    %11 = arith.divf %9, %10 : vector<126x1xf32>
    %12 = vector.broadcast %11 : vector<126x1xf32> to vector<126x32xf32>
    %13 = arith.subf %7, %12 : vector<126x32xf32>
    %14 = arith.mulf %13, %13 : vector<126x32xf32>
    %cst_8 = arith.constant dense<0.000000e+00> : vector<126xf32>
    %15 = vector.multi_reduction <add>, %14, %cst_8 [1] : vector<126x32xf32> to vector<126xf32>
    %16 = vector.shape_cast %15 : vector<126xf32> to vector<126x1xf32>
    %cst_9 = arith.constant 3.200000e+01 : f32
    %17 = vector.broadcast %cst_9 : f32 to vector<126x1xf32>
    %18 = arith.divf %16, %17 : vector<126x1xf32>
    %19 = vector.broadcast %11 : vector<126x1xf32> to vector<126x32xf32>
    %20 = arith.subf %7, %19 : vector<126x32xf32>
    %cst_10 = arith.constant 9.99999974E-6 : f32
    %21 = vector.broadcast %cst_10 : f32 to vector<126x1xf32>
    %22 = arith.addf %18, %21 : vector<126x1xf32>
    %23 = math.rsqrt %22 : vector<126x1xf32>
    %24 = vector.broadcast %23 : vector<126x1xf32> to vector<126x32xf32>
    %25 = arith.mulf %20, %24 : vector<126x32xf32>
    %c0_11 = arith.constant 0 : index
    %c0_12 = arith.constant 0 : index
    %26 = vector.load %arg4[%c0_11, %c0_12] : memref<1x32xf32, #tpu.memory_space<vmem>>, vector<1x32xf32>
    %27 = vector.broadcast %26 : vector<1x32xf32> to vector<126x32xf32>
    %28 = arith.mulf %25, %27 : vector<126x32xf32>
    %c0_13 = arith.constant 0 : index
    %c0_14 = arith.constant 0 : index
    %29 = vector.load %arg5[%c0_13, %c0_14] : memref<1x32xf32, #tpu.memory_space<vmem>>, vector<1x32xf32>
    %30 = vector.broadcast %29 : vector<1x32xf32> to vector<126x32xf32>
    %31 = arith.addf %28, %30 : vector<126x32xf32>
    %c0_15 = arith.constant 0 : index
    %c0_16 = arith.constant 0 : index
    %32 = vector.load %arg6[%c0_15, %c0_16] : memref<32x32xf32, #tpu.memory_space<vmem>>, vector<32x32xf32>
    %cst_17 = arith.constant dense<0.000000e+00> : vector<126x32xf32>
    %33 = tpu.matmul %31, %32, %cst_17 {dimension_numbers = #tpu.dot_dimension_numbers<[1], [0], [0], [1], [0, 0, 1, 1], [], []>} : vector<126x32xf32>, vector<32x32xf32>, vector<126x32xf32> -> vector<126x32xf32>
    %c0_18 = arith.constant 0 : index
    %c0_19 = arith.constant 0 : index
    %34 = vector.load %arg7[%c0_18, %c0_19] : memref<1x32xf32, #tpu.memory_space<vmem>>, vector<1x32xf32>
    %35 = vector.broadcast %34 : vector<1x32xf32> to vector<126x32xf32>
    %36 = arith.addf %33, %35 : vector<126x32xf32>
    %c0_20 = arith.constant 0 : index
    %c0_21 = arith.constant 0 : index
    %37 = vector.load %arg12[%c0_20, %c0_21] : memref<64x126xf32, #tpu.memory_space<vmem>>, vector<64x126xf32>
    %cst_22 = arith.constant dense<0.000000e+00> : vector<64x32xf32>
    %38 = tpu.matmul %37, %36, %cst_22 {dimension_numbers = #tpu.dot_dimension_numbers<[1], [0], [0], [1], [0, 0, 1, 1], [], []>} : vector<64x126xf32>, vector<126x32xf32>, vector<64x32xf32> -> vector<64x32xf32>
    %c0_23 = arith.constant 0 : index
    %c0_24 = arith.constant 0 : index
    %c0_25 = arith.constant 0 : index
    %39 = vector.load %arg8[%c0_23, %c0_24, %c0_25] : memref<2x32x64xf32, #tpu.memory_space<vmem>>, vector<1x32x64xf32>
    %40 = vector.shape_cast %39 : vector<1x32x64xf32> to vector<32x64xf32>
    %cst_26 = arith.constant dense<0.000000e+00> : vector<64x64xf32>
    %41 = tpu.matmul %38, %40, %cst_26 {dimension_numbers = #tpu.dot_dimension_numbers<[1], [0], [0], [1], [0, 0, 1, 1], [], []>} : vector<64x32xf32>, vector<32x64xf32>, vector<64x64xf32> -> vector<64x64xf32>
    %c0_27 = arith.constant 0 : index
    %c0_28 = arith.constant 0 : index
    %c0_29 = arith.constant 0 : index
    %42 = vector.load %arg9[%c0_27, %c0_28, %c0_29] : memref<2x1x64xf32, #tpu.memory_space<vmem>>, vector<1x1x64xf32>
    %43 = vector.shape_cast %42 : vector<1x1x64xf32> to vector<1x64xf32>
    %44 = vector.broadcast %43 : vector<1x64xf32> to vector<64x64xf32>
    %45 = arith.addf %41, %44 : vector<64x64xf32>
    %cst_30 = arith.constant 0.000000e+00 : f32
    %46 = vector.broadcast %cst_30 : f32 to vector<64x64xf32>
    %47 = arith.maximumf %45, %46 : vector<64x64xf32>
    %c0_31 = arith.constant 0 : index
    %c0_32 = arith.constant 0 : index
    %c0_33 = arith.constant 0 : index
    %48 = vector.load %arg10[%c0_31, %c0_32, %c0_33] : memref<2x64x32xf32, #tpu.memory_space<vmem>>, vector<1x64x32xf32>
    %49 = vector.shape_cast %48 : vector<1x64x32xf32> to vector<64x32xf32>
    %cst_34 = arith.constant dense<0.000000e+00> : vector<64x32xf32>
    %50 = tpu.matmul %47, %49, %cst_34 {dimension_numbers = #tpu.dot_dimension_numbers<[1], [0], [0], [1], [0, 0, 1, 1], [], []>} : vector<64x64xf32>, vector<64x32xf32>, vector<64x32xf32> -> vector<64x32xf32>
    %51 = arith.addf %38, %50 : vector<64x32xf32>
    %c0_35 = arith.constant 0 : index
    %c0_36 = arith.constant 0 : index
    %c0_37 = arith.constant 0 : index
    %52 = vector.load %arg11[%c0_35, %c0_36, %c0_37] : memref<2x1x32xf32, #tpu.memory_space<vmem>>, vector<1x1x32xf32>
    %53 = vector.shape_cast %52 : vector<1x1x32xf32> to vector<1x32xf32>
    %54 = vector.broadcast %53 : vector<1x32xf32> to vector<64x32xf32>
    %55 = arith.addf %51, %54 : vector<64x32xf32>
    %c0_38 = arith.constant 0 : index
    %c0_39 = arith.constant 0 : index
    %56 = vector.load %arg14[%c0_38, %c0_39] : memref<126x64xf32, #tpu.memory_space<vmem>>, vector<126x64xf32>
    %cst_40 = arith.constant dense<0.000000e+00> : vector<126x32xf32>
    %57 = tpu.matmul %56, %55, %cst_40 {dimension_numbers = #tpu.dot_dimension_numbers<[1], [0], [0], [1], [0, 0, 1, 1], [], []>} : vector<126x64xf32>, vector<64x32xf32>, vector<126x32xf32> -> vector<126x32xf32>
    %c0_41 = arith.constant 0 : index
    %c0_42 = arith.constant 0 : index
    %58 = vector.load %arg13[%c0_41, %c0_42] : memref<32x64xf32, #tpu.memory_space<vmem>>, vector<32x64xf32>
    %cst_43 = arith.constant dense<0.000000e+00> : vector<32x32xf32>
    %59 = tpu.matmul %58, %55, %cst_43 {dimension_numbers = #tpu.dot_dimension_numbers<[1], [0], [0], [1], [0, 0, 1, 1], [], []>} : vector<32x64xf32>, vector<64x32xf32>, vector<32x32xf32> -> vector<32x32xf32>
    %c1 = arith.constant 1 : index
    %c0_44 = arith.constant 0 : index
    %c0_45 = arith.constant 0 : index
    %60 = vector.load %arg8[%c1, %c0_44, %c0_45] : memref<2x32x64xf32, #tpu.memory_space<vmem>>, vector<1x32x64xf32>
    %61 = vector.shape_cast %60 : vector<1x32x64xf32> to vector<32x64xf32>
    %cst_46 = arith.constant dense<0.000000e+00> : vector<32x64xf32>
    %62 = tpu.matmul %59, %61, %cst_46 {dimension_numbers = #tpu.dot_dimension_numbers<[1], [0], [0], [1], [0, 0, 1, 1], [], []>} : vector<32x32xf32>, vector<32x64xf32>, vector<32x64xf32> -> vector<32x64xf32>
    %c1_47 = arith.constant 1 : index
    %c0_48 = arith.constant 0 : index
    %c0_49 = arith.constant 0 : index
    %63 = vector.load %arg9[%c1_47, %c0_48, %c0_49] : memref<2x1x64xf32, #tpu.memory_space<vmem>>, vector<1x1x64xf32>
    %64 = vector.shape_cast %63 : vector<1x1x64xf32> to vector<1x64xf32>
    %65 = vector.broadcast %64 : vector<1x64xf32> to vector<32x64xf32>
    %66 = arith.addf %62, %65 : vector<32x64xf32>
    %cst_50 = arith.constant 0.000000e+00 : f32
    %67 = vector.broadcast %cst_50 : f32 to vector<32x64xf32>
    %68 = arith.maximumf %66, %67 : vector<32x64xf32>
    %c1_51 = arith.constant 1 : index
    %c0_52 = arith.constant 0 : index
    %c0_53 = arith.constant 0 : index
    %69 = vector.load %arg10[%c1_51, %c0_52, %c0_53] : memref<2x64x32xf32, #tpu.memory_space<vmem>>, vector<1x64x32xf32>
    %70 = vector.shape_cast %69 : vector<1x64x32xf32> to vector<64x32xf32>
    %cst_54 = arith.constant dense<0.000000e+00> : vector<32x32xf32>
    %71 = tpu.matmul %68, %70, %cst_54 {dimension_numbers = #tpu.dot_dimension_numbers<[1], [0], [0], [1], [0, 0, 1, 1], [], []>} : vector<32x64xf32>, vector<64x32xf32>, vector<32x32xf32> -> vector<32x32xf32>
    %72 = arith.addf %59, %71 : vector<32x32xf32>
    %c1_55 = arith.constant 1 : index
    %c0_56 = arith.constant 0 : index
    %c0_57 = arith.constant 0 : index
    %73 = vector.load %arg11[%c1_55, %c0_56, %c0_57] : memref<2x1x32xf32, #tpu.memory_space<vmem>>, vector<1x1x32xf32>
    %74 = vector.shape_cast %73 : vector<1x1x32xf32> to vector<1x32xf32>
    %75 = vector.broadcast %74 : vector<1x32xf32> to vector<32x32xf32>
    %76 = arith.addf %72, %75 : vector<32x32xf32>
    %c0_58 = arith.constant 0 : index
    %c0_59 = arith.constant 0 : index
    %77 = vector.load %arg15[%c0_58, %c0_59] : memref<126x32xf32, #tpu.memory_space<vmem>>, vector<126x32xf32>
    %cst_60 = arith.constant dense<0.000000e+00> : vector<126x32xf32>
    %78 = tpu.matmul %77, %76, %cst_60 {dimension_numbers = #tpu.dot_dimension_numbers<[1], [0], [0], [1], [0, 0, 1, 1], [], []>} : vector<126x32xf32>, vector<32x32xf32>, vector<126x32xf32> -> vector<126x32xf32>
    %79 = tpu.concatenate %7, %7 in 1 : vector<126x32xf32>, vector<126x32xf32> -> vector<126x64xf32>
    %c0_61 = arith.constant 0 : index
    %c0_62 = arith.constant 0 : index
    %c0_63 = arith.constant 0 : index
    %80 = vector.load %arg16[%c0_61, %c0_62, %c0_63] : memref<3x32x32xf32, #tpu.memory_space<vmem>>, vector<1x32x32xf32>
    %81 = vector.shape_cast %80 : vector<1x32x32xf32> to vector<32x32xf32>
    %cst_64 = arith.constant dense<0.000000e+00> : vector<126x32xf32>
    %82 = tpu.matmul %78, %81, %cst_64 {dimension_numbers = #tpu.dot_dimension_numbers<[1], [0], [0], [1], [0, 0, 1, 1], [], []>} : vector<126x32xf32>, vector<32x32xf32>, vector<126x32xf32> -> vector<126x32xf32>
    %c0_65 = arith.constant 0 : index
    %c0_66 = arith.constant 0 : index
    %c0_67 = arith.constant 0 : index
    %83 = vector.load %arg17[%c0_65, %c0_66, %c0_67] : memref<3x1x32xf32, #tpu.memory_space<vmem>>, vector<1x1x32xf32>
    %84 = vector.shape_cast %83 : vector<1x1x32xf32> to vector<1x32xf32>
    %85 = vector.broadcast %84 : vector<1x32xf32> to vector<126x32xf32>
    %86 = arith.addf %82, %85 : vector<126x32xf32>
    %87 = math.tanh %86 : vector<126x32xf32>
    %c0_68 = arith.constant 0 : index
    %c0_69 = arith.constant 0 : index
    %c0_70 = arith.constant 0 : index
    %88 = vector.load %arg18[%c0_68, %c0_69, %c0_70] : memref<3x32x32xf32, #tpu.memory_space<vmem>>, vector<1x32x32xf32>
    %89 = vector.shape_cast %88 : vector<1x32x32xf32> to vector<32x32xf32>
    %cst_71 = arith.constant dense<0.000000e+00> : vector<126x32xf32>
    %90 = tpu.matmul %78, %89, %cst_71 {dimension_numbers = #tpu.dot_dimension_numbers<[1], [0], [0], [1], [0, 0, 1, 1], [], []>} : vector<126x32xf32>, vector<32x32xf32>, vector<126x32xf32> -> vector<126x32xf32>
    %c0_72 = arith.constant 0 : index
    %c0_73 = arith.constant 0 : index
    %c0_74 = arith.constant 0 : index
    %91 = vector.load %arg19[%c0_72, %c0_73, %c0_74] : memref<3x1x32xf32, #tpu.memory_space<vmem>>, vector<1x1x32xf32>
    %92 = vector.shape_cast %91 : vector<1x1x32xf32> to vector<1x32xf32>
    %93 = vector.broadcast %92 : vector<1x32xf32> to vector<126x32xf32>
    %94 = arith.addf %90, %93 : vector<126x32xf32>
    %95 = arith.negf %94 : vector<126x32xf32>
    %96 = math.exp %95 : vector<126x32xf32>
    %cst_75 = arith.constant 1.000000e+00 : f32
    %97 = vector.broadcast %cst_75 : f32 to vector<126x32xf32>
    %98 = arith.addf %97, %96 : vector<126x32xf32>
    %99 = arith.divf %97, %98 : vector<126x32xf32>
    %100 = arith.mulf %87, %99 : vector<126x32xf32>
    %c0_76 = arith.constant 0 : index
    %c0_77 = arith.constant 0 : index
    %c0_78 = arith.constant 0 : index
    %101 = vector.load %arg20[%c0_76, %c0_77, %c0_78] : memref<3x32x64xf32, #tpu.memory_space<vmem>>, vector<1x32x64xf32>
    %102 = vector.shape_cast %101 : vector<1x32x64xf32> to vector<32x64xf32>
    %cst_79 = arith.constant dense<0.000000e+00> : vector<126x64xf32>
    %103 = tpu.matmul %100, %102, %cst_79 {dimension_numbers = #tpu.dot_dimension_numbers<[1], [0], [0], [1], [0, 0, 1, 1], [], []>} : vector<126x32xf32>, vector<32x64xf32>, vector<126x64xf32> -> vector<126x64xf32>
    %c0_80 = arith.constant 0 : index
    %c0_81 = arith.constant 0 : index
    %c0_82 = arith.constant 0 : index
    %104 = vector.load %arg21[%c0_80, %c0_81, %c0_82] : memref<3x1x64xf32, #tpu.memory_space<vmem>>, vector<1x1x64xf32>
    %105 = vector.shape_cast %104 : vector<1x1x64xf32> to vector<1x64xf32>
    %106 = vector.broadcast %105 : vector<1x64xf32> to vector<126x64xf32>
    %107 = arith.addf %103, %106 : vector<126x64xf32>
    %cst_83 = arith.constant 0.000000e+00 : f32
    %108 = vector.broadcast %cst_83 : f32 to vector<126x64xf32>
    %109 = arith.maximumf %107, %108 : vector<126x64xf32>
    %110 = arith.mulf %109, %79 : vector<126x64xf32>
    %c0_84 = arith.constant 0 : index
    %c0_85 = arith.constant 0 : index
    %c0_86 = arith.constant 0 : index
    %111 = vector.load %arg22[%c0_84, %c0_85, %c0_86] : memref<3x64x32xf32, #tpu.memory_space<vmem>>, vector<1x64x32xf32>
    %112 = vector.shape_cast %111 : vector<1x64x32xf32> to vector<64x32xf32>
    %cst_87 = arith.constant dense<0.000000e+00> : vector<126x32xf32>
    %113 = tpu.matmul %110, %112, %cst_87 {dimension_numbers = #tpu.dot_dimension_numbers<[1], [0], [0], [1], [0, 0, 1, 1], [], []>} : vector<126x64xf32>, vector<64x32xf32>, vector<126x32xf32> -> vector<126x32xf32>
    %c1_88 = arith.constant 1 : index
    %c0_89 = arith.constant 0 : index
    %c0_90 = arith.constant 0 : index
    %114 = vector.load %arg16[%c1_88, %c0_89, %c0_90] : memref<3x32x32xf32, #tpu.memory_space<vmem>>, vector<1x32x32xf32>
    %115 = vector.shape_cast %114 : vector<1x32x32xf32> to vector<32x32xf32>
    %cst_91 = arith.constant dense<0.000000e+00> : vector<126x32xf32>
    %116 = tpu.matmul %57, %115, %cst_91 {dimension_numbers = #tpu.dot_dimension_numbers<[1], [0], [0], [1], [0, 0, 1, 1], [], []>} : vector<126x32xf32>, vector<32x32xf32>, vector<126x32xf32> -> vector<126x32xf32>
    %c1_92 = arith.constant 1 : index
    %c0_93 = arith.constant 0 : index
    %c0_94 = arith.constant 0 : index
    %117 = vector.load %arg17[%c1_92, %c0_93, %c0_94] : memref<3x1x32xf32, #tpu.memory_space<vmem>>, vector<1x1x32xf32>
    %118 = vector.shape_cast %117 : vector<1x1x32xf32> to vector<1x32xf32>
    %119 = vector.broadcast %118 : vector<1x32xf32> to vector<126x32xf32>
    %120 = arith.addf %116, %119 : vector<126x32xf32>
    %121 = math.tanh %120 : vector<126x32xf32>
    %c1_95 = arith.constant 1 : index
    %c0_96 = arith.constant 0 : index
    %c0_97 = arith.constant 0 : index
    %122 = vector.load %arg18[%c1_95, %c0_96, %c0_97] : memref<3x32x32xf32, #tpu.memory_space<vmem>>, vector<1x32x32xf32>
    %123 = vector.shape_cast %122 : vector<1x32x32xf32> to vector<32x32xf32>
    %cst_98 = arith.constant dense<0.000000e+00> : vector<126x32xf32>
    %124 = tpu.matmul %57, %123, %cst_98 {dimension_numbers = #tpu.dot_dimension_numbers<[1], [0], [0], [1], [0, 0, 1, 1], [], []>} : vector<126x32xf32>, vector<32x32xf32>, vector<126x32xf32> -> vector<126x32xf32>
    %c1_99 = arith.constant 1 : index
    %c0_100 = arith.constant 0 : index
    %c0_101 = arith.constant 0 : index
    %125 = vector.load %arg19[%c1_99, %c0_100, %c0_101] : memref<3x1x32xf32, #tpu.memory_space<vmem>>, vector<1x1x32xf32>
    %126 = vector.shape_cast %125 : vector<1x1x32xf32> to vector<1x32xf32>
    %127 = vector.broadcast %126 : vector<1x32xf32> to vector<126x32xf32>
    %128 = arith.addf %124, %127 : vector<126x32xf32>
    %129 = arith.negf %128 : vector<126x32xf32>
    %130 = math.exp %129 : vector<126x32xf32>
    %cst_102 = arith.constant 1.000000e+00 : f32
    %131 = vector.broadcast %cst_102 : f32 to vector<126x32xf32>
    %132 = arith.addf %131, %130 : vector<126x32xf32>
    %133 = arith.divf %131, %132 : vector<126x32xf32>
    %134 = arith.mulf %121, %133 : vector<126x32xf32>
    %c1_103 = arith.constant 1 : index
    %c0_104 = arith.constant 0 : index
    %c0_105 = arith.constant 0 : index
    %135 = vector.load %arg20[%c1_103, %c0_104, %c0_105] : memref<3x32x64xf32, #tpu.memory_space<vmem>>, vector<1x32x64xf32>
    %136 = vector.shape_cast %135 : vector<1x32x64xf32> to vector<32x64xf32>
    %cst_106 = arith.constant dense<0.000000e+00> : vector<126x64xf32>
    %137 = tpu.matmul %134, %136, %cst_106 {dimension_numbers = #tpu.dot_dimension_numbers<[1], [0], [0], [1], [0, 0, 1, 1], [], []>} : vector<126x32xf32>, vector<32x64xf32>, vector<126x64xf32> -> vector<126x64xf32>
    %c1_107 = arith.constant 1 : index
    %c0_108 = arith.constant 0 : index
    %c0_109 = arith.constant 0 : index
    %138 = vector.load %arg21[%c1_107, %c0_108, %c0_109] : memref<3x1x64xf32, #tpu.memory_space<vmem>>, vector<1x1x64xf32>
    %139 = vector.shape_cast %138 : vector<1x1x64xf32> to vector<1x64xf32>
    %140 = vector.broadcast %139 : vector<1x64xf32> to vector<126x64xf32>
    %141 = arith.addf %137, %140 : vector<126x64xf32>
    %cst_110 = arith.constant 0.000000e+00 : f32
    %142 = vector.broadcast %cst_110 : f32 to vector<126x64xf32>
    %143 = arith.maximumf %141, %142 : vector<126x64xf32>
    %144 = arith.mulf %143, %79 : vector<126x64xf32>
    %c1_111 = arith.constant 1 : index
    %c0_112 = arith.constant 0 : index
    %c0_113 = arith.constant 0 : index
    %145 = vector.load %arg22[%c1_111, %c0_112, %c0_113] : memref<3x64x32xf32, #tpu.memory_space<vmem>>, vector<1x64x32xf32>
    %146 = vector.shape_cast %145 : vector<1x64x32xf32> to vector<64x32xf32>
    %cst_114 = arith.constant dense<0.000000e+00> : vector<126x32xf32>
    %147 = tpu.matmul %144, %146, %cst_114 {dimension_numbers = #tpu.dot_dimension_numbers<[1], [0], [0], [1], [0, 0, 1, 1], [], []>} : vector<126x64xf32>, vector<64x32xf32>, vector<126x32xf32> -> vector<126x32xf32>
    %c2 = arith.constant 2 : index
    %c0_115 = arith.constant 0 : index
    %c0_116 = arith.constant 0 : index
    %148 = vector.load %arg16[%c2, %c0_115, %c0_116] : memref<3x32x32xf32, #tpu.memory_space<vmem>>, vector<1x32x32xf32>
    %149 = vector.shape_cast %148 : vector<1x32x32xf32> to vector<32x32xf32>
    %cst_117 = arith.constant dense<0.000000e+00> : vector<126x32xf32>
    %150 = tpu.matmul %78, %149, %cst_117 {dimension_numbers = #tpu.dot_dimension_numbers<[1], [0], [0], [1], [0, 0, 1, 1], [], []>} : vector<126x32xf32>, vector<32x32xf32>, vector<126x32xf32> -> vector<126x32xf32>
    %c2_118 = arith.constant 2 : index
    %c0_119 = arith.constant 0 : index
    %c0_120 = arith.constant 0 : index
    %151 = vector.load %arg17[%c2_118, %c0_119, %c0_120] : memref<3x1x32xf32, #tpu.memory_space<vmem>>, vector<1x1x32xf32>
    %152 = vector.shape_cast %151 : vector<1x1x32xf32> to vector<1x32xf32>
    %153 = vector.broadcast %152 : vector<1x32xf32> to vector<126x32xf32>
    %154 = arith.addf %150, %153 : vector<126x32xf32>
    %155 = math.tanh %154 : vector<126x32xf32>
    %c2_121 = arith.constant 2 : index
    %c0_122 = arith.constant 0 : index
    %c0_123 = arith.constant 0 : index
    %156 = vector.load %arg18[%c2_121, %c0_122, %c0_123] : memref<3x32x32xf32, #tpu.memory_space<vmem>>, vector<1x32x32xf32>
    %157 = vector.shape_cast %156 : vector<1x32x32xf32> to vector<32x32xf32>
    %cst_124 = arith.constant dense<0.000000e+00> : vector<126x32xf32>
    %158 = tpu.matmul %78, %157, %cst_124 {dimension_numbers = #tpu.dot_dimension_numbers<[1], [0], [0], [1], [0, 0, 1, 1], [], []>} : vector<126x32xf32>, vector<32x32xf32>, vector<126x32xf32> -> vector<126x32xf32>
    %c2_125 = arith.constant 2 : index
    %c0_126 = arith.constant 0 : index
    %c0_127 = arith.constant 0 : index
    %159 = vector.load %arg19[%c2_125, %c0_126, %c0_127] : memref<3x1x32xf32, #tpu.memory_space<vmem>>, vector<1x1x32xf32>
    %160 = vector.shape_cast %159 : vector<1x1x32xf32> to vector<1x32xf32>
    %161 = vector.broadcast %160 : vector<1x32xf32> to vector<126x32xf32>
    %162 = arith.addf %158, %161 : vector<126x32xf32>
    %163 = arith.negf %162 : vector<126x32xf32>
    %164 = math.exp %163 : vector<126x32xf32>
    %cst_128 = arith.constant 1.000000e+00 : f32
    %165 = vector.broadcast %cst_128 : f32 to vector<126x32xf32>
    %166 = arith.addf %165, %164 : vector<126x32xf32>
    %167 = arith.divf %165, %166 : vector<126x32xf32>
    %168 = arith.mulf %155, %167 : vector<126x32xf32>
    %c2_129 = arith.constant 2 : index
    %c0_130 = arith.constant 0 : index
    %c0_131 = arith.constant 0 : index
    %169 = vector.load %arg20[%c2_129, %c0_130, %c0_131] : memref<3x32x64xf32, #tpu.memory_space<vmem>>, vector<1x32x64xf32>
    %170 = vector.shape_cast %169 : vector<1x32x64xf32> to vector<32x64xf32>
    %cst_132 = arith.constant dense<0.000000e+00> : vector<126x64xf32>
    %171 = tpu.matmul %168, %170, %cst_132 {dimension_numbers = #tpu.dot_dimension_numbers<[1], [0], [0], [1], [0, 0, 1, 1], [], []>} : vector<126x32xf32>, vector<32x64xf32>, vector<126x64xf32> -> vector<126x64xf32>
    %c2_133 = arith.constant 2 : index
    %c0_134 = arith.constant 0 : index
    %c0_135 = arith.constant 0 : index
    %172 = vector.load %arg21[%c2_133, %c0_134, %c0_135] : memref<3x1x64xf32, #tpu.memory_space<vmem>>, vector<1x1x64xf32>
    %173 = vector.shape_cast %172 : vector<1x1x64xf32> to vector<1x64xf32>
    %174 = vector.broadcast %173 : vector<1x64xf32> to vector<126x64xf32>
    %175 = arith.addf %171, %174 : vector<126x64xf32>
    %cst_136 = arith.constant 0.000000e+00 : f32
    %176 = vector.broadcast %cst_136 : f32 to vector<126x64xf32>
    %177 = arith.maximumf %175, %176 : vector<126x64xf32>
    %178 = arith.mulf %177, %79 : vector<126x64xf32>
    %c2_137 = arith.constant 2 : index
    %c0_138 = arith.constant 0 : index
    %c0_139 = arith.constant 0 : index
    %179 = vector.load %arg22[%c2_137, %c0_138, %c0_139] : memref<3x64x32xf32, #tpu.memory_space<vmem>>, vector<1x64x32xf32>
    %180 = vector.shape_cast %179 : vector<1x64x32xf32> to vector<64x32xf32>
    %cst_140 = arith.constant dense<0.000000e+00> : vector<126x32xf32>
    %181 = tpu.matmul %178, %180, %cst_140 {dimension_numbers = #tpu.dot_dimension_numbers<[1], [0], [0], [1], [0, 0, 1, 1], [], []>} : vector<126x64xf32>, vector<64x32xf32>, vector<126x32xf32> -> vector<126x32xf32>
    %182 = tpu.concatenate %113, %147, %181 in 1 : vector<126x32xf32>, vector<126x32xf32>, vector<126x32xf32> -> vector<126x96xf32>
    %c0_141 = arith.constant 0 : index
    %c0_142 = arith.constant 0 : index
    %183 = vector.load %arg23[%c0_141, %c0_142] : memref<126x96xf32, #tpu.memory_space<vmem>>, vector<126x96xf32>
    tpu.vector_store %arg23[%c0_141, %c0_142], %182 {strides = array<i32>} : memref<126x96xf32, #tpu.memory_space<vmem>>, vector<126x96xf32>,
    return
  }
  func.func @transform_0(%arg0: i32) -> (i32, i32) {
    %c0_i32 = arith.constant 0 : i32
    %c0_i32_0 = arith.constant 0 : i32
    %c0_i32_1 = arith.constant 0 : i32
    return %c0_i32, %c0_i32_0 : i32, i32
  }
  func.func @transform_1(%arg0: i32) -> (i32, i32) {
    %c0_i32 = arith.constant 0 : i32
    %c0_i32_0 = arith.constant 0 : i32
    %c0_i32_1 = arith.constant 0 : i32
    return %c0_i32, %c0_i32_0 : i32, i32
  }
  func.func @transform_2(%arg0: i32) -> (i32, i32) {
    %c0_i32 = arith.constant 0 : i32
    %c0_i32_0 = arith.constant 0 : i32
    %c0_i32_1 = arith.constant 0 : i32
    return %c0_i32, %c0_i32_0 : i32, i32
  }
  func.func @transform_3(%arg0: i32) -> (i32, i32) {
    %c0_i32 = arith.constant 0 : i32
    %c0_i32_0 = arith.constant 0 : i32
    %c0_i32_1 = arith.constant 0 : i32
    return %c0_i32, %c0_i32_0 : i32, i32
  }
  func.func @transform_4(%arg0: i32) -> (i32, i32) {
    %c0_i32 = arith.constant 0 : i32
    %c0_i32_0 = arith.constant 0 : i32
    %c0_i32_1 = arith.constant 0 : i32
    return %c0_i32, %c0_i32_0 : i32, i32
  }
  func.func @transform_5(%arg0: i32) -> (i32, i32) {
    %c0_i32 = arith.constant 0 : i32
    %c0_i32_0 = arith.constant 0 : i32
    %c0_i32_1 = arith.constant 0 : i32
    return %c0_i32, %c0_i32_0 : i32, i32
  }
  func.func @transform_6(%arg0: i32) -> (i32, i32) {
    %c0_i32 = arith.constant 0 : i32
    %c0_i32_0 = arith.constant 0 : i32
    %c0_i32_1 = arith.constant 0 : i32
    return %c0_i32, %c0_i32_0 : i32, i32
  }
  func.func @transform_7(%arg0: i32) -> (i32, i32, i32) {
    %c0_i32 = arith.constant 0 : i32
    %c0_i32_0 = arith.constant 0 : i32
    %c0_i32_1 = arith.constant 0 : i32
    %c0_i32_2 = arith.constant 0 : i32
    return %c0_i32, %c0_i32_0, %c0_i32_1 : i32, i32, i32
  }
  func.func @transform_8(%arg0: i32) -> (i32, i32, i32) {
    %c0_i32 = arith.constant 0 : i32
    %c0_i32_0 = arith.constant 0 : i32
    %c0_i32_1 = arith.constant 0 : i32
    %c0_i32_2 = arith.constant 0 : i32
    return %c0_i32, %c0_i32_0, %c0_i32_1 : i32, i32, i32
  }
  func.func @transform_9(%arg0: i32) -> (i32, i32, i32) {
    %c0_i32 = arith.constant 0 : i32
    %c0_i32_0 = arith.constant 0 : i32
    %c0_i32_1 = arith.constant 0 : i32
    %c0_i32_2 = arith.constant 0 : i32
    return %c0_i32, %c0_i32_0, %c0_i32_1 : i32, i32, i32
  }
  func.func @transform_10(%arg0: i32) -> (i32, i32, i32) {
    %c0_i32 = arith.constant 0 : i32
    %c0_i32_0 = arith.constant 0 : i32
    %c0_i32_1 = arith.constant 0 : i32
    %c0_i32_2 = arith.constant 0 : i32
    return %c0_i32, %c0_i32_0, %c0_i32_1 : i32, i32, i32
  }
  func.func @transform_11(%arg0: i32) -> (i32, i32) {
    %c0_i32 = arith.constant 0 : i32
    %c0_i32_0 = arith.constant 0 : i32
    %c0_i32_1 = arith.constant 0 : i32
    return %c0_i32, %c0_i32_0 : i32, i32
  }
  func.func @transform_12(%arg0: i32) -> (i32, i32) {
    %c0_i32 = arith.constant 0 : i32
    %c0_i32_0 = arith.constant 0 : i32
    %c0_i32_1 = arith.constant 0 : i32
    return %c0_i32, %c0_i32_0 : i32, i32
  }
  func.func @transform_13(%arg0: i32) -> (i32, i32) {
    %c0_i32 = arith.constant 0 : i32
    %c0_i32_0 = arith.constant 0 : i32
    %c0_i32_1 = arith.constant 0 : i32
    return %c0_i32, %c0_i32_0 : i32, i32
  }
  func.func @transform_14(%arg0: i32) -> (i32, i32) {
    %c0_i32 = arith.constant 0 : i32
    %c0_i32_0 = arith.constant 0 : i32
    %c0_i32_1 = arith.constant 0 : i32
    return %c0_i32, %c0_i32_0 : i32, i32
  }
  func.func @transform_15(%arg0: i32) -> (i32, i32, i32) {
    %c0_i32 = arith.constant 0 : i32
    %c0_i32_0 = arith.constant 0 : i32
    %c0_i32_1 = arith.constant 0 : i32
    %c0_i32_2 = arith.constant 0 : i32
    return %c0_i32, %c0_i32_0, %c0_i32_1 : i32, i32, i32
  }
  func.func @transform_16(%arg0: i32) -> (i32, i32, i32) {
    %c0_i32 = arith.constant 0 : i32
    %c0_i32_0 = arith.constant 0 : i32
    %c0_i32_1 = arith.constant 0 : i32
    %c0_i32_2 = arith.constant 0 : i32
    return %c0_i32, %c0_i32_0, %c0_i32_1 : i32, i32, i32
  }
  func.func @transform_17(%arg0: i32) -> (i32, i32, i32) {
    %c0_i32 = arith.constant 0 : i32
    %c0_i32_0 = arith.constant 0 : i32
    %c0_i32_1 = arith.constant 0 : i32
    %c0_i32_2 = arith.constant 0 : i32
    return %c0_i32, %c0_i32_0, %c0_i32_1 : i32, i32, i32
  }
  func.func @transform_18(%arg0: i32) -> (i32, i32, i32) {
    %c0_i32 = arith.constant 0 : i32
    %c0_i32_0 = arith.constant 0 : i32
    %c0_i32_1 = arith.constant 0 : i32
    %c0_i32_2 = arith.constant 0 : i32
    return %c0_i32, %c0_i32_0, %c0_i32_1 : i32, i32, i32
  }
  func.func @transform_19(%arg0: i32) -> (i32, i32, i32) {
    %c0_i32 = arith.constant 0 : i32
    %c0_i32_0 = arith.constant 0 : i32
    %c0_i32_1 = arith.constant 0 : i32
    %c0_i32_2 = arith.constant 0 : i32
    return %c0_i32, %c0_i32_0, %c0_i32_1 : i32, i32, i32
  }
  func.func @transform_20(%arg0: i32) -> (i32, i32, i32) {
    %c0_i32 = arith.constant 0 : i32
    %c0_i32_0 = arith.constant 0 : i32
    %c0_i32_1 = arith.constant 0 : i32
    %c0_i32_2 = arith.constant 0 : i32
    return %c0_i32, %c0_i32_0, %c0_i32_1 : i32, i32, i32
  }
  func.func @transform_21(%arg0: i32) -> (i32, i32, i32) {
    %c0_i32 = arith.constant 0 : i32
    %c0_i32_0 = arith.constant 0 : i32
    %c0_i32_1 = arith.constant 0 : i32
    %c0_i32_2 = arith.constant 0 : i32
    return %c0_i32, %c0_i32_0, %c0_i32_1 : i32, i32, i32
  }
  func.func @transform_22(%arg0: i32) -> (i32, i32) {
    %c0_i32 = arith.constant 0 : i32
    %c0_i32_0 = arith.constant 0 : i32
    %c0_i32_1 = arith.constant 0 : i32
    return %c0_i32, %c0_i32_0 : i32, i32
  }
}

</mosaic_0001>

<bundles_post_ra>
// kernel: _lambda_.1
= control target key start
LH: loop header
LB: loop body
LE: loop exit
PB: predicated region body
PF: predicated region fallthrough
CT: control target
= control target key end

     0   :  { %vm93_vm0 = vcmask 130048   ;;  %vm223_vm1 = vcmask 261120   ;;  %v4821_v45 = vmov 32.0   ;;  %vm269_vm7 = vcmask 259072   ;;  %s7095_s1 = inlined_call_operand.vmem [shape: f32[16,32], index: 1, kind: input, shape index: {}]   ;;  %s7096_s0 = inlined_call_operand.vmem [shape: f32[126,16], index: 0, kind: input, shape index: {}]   ;;  %s7097_s2 = inlined_call_operand.vmem [shape: f32[1,32], index: 2, kind: input, shape index: {}, may-alias: {2,4,6}]   ;;  %s7098_s3 = inlined_call_operand.vmem [shape: f32[1,32], index: 3, kind: input, shape index: {}]   ;;  %s7099_s4 = inlined_call_operand.vmem [shape: f32[1,32], index: 4, kind: input, shape index: {}, may-alias: {2,4,6}]   ;;  %s7100_s5 = inlined_call_operand.vmem [shape: f32[32,32], index: 5, kind: input, shape index: {}]   ;;  %s7101_s6 = inlined_call_operand.vmem [shape: f32[1,32], index: 6, kind: input, shape index: {}, may-alias: {2,4,6}]   ;;  %s7102_s11 = inlined_call_operand.vmem [shape: f32[64,126], index: 11, kind: input, shape index: {}]   ;;  %s7103_s7 = inlined_call_operand.vmem [shape: f32[2,32,64], index: 7, kind: input, shape index: {}]   ;;  %s7104_s8 = inlined_call_operand.vmem [shape: f32[2,1,64], index: 8, kind: input, shape index: {}]   ;;  %s7105_s9 = inlined_call_operand.vmem [shape: f32[2,64,32], index: 9, kind: input, shape index: {}]   ;;  %s7106_s10 = inlined_call_operand.vmem [shape: f32[2,1,32], index: 10, kind: input, shape index: {}]   ;;  %s7107_s13 = inlined_call_operand.vmem [shape: f32[126,64], index: 13, kind: input, shape index: {}]   ;;  %s7108_s12 = inlined_call_operand.vmem [shape: f32[32,64], index: 12, kind: input, shape index: {}]   ;;  %s7109_s14 = inlined_call_operand.vmem [shape: f32[126,32], index: 14, kind: input, shape index: {}]   ;;  %s7110_s15 = inlined_call_operand.vmem [shape: f32[3,32,32], index: 15, kind: input, shape index: {}]   ;;  %s7111_s17 = inlined_call_operand.vmem [shape: f32[3,32,32], index: 17, kind: input, shape index: {}]   ;;  %s7112_s16 = inlined_call_operand.vmem [shape: f32[3,1,32], index: 16, kind: input, shape index: {}, may-alias: {16,18}]   ;;  %s7113_s18 = inlined_call_operand.vmem [shape: f32[3,1,32], index: 18, kind: input, shape index: {}, may-alias: {16,18}]   ;;  %s7114_s19 = inlined_call_operand.vmem [shape: f32[3,32,64], index: 19, kind: input, shape index: {}]   ;;  %s7115_s20 = inlined_call_operand.vmem [shape: f32[3,1,64], index: 20, kind: input, shape index: {}]   ;;  %s7116_s21 = inlined_call_operand.vmem [shape: f32[3,64,32], index: 21, kind: input, shape index: {}]   ;;  %s7117_s22 = inlined_call_operand.vmem [shape: f32[126,96], index: 22, kind: output, shape index: {}]  }
   0x1   :  { %7121 = sst [smem:[#allocation2_spill]] %s7095_s1  ;;  %4494 = vrcp.f32 %v4821_v45 }
   0x2   :  { %7122 = sst [smem:[#allocation3_spill]] %s7096_s0 }
   0x3   :  { %7123 = sst [smem:[#allocation4_spill]] %s7097_s2 }
   0x4   :  { %7124 = sst [smem:[#allocation5_spill]] %s7098_s3 }
   0x5   :  { %7125 = sst [smem:[#allocation6_spill]] %s7099_s4 }
   0x6   :  { %7126 = sst [smem:[#allocation7_spill]] %s7100_s5 }
   0x7   :  { %7127 = sst [smem:[#allocation8_spill]] %s7101_s6  ;;  %v4495_v46 = vpop.eup %4494 }
   0x8   :  { %s7128_s29 = sld [smem:[#allocation2_spill]]  ;;  %v274_v48 = vmul.f32 32.0, %v4495_v46  ;;  %vm278_vm2 = vweird.f32 %v4495_v46 }
   0x9   :  { %s7129_s0 = sld [smem:[#allocation3_spill]] }
   0xa   :  { %s7130_s28 = sld [smem:[#allocation4_spill]]  ;;  %v275_v49 = vsub.f32 1.0, %v274_v48 }
   0xb   :  { %s7131_s27 = sld [smem:[#allocation7_spill]] }
   0xc   :  { %v276_v51 = vmul.f32 %v4495_v46, %v275_v49  ;;  %s7132_s24 = sld [smem:[#allocation5_spill]] }
   0xd   :  { %s7133_s26 = sld [smem:[#allocation6_spill]] }
   0xe   :  { %v88_v0 = vld [vmem:[%s7128_s29 + $0x8] sm:$0xff]  ;;  %v87_v1 = vld [vmem:[%s7128_s29] sm:$0xff]  ;;  %v277_v53 = vadd.f32 %v4495_v46, %v276_v51  ;;  %s7134_s3 = sld [smem:[#allocation8_spill]] }
   0xf   :  { %156 = vmatpush.msra.mxu0 %v88_v0  ;;  %v71_v2 = vld [vmem:[%s7129_s0] sm:$0xff]  ;;  %4460 = vmatpush.msra.mxu1 %v88_v0  ;;  %v72_v3 = vld [vmem:[%s7129_s0 + $0x8] sm:$0xff]  ;;  %v73_v4 = vld [vmem:[%s7129_s0 + $0x10] sm:$0xff] }
  0x10   :  { %v74_v5 = vld [vmem:[%s7129_s0 + $0x18] sm:$0xff]  ;;  %v75_v6 = vld [vmem:[%s7129_s0 + $0x20] sm:$0xff]  ;;  %v76_v7 = vld [vmem:[%s7129_s0 + $0x28] sm:$0xff]  ;;  %v5049_v54 = vsel %vm278_vm2, %v4495_v46, %v277_v53 }
  0x11   :  { %157 = vmatpush.msra.mxu0 %v87_v1  ;;  %4461 = vmatpush.msra.mxu1 %v87_v1  ;;  %v77_v8 = vld [vmem:[%s7129_s0 + $0x30] sm:$0xff]  ;;  %v78_v9 = vld [vmem:[%s7129_s0 + $0x38] sm:$0xff]  ;;  %v79_v10 = vld [vmem:[%s7129_s0 + $0x40] sm:$0xff] }
  0x12   :  { %4059 = vmatmul.msk.f32.vlgmr.msra.gmra.mxu0 %vm93_vm0, %v71_v2  ;;  %v80_v11 = vld [vmem:[%s7129_s0 + $0x48] sm:$0xff]  ;;  %v81_v12 = vld [vmem:[%s7129_s0 + $0x50] sm:$0xff]  ;;  %v4992_v13 = vld [vmem:[%s7130_s28] ss:$0 sm:$0xff] }
  0x13   :  { %v82_v17 = vld [vmem:[%s7129_s0 + $0x58] sm:$0xff]  ;;  %v83_v22 = vld [vmem:[%s7129_s0 + $0x60] sm:$0xff]  ;;  %v84_v27 = vld [vmem:[%s7129_s0 + $0x68] sm:$0xff] }
  0x14   :  { %v85_v47 = vld [vmem:[%s7129_s0 + $0x70] sm:$0xff]  ;;  %v86_v50 = vld [vmem:[%s7129_s0 + $0x78] sm:$0x3f]  ;;  %s4822_s0 = smov 32  }
  0x15   :  { %4074 = vmatmul.msk.f32.vlgmr.msra.gmra.mxu1 %vm93_vm0, %v86_v50 }
  0x1a   :  { %4060 = vmatmul.msk.f32.gmra.mxu0 %vm93_vm0, %v72_v3 }
  0x22   :  { %4061 = vmatmul.msk.f32.gmra.mxu0 %vm93_vm0, %v73_v4 }
  0x2a   :  { %4062 = vmatmul.msk.f32.gmra.mxu0 %vm93_vm0, %v74_v5 }
  0x32   :  { %4063 = vmatmul.msk.f32.gmra.mxu0 %vm93_vm0, %v75_v6 }
  0x3a   :  { %4064 = vmatmul.msk.f32.gmra.mxu0 %vm93_vm0, %v76_v7 }
  0x42   :  { %4065 = vmatmul.msk.f32.gmra.mxu0 %vm93_vm0, %v77_v8 }
  0x4a   :  { %4066 = vmatmul.msk.f32.gmra.mxu0 %vm93_vm0, %v78_v9 }
  0x52   :  { %4067 = vmatmul.msk.f32.gmra.mxu0 %vm93_vm0, %v79_v10 }
  0x5a   :  { %4068 = vmatmul.msk.f32.gmra.mxu0 %vm93_vm0, %v80_v11 }
  0x62   :  { %4069 = vmatmul.msk.f32.gmra.mxu0 %vm93_vm0, %v81_v12 }
  0x6a   :  { %4070 = vmatmul.msk.f32.gmra.mxu0 %vm93_vm0, %v82_v17 }
  0x72   :  { %4071 = vmatmul.msk.f32.gmra.mxu0 %vm93_vm0, %v83_v22 }
  0x7a   :  { %4072 = vmatmul.msk.f32.gmra.mxu0 %vm93_vm0, %v84_v27 }
  0x82   :  { %4073 = vmatmul.msk.f32.gmra.mxu0 %vm93_vm0, %v85_v47 }
  0x8f   :  { %v159_v14 = vpop.f32.mrf.mxu0 }
  0x90   :  { %v160_v15 = vadd.f32 %v4992_v13, %v159_v14 }
  0x92   :  { %v4995_v16 = vmax.f32 %v160_v15, 0.0 }
  0x94   :  { %v224_v18 = vsel %vm223_vm1, %v4995_v16, 0.0 }
  0x95   :  { %225 = vadd.xlane.f32.xlu0 %v224_v18 }
  0x97   :  { %v162_v19 = vpop.f32.mrf.mxu0 }
  0x98   :  { %v163_v20 = vadd.f32 %v4992_v13, %v162_v19 }
  0x9a   :  { %v5004_v21 = vmax.f32 %v163_v20, 0.0 }
  0x9c   :  { %v227_v23 = vsel %vm223_vm1, %v5004_v21, 0.0 }
  0x9d   :  { %228 = vadd.xlane.f32.xlu0 %v227_v23 }
  0x9f   :  { %v165_v24 = vpop.f32.mrf.mxu0 }
  0xa0   :  { %v166_v25 = vadd.f32 %v4992_v13, %v165_v24 }
  0xa2   :  { %v5013_v26 = vmax.f32 %v166_v25, 0.0 }
  0xa4   :  { %v230_v28 = vsel %vm223_vm1, %v5013_v26, 0.0 }
  0xa5   :  { %231 = vadd.xlane.f32.xlu1 %v230_v28 }
  0xa7   :  { %v168_v29 = vpop.f32.mrf.mxu0 }
  0xa8   :  { %v169_v30 = vadd.f32 %v4992_v13, %v168_v29 }
  0xaa   :  { %v5022_v31 = vmax.f32 %v169_v30, 0.0 }
  0xac   :  { %v233_v32 = vsel %vm223_vm1, %v5022_v31, 0.0 }
  0xad   :  { %234 = vadd.xlane.f32.xlu1 %v233_v32 }
  0xaf   :  { %v171_v33 = vpop.f32.mrf.mxu0 }
  0xb0   :  { %v172_v34 = vadd.f32 %v4992_v13, %v171_v33 }
  0xb2   :  { %v5027_v35 = vmax.f32 %v172_v34, 0.0 }
  0xb4   :  { %v236_v36 = vsel %vm223_vm1, %v5027_v35, 0.0 }
  0xb5   :  { %237 = vadd.xlane.f32.xlu2 %v236_v36 }
  0xb7   :  { %v174_v37 = vpop.f32.mrf.mxu0 }
  0xb8   :  { %v175_v38 = vadd.f32 %v4992_v13, %v174_v37 }
  0xba   :  { %v5032_v39 = vmax.f32 %v175_v38, 0.0 }
  0xbc   :  { %v239_v40 = vsel %vm223_vm1, %v5032_v39, 0.0 }
  0xbd   :  { %240 = vadd.xlane.f32.xlu2 %v239_v40 }
  0xbf   :  { %v177_v41 = vpop.f32.mrf.mxu0 }
  0xc0   :  { %v178_v42 = vadd.f32 %v4992_v13, %v177_v41 }
  0xc2   :  { %v5037_v43 = vmax.f32 %v178_v42, 0.0 }
  0xc4   :  { %v242_v44 = vsel %vm223_vm1, %v5037_v43, 0.0 }
  0xc5   :  { %243 = vadd.xlane.f32.xlu1 %v242_v44 }
  0xc7   :  { %v180_v52 = vpop.f32.mrf.mxu0 }
  0xc8   :  { %v181_v60 = vadd.f32 %v4992_v13, %v180_v52 }
  0xca   :  { %v5060_v0 = vmax.f32 %v181_v60, 0.0 }
  0xcc   :  { %v245_v3 = vsel %vm223_vm1, %v5060_v0, 0.0 }
  0xcf   :  { %v183_v56 = vpop.f32.mrf.mxu0 }
  0xd0   :  { %v184_v5 = vadd.f32 %v4992_v13, %v183_v56 }
  0xd2   :  { %v5072_v9 = vmax.f32 %v184_v5, 0.0 }
  0xd4   :  { %v248_v14 = vsel %vm223_vm1, %v5072_v9, 0.0 }
  0xd7   :  { %v186_v1 = vpop.f32.mrf.mxu0 }
  0xd8   :  { %v187_v15 = vadd.f32 %v4992_v13, %v186_v1  ;;  %v626_v1 = vld [vmem:[%s7131_s27 + $0x10] sm:$0xff] }
  0xda   :  { %v5084_v20 = vmax.f32 %v187_v15, 0.0 }
  0xdc   :  { %v251_v23 = vsel %vm223_vm1, %v5084_v20, 0.0 }
  0xdf   :  { %v189_v11 = vpop.f32.mrf.mxu0 }
  0xe0   :  { %v190_v25 = vadd.f32 %v4992_v13, %v189_v11 }
  0xe2   :  { %v5096_v32 = vmax.f32 %v190_v25, 0.0 }
  0xe4   :  { %v254_v34 = vsel %vm223_vm1, %v5096_v32, 0.0 }
  0xe7   :  { %v192_v27 = vpop.f32.mrf.mxu0 }
  0xe8   :  { %v193_v37 = vadd.f32 %v4992_v13, %v192_v27 }
  0xea   :  { %v5108_v44 = vmax.f32 %v193_v37, 0.0 }
  0xec   :  { %v257_v47 = vsel %vm223_vm1, %v5108_v44, 0.0 }
  0xef   :  { %v195_v41 = vpop.f32.mrf.mxu0 }
  0xf0   :  { %v196_v48 = vadd.f32 %v4992_v13, %v195_v41  ;;  %v204_v41 = vpop.f32.mrf.mxu1 }
  0xf2   :  { %v5120_v52 = vmax.f32 %v196_v48, 0.0 }
  0xf4   :  { %v260_v56 = vsel %vm223_vm1, %v5120_v52, 0.0 }
  0xf7   :  { %v198_v53 = vpop.f32.mrf.mxu0 }
  0xff   :  { %v201_v15 = vpop.f32.mrf.mxu0 }
 0x100   :  { %v202_v25 = vadd.f32 %v4992_v13, %v201_v15 }
 0x108   :  { %v226_v55 = vpop.xlane.xlu0 %225 }
 0x109   :  { %v280_v57 = vmul.f32 %v5049_v54, %v226_v55 }
 0x10b   :  { %v5053_v58 = vsub.f32 %v4995_v16, %v280_v57 }
 0x10d   :  { %v312_v59 = vmul.f32 %v5053_v58, %v5053_v58 }
 0x10f   :  { %v328_v61 = vsel %vm223_vm1, %v312_v59, 0.0  ;;  %v199_v59 = vadd.f32 %v4992_v13, %v198_v53  ;;  %v205_v53 = vadd.f32 %v4992_v13, %v204_v41 }
 0x110   :  { %329 = vadd.xlane.f32.xlu0 %v328_v61  ;;  %v229_v62 = vpop.xlane.xlu0 %228 }
 0x111   :  { %v281_v63 = vmul.f32 %v5049_v54, %v229_v62  ;;  %v5131_v61 = vmax.f32 %v199_v59, 0.0 }
 0x113   :  { %v5063_v2 = vsub.f32 %v5004_v21, %v281_v63  ;;  %v263_v62 = vsel %vm223_vm1, %v5131_v61, 0.0  ;;  %v627_v63 = vld [vmem:[%s7131_s27 + $0x18] sm:$0xff] }
 0x114   :  { %692 = vmatpush.msrb.mxu1 %v627_v63  ;;  %v5179_v63 = vld [vmem:[%s7133_s26] ss:$0 sm:$0xff] }
 0x115   :  { %v313_v4 = vmul.f32 %v5063_v2, %v5063_v2 }
 0x116   :  { %693 = vmatpush.msrb.mxu1 %v626_v1 }
 0x117   :  { %v331_v6 = vsel %vm223_vm1, %v313_v4, 0.0  ;;  %v624_v4 = vld [vmem:[%s7131_s27] sm:$0xff] }
 0x118   :  { %v232_v7 = vpop.xlane.xlu1 %231  ;;  %246 = vadd.xlane.f32.xlu0 %v245_v3  ;;  %332 = vadd.xlane.f32.xlu2 %v331_v6  ;;  %v625_v3 = vld [vmem:[%s7131_s27 + $0x8] sm:$0xff] }
 0x119   :  { %v282_v8 = vmul.f32 %v5049_v54, %v232_v7  ;;  %694 = vmatpush.msrb.mxu1 %v625_v3 }
 0x11b   :  { %v5075_v10 = vsub.f32 %v5013_v26, %v282_v8  ;;  %695 = vmatpush.msrb.mxu1 %v624_v4 }
 0x11d   :  { %v314_v12 = vmul.f32 %v5075_v10, %v5075_v10 }
 0x11f   :  { %v334_v17 = vsel %vm223_vm1, %v314_v12, 0.0 }
 0x120   :  { %335 = vadd.xlane.f32.xlu1 %v334_v17  ;;  %v235_v18 = vpop.xlane.xlu1 %234  ;;  %249 = vadd.xlane.f32.xlu2 %v248_v14 }
 0x121   :  { %v283_v19 = vmul.f32 %v5049_v54, %v235_v18 }
 0x123   :  { %v5087_v22 = vsub.f32 %v5022_v31, %v283_v19 }
 0x125   :  { %v315_v24 = vmul.f32 %v5087_v22, %v5087_v22 }
 0x127   :  { %v337_v28 = vsel %vm223_vm1, %v315_v24, 0.0 }
 0x128   :  { %v238_v29 = vpop.xlane.xlu2 %237  ;;  %252 = vadd.xlane.f32.xlu1 %v251_v23  ;;  %338 = vadd.xlane.f32.xlu0 %v337_v28 }
 0x129   :  { %v284_v30 = vmul.f32 %v5049_v54, %v238_v29 }
 0x12b   :  { %v5099_v33 = vsub.f32 %v5027_v35, %v284_v30 }
 0x12d   :  { %v316_v36 = vmul.f32 %v5099_v33, %v5099_v33 }
 0x12f   :  { %v340_v38 = vsel %vm223_vm1, %v316_v36, 0.0 }
 0x130   :  { %v241_v40 = vpop.xlane.xlu2 %240  ;;  %255 = vadd.xlane.f32.xlu0 %v254_v34  ;;  %341 = vadd.xlane.f32.xlu2 %v340_v38  ;;  %v5159_v38 = vmax.f32 %v202_v25, 0.0 }
 0x131   :  { %v285_v42 = vmul.f32 %v5049_v54, %v241_v40 }
 0x133   :  { %v5111_v45 = vsub.f32 %v5032_v39, %v285_v42 }
 0x135   :  { %v317_v46 = vmul.f32 %v5111_v45, %v5111_v45 }
 0x137   :  { %v343_v49 = vsel %vm223_vm1, %v317_v46, 0.0 }
 0x138   :  { %344 = vadd.xlane.f32.xlu1 %v343_v49  ;;  %v244_v50 = vpop.xlane.xlu1 %243  ;;  %258 = vadd.xlane.f32.xlu2 %v257_v47 }
 0x139   :  { %v286_v51 = vmul.f32 %v5049_v54, %v244_v50 }
 0x13b   :  { %v5123_v55 = vsub.f32 %v5037_v43, %v286_v51  ;;  %v266_v51 = vsel %vm223_vm1, %v5159_v38, 0.0 }
 0x13d   :  { %v318_v57 = vmul.f32 %v5123_v55, %v5123_v55 }
 0x13f   :  { %v346_v60 = vsel %vm223_vm1, %v318_v57, 0.0 }
 0x140   :  { %261 = vadd.xlane.f32.xlu1 %v260_v56  ;;  %347 = vadd.xlane.f32.xlu0 %v346_v60  ;;  %v5172_v56 = vld [vmem:[%s7132_s24] ss:$0 sm:$0xff] }
 0x148   :  { %264 = vadd.xlane.f32.xlu0 %v263_v62 }
 0x183   :  { %v330_v5 = vpop.xlane.xlu0 %329 }
 0x184   :  { %v376_v6 = vmul.f32 %v330_v5, %v5049_v54 }
 0x186   :  { %v392_v7 = vadd.f32 1e-05, %v376_v6  ;;  %v5183_v6 = vmax.f32 %v205_v53, 0.0 }
 0x188   :  { %4496 = vrsqrt.f32 %v392_v7  ;;  %vm414_vm4 = vweird.f32 %v392_v7 }
 0x18b   :  { %v333_v8 = vpop.xlane.xlu2 %332  ;;  %v247_v11 = vpop.xlane.xlu0 %246 }
 0x18c   :  { %v377_v12 = vmul.f32 %v333_v8, %v5049_v54  ;;  %v287_v14 = vmul.f32 %v5049_v54, %v247_v11 }
 0x18e   :  { %v4497_v17 = vpop.eup %4496  ;;  %v393_v18 = vadd.f32 1e-05, %v377_v12  ;;  %v5151_v19 = vsub.f32 %v5060_v0, %v287_v14 }
 0x18f   :  { %v409_v23 = vmul.f32 %v4497_v17, %v392_v7  ;;  %vm415_vm3 = vweird.f32 %v4497_v17 }
 0x190   :  { %4498 = vrsqrt.f32 %v393_v18  ;;  %v319_v24 = vmul.f32 %v5151_v19, %v5151_v19  ;;  %vm416_vm5 = vmor %vm414_vm4, %vm415_vm3  ;;  %vm424_vm8 = vweird.f32 %v393_v18 }
 0x191   :  { %v410_v27 = vmul.f32 %v4497_v17, %v409_v23 }
 0x192   :  { %v349_v28 = vsel %vm223_vm1, %v319_v24, 0.0  ;;  %v270_v24 = vsel %vm269_vm7, %v5183_v6, 0.0 }
 0x193   :  { %v411_v29 = vmul.f32 0.5, %v410_v27  ;;  %v336_v30 = vpop.xlane.xlu1 %335  ;;  %v250_v34 = vpop.xlane.xlu2 %249  ;;  %350 = vadd.xlane.f32.xlu2 %v349_v28 }
 0x194   :  { %v378_v36 = vmul.f32 %v336_v30, %v5049_v54  ;;  %v288_v37 = vmul.f32 %v5049_v54, %v250_v34 }
 0x195   :  { %v412_v40 = vsub.f32 1.5, %v411_v29 }
 0x196   :  { %v4499_v42 = vpop.eup %4498  ;;  %v394_v46 = vadd.f32 1e-05, %v378_v36  ;;  %v5162_v47 = vsub.f32 %v5072_v9, %v288_v37 }
 0x197   :  { %v413_v48 = vmul.f32 %v4497_v17, %v412_v40  ;;  %v419_v49 = vmul.f32 %v4499_v42, %v393_v18  ;;  %vm425_vm6 = vweird.f32 %v4499_v42 }
 0x198   :  { %4500 = vrsqrt.f32 %v394_v46  ;;  %v320_v50 = vmul.f32 %v5162_v47, %v5162_v47  ;;  %vm426_vm9 = vmor %vm424_vm8, %vm425_vm6  ;;  %vm434_vm11 = vweird.f32 %v394_v46 }
 0x199   :  { %v417_v57 = vsel %vm416_vm5, %v4497_v17, %v413_v48  ;;  %v420_v59 = vmul.f32 %v4499_v42, %v419_v49 }
 0x19a   :  { %v568_v60 = vmul.f32 %v417_v57, %v5053_v58  ;;  %v352_v62 = vsel %vm223_vm1, %v320_v50, 0.0 }
 0x19b   :  { %v421_v1 = vmul.f32 0.5, %v420_v59  ;;  %v253_v3 = vpop.xlane.xlu1 %252  ;;  %353 = vadd.xlane.f32.xlu1 %v352_v62  ;;  %267 = vadd.xlane.f32.xlu2 %v266_v51  ;;  %v339_v13 = vpop.xlane.xlu0 %338 }
 0x19c   :  { %v289_v4 = vmul.f32 %v5049_v54, %v253_v3  ;;  %v379_v5 = vmul.f32 %v339_v13, %v5049_v54  ;;  %v588_v58 = vmul.f32 %v5172_v56, %v568_v60 }
 0x19d   :  { %v422_v7 = vsub.f32 1.5, %v421_v1 }
 0x19e   :  { %v4501_v8 = vpop.eup %4500  ;;  %v5187_v11 = vsub.f32 %v5084_v20, %v289_v4  ;;  %v395_v12 = vadd.f32 1e-05, %v379_v5  ;;  %v608_v14 = vadd.f32 %v5179_v63, %v588_v58 }
 0x19f   :  { %v423_v15 = vmul.f32 %v4499_v42, %v422_v7  ;;  %v429_v17 = vmul.f32 %v4501_v8, %v394_v46  ;;  %vm435_vm10 = vweird.f32 %v4501_v8 }
 0x1a0   :  { %4502 = vrsqrt.f32 %v395_v12  ;;  %4075 = vmatmul.msk.f32.vlgmr.msrb.gmra.mxu1 %vm223_vm1, %v608_v14  ;;  %v321_v23 = vmul.f32 %v5187_v11, %v5187_v11  ;;  %vm436_vm12 = vmor %vm434_vm11, %vm435_vm10  ;;  %vm444_vm14 = vweird.f32 %v395_v12 }
 0x1a1   :  { %v427_v25 = vsel %vm426_vm9, %v4499_v42, %v423_v15  ;;  %v430_v27 = vmul.f32 %v4501_v8, %v429_v17 }
 0x1a2   :  { %v355_v28 = vsel %vm223_vm1, %v321_v23, 0.0  ;;  %v569_v29 = vmul.f32 %v427_v25, %v5063_v2 }
 0x1a3   :  { %v431_v30 = vmul.f32 0.5, %v430_v27  ;;  %356 = vadd.xlane.f32.xlu0 %v355_v28  ;;  %271 = vadd.xlane.f32.xlu1 %v270_v24  ;;  %v342_v18 = vpop.xlane.xlu2 %341  ;;  %v256_v34 = vpop.xlane.xlu0 %255 }
 0x1a4   :  { %v380_v36 = vmul.f32 %v342_v18, %v5049_v54  ;;  %v290_v37 = vmul.f32 %v5049_v54, %v256_v34  ;;  %v589_v40 = vmul.f32 %v5172_v56, %v569_v29 }
 0x1a5   :  { %v432_v41 = vsub.f32 1.5, %v431_v30 }
 0x1a6   :  { %v4503_v48 = vpop.eup %4502  ;;  %v396_v42 = vadd.f32 1e-05, %v380_v36  ;;  %v5201_v49 = vsub.f32 %v5096_v32, %v290_v37  ;;  %v609_v2 = vadd.f32 %v5179_v63, %v589_v40 }
 0x1a7   :  { %v433_v50 = vmul.f32 %v4501_v8, %v432_v41  ;;  %v439_v51 = vmul.f32 %v4503_v48, %v395_v12  ;;  %vm445_vm13 = vweird.f32 %v4503_v48 }
 0x1a8   :  { %4504 = vrsqrt.f32 %v396_v42  ;;  %4076 = vmatmul.msk.f32.gmra.mxu1 %vm223_vm1, %v609_v2  ;;  %v322_v53 = vmul.f32 %v5201_v49, %v5201_v49  ;;  %vm446_vm15 = vmor %vm444_vm14, %vm445_vm13  ;;  %vm454_vm2 = vweird.f32 %v396_v42 }
 0x1a9   :  { %v437_v57 = vsel %vm436_vm12, %v4501_v8, %v433_v50  ;;  %v440_v59 = vmul.f32 %v4503_v48, %v439_v51 }
 0x1aa   :  { %v358_v60 = vsel %vm223_vm1, %v322_v53, 0.0  ;;  %v570_v62 = vmul.f32 %v437_v57, %v5075_v10 }
 0x1ab   :  { %v441_v1 = vmul.f32 0.5, %v440_v59  ;;  %v345_v3 = vpop.xlane.xlu1 %344  ;;  %v259_v13 = vpop.xlane.xlu2 %258  ;;  %359 = vadd.xlane.f32.xlu2 %v358_v60 }
 0x1ac   :  { %v381_v46 = vmul.f32 %v345_v3, %v5049_v54  ;;  %v291_v4 = vmul.f32 %v5049_v54, %v259_v13  ;;  %v590_v5 = vmul.f32 %v5172_v56, %v570_v62 }
 0x1ad   :  { %v442_v58 = vsub.f32 1.5, %v441_v1 }
 0x1ae   :  { %v4505_v7 = vpop.eup %4504  ;;  %v397_v14 = vadd.f32 1e-05, %v381_v46  ;;  %v5213_v8 = vsub.f32 %v5108_v44, %v291_v4  ;;  %v610_v15 = vadd.f32 %v5179_v63, %v590_v5 }
 0x1af   :  { %v443_v10 = vmul.f32 %v4503_v48, %v442_v58  ;;  %v449_v17 = vmul.f32 %v4505_v7, %v396_v42  ;;  %vm455_vm0 = vweird.f32 %v4505_v7 }
 0x1b0   :  { %4506 = vrsqrt.f32 %v397_v14  ;;  %4077 = vmatmul.msk.f32.gmra.mxu1 %vm223_vm1, %v610_v15  ;;  %v323_v23 = vmul.f32 %v5213_v8, %v5213_v8  ;;  %vm456_vm3 = vmor %vm454_vm2, %vm455_vm0  ;;  %vm464_vm5 = vweird.f32 %v397_v14 }
 0x1b1   :  { %v447_v24 = vsel %vm446_vm15, %v4503_v48, %v443_v10  ;;  %v450_v25 = vmul.f32 %v4505_v7, %v449_v17 }
 0x1b2   :  { %v361_v27 = vsel %vm223_vm1, %v323_v23, 0.0  ;;  %v571_v28 = vmul.f32 %v447_v24, %v5087_v22 }
 0x1b3   :  { %v451_v29 = vmul.f32 0.5, %v450_v25  ;;  %v262_v30 = vpop.xlane.xlu1 %261  ;;  %362 = vadd.xlane.f32.xlu0 %v361_v27  ;;  %v348_v18 = vpop.xlane.xlu0 %347 }
 0x1b4   :  { %v292_v12 = vmul.f32 %v5049_v54, %v262_v30  ;;  %v382_v34 = vmul.f32 %v348_v18, %v5049_v54  ;;  %v591_v36 = vmul.f32 %v5172_v56, %v571_v28 }
 0x1b5   :  { %v452_v37 = vsub.f32 1.5, %v451_v29 }
 0x1b6   :  { %v4507_v40 = vpop.eup %4506  ;;  %v5225_v41 = vsub.f32 %v5120_v52, %v292_v12  ;;  %v398_v48 = vadd.f32 1e-05, %v382_v34  ;;  %v611_v2 = vadd.f32 %v5179_v63, %v591_v36 }
 0x1b7   :  { %v453_v22 = vmul.f32 %v4505_v7, %v452_v37  ;;  %v459_v50 = vmul.f32 %v4507_v40, %v397_v14  ;;  %vm465_vm4 = vweird.f32 %v4507_v40 }
 0x1b8   :  { %4508 = vrsqrt.f32 %v398_v48  ;;  %4078 = vmatmul.msk.f32.gmra.mxu1 %vm223_vm1, %v611_v2  ;;  %v324_v51 = vmul.f32 %v5225_v41, %v5225_v41  ;;  %vm466_vm6 = vmor %vm464_vm5, %vm465_vm4  ;;  %vm474_vm9 = vweird.f32 %v398_v48 }
 0x1b9   :  { %v457_v53 = vsel %vm456_vm3, %v4505_v7, %v453_v22  ;;  %v460_v57 = vmul.f32 %v4507_v40, %v459_v50 }
 0x1ba   :  { %v364_v59 = vsel %vm223_vm1, %v324_v51, 0.0  ;;  %v572_v60 = vmul.f32 %v457_v53, %v5099_v33 }
 0x1bb   :  { %v461_v62 = vmul.f32 0.5, %v460_v57  ;;  %365 = vadd.xlane.f32.xlu1 %v364_v59  ;;  %v265_v1 = vpop.xlane.xlu0 %264 }
 0x1bc   :  { %v293_v3 = vmul.f32 %v5049_v54, %v265_v1  ;;  %v592_v42 = vmul.f32 %v5172_v56, %v572_v60 }
 0x1bd   :  { %v462_v13 = vsub.f32 1.5, %v461_v62 }
 0x1be   :  { %v4509_v46 = vpop.eup %4508  ;;  %v5236_v4 = vsub.f32 %v5131_v61, %v293_v3  ;;  %v612_v5 = vadd.f32 %v5179_v63, %v592_v42 }
 0x1bf   :  { %v463_v58 = vmul.f32 %v4507_v40, %v462_v13  ;;  %v469_v7 = vmul.f32 %v4509_v46, %v398_v48  ;;  %vm475_vm8 = vweird.f32 %v4509_v46 }
 0x1c0   :  { %4079 = vmatmul.msk.f32.gmra.mxu1 %vm223_vm1, %v612_v5  ;;  %v325_v33 = vmul.f32 %v5236_v4, %v5236_v4  ;;  %vm476_vm10 = vmor %vm474_vm9, %vm475_vm8 }
 0x1c1   :  { %v467_v15 = vsel %vm466_vm6, %v4507_v40, %v463_v58  ;;  %v470_v10 = vmul.f32 %v4509_v46, %v469_v7 }
 0x1c2   :  { %v367_v17 = vsel %vm223_vm1, %v325_v33, 0.0  ;;  %v573_v23 = vmul.f32 %v467_v15, %v5111_v45 }
 0x1c3   :  { %v471_v24 = vmul.f32 0.5, %v470_v10  ;;  %368 = vadd.xlane.f32.xlu2 %v367_v17 }
 0x1c4   :  { %v593_v25 = vmul.f32 %v5172_v56, %v573_v23 }
 0x1c5   :  { %v472_v27 = vsub.f32 1.5, %v471_v24 }
 0x1c6   :  { %v613_v14 = vadd.f32 %v5179_v63, %v593_v25 }
 0x1c7   :  { %v473_v28 = vmul.f32 %v4509_v46, %v472_v27 }
 0x1c8   :  { %4080 = vmatmul.msk.f32.gmra.mxu1 %vm223_vm1, %v613_v14 }
 0x1c9   :  { %v477_v29 = vsel %vm476_vm10, %v4509_v46, %v473_v28 }
 0x1ca   :  { %v574_v30 = vmul.f32 %v477_v29, %v5123_v55 }
 0x1cc   :  { %v594_v18 = vmul.f32 %v5172_v56, %v574_v30 }
 0x1ce   :  { %v614_v45 = vadd.f32 %v5179_v63, %v594_v18 }
 0x1d0   :  { %4081 = vmatmul.msk.f32.gmra.mxu1 %vm223_vm1, %v614_v45 }
 0x1db   :  { %1435 = vrot.lane.b32.xlu2 %v4995_v16, %s4822_s0 }
 0x1e3   :  { %1441 = vrot.lane.b32.xlu2 %v5022_v31, %s4822_s0 }
 0x1eb   :  { %1445 = vrot.lane.b32.xlu2 %v5032_v39, %s4822_s0 }
 0x1f3   :  { %1451 = vrot.lane.b32.xlu2 %v5072_v9, %s4822_s0 }
 0x1fb   :  { %1457 = vrot.lane.b32.xlu2 %v5108_v44, %s4822_s0 }
 0x203   :  { %1463 = vrot.lane.b32.xlu2 %v5159_v38, %s4822_s0 }
 0x206   :  { %v351_v55 = vpop.xlane.xlu2 %350 }
 0x207   :  { %v383_v12 = vmul.f32 %v351_v55, %v5049_v54 }
 0x209   :  { %v399_v34 = vadd.f32 1e-05, %v383_v12 }
 0x20b   :  { %4510 = vrsqrt.f32 %v399_v34  ;;  %vm484_vm12 = vweird.f32 %v399_v34 }
 0x20e   :  { %v354_v36 = vpop.xlane.xlu1 %353  ;;  %v268_v37 = vpop.xlane.xlu2 %267 }
 0x20f   :  { %v384_v40 = vmul.f32 %v354_v36, %v5049_v54  ;;  %v294_v48 = vmul.f32 %v5049_v54, %v268_v37 }
 0x211   :  { %v4511_v2 = vpop.eup %4510  ;;  %v400_v22 = vadd.f32 1e-05, %v384_v40  ;;  %v5267_v50 = vsub.f32 %v5159_v38, %v294_v48 }
 0x212   :  { %v479_v51 = vmul.f32 %v4511_v2, %v399_v34  ;;  %vm485_vm11 = vweird.f32 %v4511_v2 }
 0x213   :  { %4512 = vrsqrt.f32 %v400_v22  ;;  %v326_v53 = vmul.f32 %v5267_v50, %v5267_v50  ;;  %vm486_vm13 = vmor %vm484_vm12, %vm485_vm11  ;;  %vm494_vm15 = vweird.f32 %v400_v22 }
 0x214   :  { %v480_v57 = vmul.f32 %v4511_v2, %v479_v51 }
 0x215   :  { %v370_v59 = vsel %vm223_vm1, %v326_v53, 0.0 }
 0x216   :  { %v481_v60 = vmul.f32 0.5, %v480_v57  ;;  %v272_v62 = vpop.xlane.xlu1 %271  ;;  %371 = vadd.xlane.f32.xlu0 %v370_v59  ;;  %v357_v1 = vpop.xlane.xlu0 %356 }
 0x217   :  { %v295_v3 = vmul.f32 %v5049_v54, %v272_v62  ;;  %v385_v42 = vmul.f32 %v357_v1, %v5049_v54 }
 0x218   :  { %v482_v13 = vsub.f32 1.5, %v481_v60 }
 0x219   :  { %v4513_v46 = vpop.eup %4512  ;;  %v5275_v5 = vsub.f32 %v5183_v6, %v295_v3  ;;  %v401_v58 = vadd.f32 1e-05, %v385_v42 }
 0x21a   :  { %v483_v7 = vmul.f32 %v4511_v2, %v482_v13  ;;  %v489_v33 = vmul.f32 %v4513_v46, %v400_v22  ;;  %vm495_vm14 = vweird.f32 %v4513_v46 }
 0x21b   :  { %4514 = vrsqrt.f32 %v401_v58  ;;  %v327_v15 = vmul.f32 %v5275_v5, %v5275_v5  ;;  %vm496_vm0 = vmor %vm494_vm15, %vm495_vm14  ;;  %vm504_vm2 = vweird.f32 %v401_v58 }
 0x21c   :  { %v487_v10 = vsel %vm486_vm13, %v4511_v2, %v483_v7  ;;  %v490_v17 = vmul.f32 %v4513_v46, %v489_v33 }
 0x21d   :  { %v373_v23 = vsel %vm269_vm7, %v327_v15, 0.0  ;;  %v575_v24 = vmul.f32 %v487_v10, %v5151_v19 }
 0x21e   :  { %v491_v25 = vmul.f32 0.5, %v490_v17  ;;  %374 = vadd.xlane.f32.xlu1 %v373_v23  ;;  %v360_v27 = vpop.xlane.xlu2 %359 }
 0x21f   :  { %v386_v14 = vmul.f32 %v360_v27, %v5049_v54  ;;  %v595_v28 = vmul.f32 %v5172_v56, %v575_v24 }
 0x220   :  { %v492_v29 = vsub.f32 1.5, %v491_v25 }
 0x221   :  { %v4515_v30 = vpop.eup %4514  ;;  %v402_v18 = vadd.f32 1e-05, %v386_v14  ;;  %v615_v45 = vadd.f32 %v5179_v63, %v595_v28 }
 0x222   :  { %v493_v55 = vmul.f32 %v4513_v46, %v492_v29  ;;  %v499_v12 = vmul.f32 %v4515_v30, %v401_v58  ;;  %vm505_vm7 = vweird.f32 %v4515_v30 }
 0x223   :  { %4516 = vrsqrt.f32 %v402_v18  ;;  %4082 = vmatmul.msk.f32.gmra.mxu1 %vm223_vm1, %v615_v45  ;;  %vm506_vm3 = vmor %vm504_vm2, %vm505_vm7  ;;  %vm514_vm5 = vweird.f32 %v402_v18 }
 0x224   :  { %v497_v19 = vsel %vm496_vm0, %v4513_v46, %v493_v55  ;;  %v500_v34 = vmul.f32 %v4515_v30, %v499_v12 }
 0x225   :  { %v576_v36 = vmul.f32 %v497_v19, %v5162_v47 }
 0x226   :  { %v501_v37 = vmul.f32 0.5, %v500_v34  ;;  %v363_v40 = vpop.xlane.xlu0 %362 }
 0x227   :  { %v387_v48 = vmul.f32 %v363_v40, %v5049_v54  ;;  %v596_v2 = vmul.f32 %v5172_v56, %v576_v36 }
 0x228   :  { %v502_v51 = vsub.f32 1.5, %v501_v37 }
 0x229   :  { %v4517_v53 = vpop.eup %4516  ;;  %v403_v57 = vadd.f32 1e-05, %v387_v48  ;;  %v616_v22 = vadd.f32 %v5179_v63, %v596_v2 }
 0x22a   :  { %v503_v59 = vmul.f32 %v4515_v30, %v502_v51  ;;  %v509_v60 = vmul.f32 %v4517_v53, %v402_v18  ;;  %1437 = vrot.lane.b32.xlu0 %v5004_v21, %s4822_s0  ;;  %vm515_vm4 = vweird.f32 %v4517_v53 }
 0x22b   :  { %4518 = vrsqrt.f32 %v403_v57  ;;  %4083 = vmatmul.msk.f32.gmra.mxu1 %vm223_vm1, %v616_v22  ;;  %vm516_vm6 = vmor %vm514_vm5, %vm515_vm4  ;;  %vm524_vm9 = vweird.f32 %v403_v57 }
 0x22c   :  { %v507_v47 = vsel %vm506_vm3, %v4515_v30, %v503_v59  ;;  %v510_v62 = vmul.f32 %v4517_v53, %v509_v60 }
 0x22d   :  { %v577_v1 = vmul.f32 %v507_v47, %v5187_v11 }
 0x22e   :  { %v511_v3 = vmul.f32 0.5, %v510_v62  ;;  %v366_v42 = vpop.xlane.xlu1 %365 }
 0x22f   :  { %v388_v13 = vmul.f32 %v366_v42, %v5049_v54  ;;  %v597_v46 = vmul.f32 %v5172_v56, %v577_v1 }
 0x230   :  { %v512_v7 = vsub.f32 1.5, %v511_v3 }
 0x231   :  { %v4519_v58 = vpop.eup %4518  ;;  %v404_v33 = vadd.f32 1e-05, %v388_v13  ;;  %v617_v15 = vadd.f32 %v5179_v63, %v597_v46 }
 0x232   :  { %v513_v10 = vmul.f32 %v4517_v53, %v512_v7  ;;  %v519_v17 = vmul.f32 %v4519_v58, %v403_v57  ;;  %1443 = vrot.lane.b32.xlu0 %v5027_v35, %s4822_s0  ;;  %vm525_vm8 = vweird.f32 %v4519_v58 }
 0x233   :  { %4520 = vrsqrt.f32 %v404_v33  ;;  %4084 = vmatmul.msk.f32.gmra.mxu1 %vm223_vm1, %v617_v15  ;;  %vm526_vm10 = vmor %vm524_vm9, %vm525_vm8  ;;  %vm534_vm12 = vweird.f32 %v404_v33  ;;  %vm778_vm8 = vcmask 1045504   ;;  %vm753_vm9 = vcmask 1031168  }
 0x234   :  { %v517_v11 = vsel %vm516_vm6, %v4517_v53, %v513_v10  ;;  %v520_v23 = vmul.f32 %v4519_v58, %v519_v17 }
 0x235   :  { %v578_v24 = vmul.f32 %v517_v11, %v5201_v49 }
 0x236   :  { %v521_v25 = vmul.f32 0.5, %v520_v23  ;;  %v369_v27 = vpop.xlane.xlu2 %368 }
 0x237   :  { %v389_v14 = vmul.f32 %v369_v27, %v5049_v54  ;;  %1439 = vrot.lane.b32.xlu1 %v5013_v26, %s4822_s0  ;;  %v598_v28 = vmul.f32 %v5172_v56, %v578_v24  ;;  %v5334_v24 = vpop.f32.mrf.mxu1 }
 0x238   :  { %v522_v29 = vsub.f32 1.5, %v521_v25 }
 0x239   :  { %v4521_v30 = vpop.eup %4520  ;;  %v405_v18 = vadd.f32 1e-05, %v389_v14  ;;  %v618_v45 = vadd.f32 %v5179_v63, %v598_v28 }
 0x23a   :  { %v523_v55 = vmul.f32 %v4519_v58, %v522_v29  ;;  %v529_v12 = vmul.f32 %v4521_v30, %v404_v33  ;;  %1449 = vrot.lane.b32.xlu0 %v5060_v0, %s4822_s0  ;;  %vm535_vm11 = vweird.f32 %v4521_v30 }
 0x23b   :  { %4522 = vrsqrt.f32 %v405_v18  ;;  %4085 = vmatmul.msk.f32.gmra.mxu1 %vm223_vm1, %v618_v45  ;;  %vm536_vm13 = vmor %vm534_vm12, %vm535_vm11  ;;  %vm544_vm15 = vweird.f32 %v405_v18 }
 0x23c   :  { %v527_v49 = vsel %vm526_vm10, %v4519_v58, %v523_v55  ;;  %v530_v19 = vmul.f32 %v4521_v30, %v529_v12  ;;  %vm912_vm10 = vcmask 523264  }
 0x23d   :  { %v579_v34 = vmul.f32 %v527_v49, %v5213_v8 }
 0x23e   :  { %v531_v36 = vmul.f32 0.5, %v530_v19 }
 0x23f   :  { %1447 = vrot.lane.b32.xlu1 %v5037_v43, %s4822_s0  ;;  %v599_v37 = vmul.f32 %v5172_v56, %v579_v34  ;;  %v700_v49 = vpop.f32.mrf.mxu1 }
 0x240   :  { %v532_v40 = vsub.f32 1.5, %v531_v36 }
 0x241   :  { %v4523_v48 = vpop.eup %4522  ;;  %v619_v2 = vadd.f32 %v5179_v63, %v599_v37 }
 0x242   :  { %v533_v51 = vmul.f32 %v4521_v30, %v532_v40  ;;  %v539_v53 = vmul.f32 %v4523_v48, %v405_v18  ;;  %1455 = vrot.lane.b32.xlu0 %v5096_v32, %s4822_s0  ;;  %vm545_vm14 = vweird.f32 %v4523_v48 }
 0x243   :  { %4086 = vmatmul.msk.f32.gmra.mxu1 %vm223_vm1, %v619_v2  ;;  %vm546_vm0 = vmor %vm544_vm15, %vm545_vm14 }
 0x244   :  { %v537_v8 = vsel %vm536_vm13, %v4521_v30, %v533_v51  ;;  %v540_v57 = vmul.f32 %v4523_v48, %v539_v53 }
 0x245   :  { %v580_v22 = vmul.f32 %v537_v8, %v5225_v41 }
 0x246   :  { %v541_v59 = vmul.f32 0.5, %v540_v57 }
 0x247   :  { %1453 = vrot.lane.b32.xlu1 %v5084_v20, %s4822_s0  ;;  %v600_v60 = vmul.f32 %v5172_v56, %v580_v22  ;;  %v703_v40 = vpop.f32.mrf.mxu1 }
 0x248   :  { %v542_v47 = vsub.f32 1.5, %v541_v59 }
 0x249   :  { %v620_v62 = vadd.f32 %v5179_v63, %v600_v60 }
 0x24a   :  { %v543_v1 = vmul.f32 %v4523_v48, %v542_v47  ;;  %1461 = vrot.lane.b32.xlu0 %v5131_v61, %s4822_s0 }
 0x24b   :  { %4087 = vmatmul.msk.f32.gmra.mxu1 %vm223_vm1, %v620_v62 }
 0x24c   :  { %v547_v3 = vsel %vm546_vm0, %v4523_v48, %v543_v1 }
 0x24d   :  { %v581_v41 = vmul.f32 %v547_v3, %v5236_v4 }
 0x24f   :  { %1459 = vrot.lane.b32.xlu1 %v5120_v52, %s4822_s0  ;;  %v601_v42 = vmul.f32 %v5172_v56, %v581_v41  ;;  %v706_v48 = vpop.f32.mrf.mxu1 }
 0x251   :  { %v621_v13 = vadd.f32 %v5179_v63, %v601_v42 }
 0x253   :  { %4088 = vmatmul.msk.f32.gmra.mxu1 %vm223_vm1, %v621_v13 }
 0x257   :  { %1465 = vrot.lane.b32.xlu1 %v5183_v6, %s4822_s0  ;;  %v709_v2 = vpop.f32.mrf.mxu1 }
 0x25f   :  { %v712_v51 = vpop.f32.mrf.mxu1 }
 0x267   :  { %v715_v53 = vpop.f32.mrf.mxu1 }
 0x289   :  { %v372_v46 = vpop.xlane.xlu0 %371 }
 0x28a   :  { %v390_v7 = vmul.f32 %v372_v46, %v5049_v54 }
 0x28c   :  { %v406_v58 = vadd.f32 1e-05, %v390_v7 }
 0x28e   :  { %4524 = vrsqrt.f32 %v406_v58  ;;  %vm554_vm2 = vweird.f32 %v406_v58 }
 0x291   :  { %v375_v33 = vpop.xlane.xlu1 %374 }
 0x292   :  { %v391_v4 = vmul.f32 %v375_v33, %v5049_v54 }
 0x294   :  { %v4525_v15 = vpop.eup %4524  ;;  %v407_v10 = vadd.f32 1e-05, %v391_v4 }
 0x295   :  { %v549_v17 = vmul.f32 %v4525_v15, %v406_v58  ;;  %vm555_vm7 = vweird.f32 %v4525_v15 }
 0x296   :  { %4526 = vrsqrt.f32 %v407_v10  ;;  %vm556_vm3 = vmor %vm554_vm2, %vm555_vm7  ;;  %vm564_vm5 = vweird.f32 %v407_v10 }
 0x297   :  { %v550_v11 = vmul.f32 %v4525_v15, %v549_v17 }
 0x299   :  { %v551_v23 = vmul.f32 0.5, %v550_v11 }
 0x29b   :  { %v552_v25 = vsub.f32 1.5, %v551_v23 }
 0x29c   :  { %v4527_v27 = vpop.eup %4526 }
 0x29d   :  { %v553_v14 = vmul.f32 %v4525_v15, %v552_v25  ;;  %v559_v28 = vmul.f32 %v4527_v27, %v407_v10  ;;  %vm565_vm4 = vweird.f32 %v4527_v27 }
 0x29e   :  { %vm566_vm6 = vmor %vm564_vm5, %vm565_vm4 }
 0x29f   :  { %v557_v29 = vsel %vm556_vm3, %v4525_v15, %v553_v14  ;;  %v560_v30 = vmul.f32 %v4527_v27, %v559_v28  ;;  %v746_v14 = vld [vmem:[%s7102_s11 + $0x8] sm:$0xff]  ;;  %v747_v28 = vld [vmem:[%s7102_s11 + $0x10] sm:$0xff] }
 0x2a0   :  { %v582_v18 = vmul.f32 %v557_v29, %v5267_v50  ;;  %v718_v8 = vpop.f32.mrf.mxu1  ;;  %v826_v29 = vld [vmem:[%s7103_s7 + $0x18] sm:$0xff] }
 0x2a1   :  { %v561_v54 = vmul.f32 0.5, %v560_v30  ;;  %v825_v30 = vld [vmem:[%s7103_s7 + $0x10] sm:$0xff]  ;;  %867 = vmatpush.msra.mxu3 %v826_v29 }
 0x2a2   :  { %v602_v45 = vmul.f32 %v5172_v56, %v582_v18  ;;  %v824_v18 = vld [vmem:[%s7103_s7 + $0x8] sm:$0xff] }
 0x2a3   :  { %v562_v55 = vsub.f32 1.5, %v561_v54  ;;  %868 = vmatpush.msra.mxu3 %v825_v30  ;;  %v749_v54 = vld [vmem:[%s7102_s11 + $0x20] sm:$0xff] }
 0x2a4   :  { %v622_v12 = vadd.f32 %v5179_v63, %v602_v45  ;;  %v750_v45 = vld [vmem:[%s7102_s11 + $0x28] sm:$0xff] }
 0x2a5   :  { %v563_v19 = vmul.f32 %v4527_v27, %v562_v55  ;;  %869 = vmatpush.msra.mxu3 %v824_v18  ;;  %v751_v55 = vld [vmem:[%s7102_s11 + $0x30] sm:$0xff] }
 0x2a6   :  { %4089 = vmatmul.msk.f32.gmra.mxu1 %vm223_vm1, %v622_v12  ;;  %v752_v12 = vld [vmem:[%s7102_s11 + $0x38] sm:$0xff] }
 0x2a7   :  { %v567_v34 = vsel %vm566_vm6, %v4527_v27, %v563_v19  ;;  %v745_v27 = vld [vmem:[%s7102_s11] sm:$0xff] }
 0x2a8   :  { %v583_v36 = vmul.f32 %v567_v34, %v5275_v5  ;;  %v721_v57 = vpop.f32.mrf.mxu1 }
 0x2aa   :  { %v603_v37 = vmul.f32 %v5172_v56, %v583_v36  ;;  %v4480_v56 = vld [vmem:[%s7134_s3] ss:$0 sm:$0xff] }
 0x2ab   :  { %v722_v58 = vadd.f32 %v4480_v56, %v721_v57  ;;  %v719_v33 = vadd.f32 %v4480_v56, %v718_v8  ;;  %v716_v4 = vadd.f32 %v4480_v56, %v715_v53  ;;  %v713_v15 = vadd.f32 %v4480_v56, %v712_v51  ;;  %v907_v51 = vld [vmem:[%s7105_s9 + $0x18] sm:$0xff] }
 0x2ac   :  { %v623_v50 = vadd.f32 %v5179_v63, %v603_v37  ;;  %v710_v10 = vadd.f32 %v4480_v56, %v709_v2  ;;  %v707_v17 = vadd.f32 %v4480_v56, %v706_v48  ;;  %v704_v11 = vadd.f32 %v4480_v56, %v703_v40  ;;  %v910_v40 = vld [vmem:[%s7105_s9 + $0x30] sm:$0xff]  ;;  %v909_v48 = vld [vmem:[%s7105_s9 + $0x28] sm:$0xff]  ;;  %v908_v2 = vld [vmem:[%s7105_s9 + $0x20] sm:$0xff] }
 0x2ad   :  { %v701_v23 = vadd.f32 %v4480_v56, %v700_v49  ;;  %v698_v25 = vadd.f32 %v4480_v56, %v5334_v24  ;;  %v748_v24 = vld [vmem:[%s7102_s11 + $0x18] sm:$0xff]  ;;  %v823_v49 = vld [vmem:[%s7103_s7] sm:$0xff] }
 0x2ae   :  { %4090 = vmatmul.msk.f32.gmra.mxu1 %vm223_vm1, %v623_v50  ;;  %870 = vmatpush.msra.mxu3 %v823_v49  ;;  %v911_v50 = vld [vmem:[%s7105_s9 + $0x38] sm:$0xff] }
 0x2b0   :  { %v724_v22 = vpop.f32.mrf.mxu1  ;;  %945 = vmatpush.msrb.mxu3 %v911_v50 }
 0x2b1   :  { %v725_v7 = vadd.f32 %v4480_v56, %v724_v22 }
 0x2b2   :  { %946 = vmatpush.msrb.mxu3 %v910_v40  ;;  %v4482_v40 = vld [vmem:[%s7106_s10] ss:$0 sm:$0xff] }
 0x2b4   :  { %947 = vmatpush.msrb.mxu3 %v909_v48 }
 0x2b6   :  { %948 = vmatpush.msrb.mxu3 %v908_v2 }
 0x2b8   :  { %v727_v59 = vpop.f32.mrf.mxu1  ;;  %949 = vmatpush.msrb.mxu3 %v907_v51 }
 0x2b9   :  { %v728_v46 = vadd.f32 %v4480_v56, %v727_v59  ;;  %v906_v59 = vld [vmem:[%s7105_s9 + $0x10] sm:$0xff] }
 0x2ba   :  { %950 = vmatpush.msrb.mxu3 %v906_v59 }
 0x2c0   :  { %v730_v60 = vpop.f32.mrf.mxu1 }
 0x2c1   :  { %v731_v13 = vadd.f32 %v4480_v56, %v730_v60  ;;  %v905_v60 = vld [vmem:[%s7105_s9 + $0x8] sm:$0xff] }
 0x2c2   :  { %951 = vmatpush.msrb.mxu3 %v905_v60 }
 0x2c8   :  { %v733_v47 = vpop.f32.mrf.mxu1 }
 0x2c9   :  { %v734_v42 = vadd.f32 %v4480_v56, %v733_v47  ;;  %v904_v47 = vld [vmem:[%s7105_s9] sm:$0xff] }
 0x2ca   :  { %952 = vmatpush.msrb.mxu3 %v904_v47 }
 0x2d0   :  { %v736_v62 = vpop.f32.mrf.mxu1 }
 0x2d1   :  { %v737_v41 = vadd.f32 %v4480_v56, %v736_v62  ;;  %v4481_v62 = vld [vmem:[%s7104_s8] ss:$0 sm:$0xff] }
 0x323   :  { %v739_v1 = vpop.f32.mrf.mxu1 }
 0x324   :  { %v740_v3 = vadd.f32 %v4480_v56, %v739_v1 }
 0x32b   :  { %v742_v63 = vpop.f32.mrf.mxu1 }
 0x32c   :  { %v743_v5 = vadd.f32 %v4480_v56, %v742_v63 }
 0x32e   :  { %4091 = vmatpush.msk.msra.mxu2 %vm778_vm8, %v743_v5 }
 0x330   :  { %783 = vmatpush.msra.mxu2 %v740_v3 }
 0x332   :  { %784 = vmatpush.msra.mxu2 %v737_v41 }
 0x334   :  { %785 = vmatpush.msra.mxu2 %v734_v42 }
 0x336   :  { %786 = vmatpush.msra.mxu2 %v731_v13 }
 0x338   :  { %787 = vmatpush.msra.mxu2 %v728_v46 }
 0x33a   :  { %788 = vmatpush.msra.mxu2 %v725_v7 }
 0x33c   :  { %789 = vmatpush.msra.mxu2 %v722_v58 }
 0x33e   :  { %790 = vmatpush.msra.mxu2 %v719_v33 }
 0x340   :  { %791 = vmatpush.msra.mxu2 %v716_v4 }
 0x342   :  { %792 = vmatpush.msra.mxu2 %v713_v15 }
 0x344   :  { %793 = vmatpush.msra.mxu2 %v710_v10 }
 0x346   :  { %794 = vmatpush.msra.mxu2 %v707_v17 }
 0x348   :  { %795 = vmatpush.msra.mxu2 %v704_v11 }
 0x34a   :  { %796 = vmatpush.msra.mxu2 %v701_v23 }
 0x34c   :  { %797 = vmatpush.msra.mxu2 %v698_v25 }
 0x34d   :  { %4092 = vmatmul.msk.f32.vlgmr.msra.gmra.mxu2 %vm753_vm9, %v745_v27 }
 0x355   :  { %4093 = vmatmul.msk.f32.gmra.mxu2 %vm753_vm9, %v746_v14 }
 0x35d   :  { %4094 = vmatmul.msk.f32.gmra.mxu2 %vm753_vm9, %v747_v28 }
 0x365   :  { %4095 = vmatmul.msk.f32.gmra.mxu2 %vm753_vm9, %v748_v24 }
 0x36d   :  { %4096 = vmatmul.msk.f32.gmra.mxu2 %vm753_vm9, %v749_v54 }
 0x375   :  { %4097 = vmatmul.msk.f32.gmra.mxu2 %vm753_vm9, %v750_v45 }
 0x37d   :  { %4098 = vmatmul.msk.f32.gmra.mxu2 %vm753_vm9, %v751_v55 }
 0x385   :  { %4099 = vmatmul.msk.f32.gmra.mxu2 %vm753_vm9, %v752_v12 }
 0x3d0   :  { %v5392_v19 = vpop.f32.mrf.mxu2 }
 0x3d1   :  { %4100 = vmatmul.msk.f32.vlgmr.msra.gmra.mxu3 %vm223_vm1, %v5392_v19 }
 0x3d8   :  { %v5396_v34 = vpop.f32.mrf.mxu2 }
 0x3d9   :  { %4101 = vmatmul.msk.f32.gmra.mxu3 %vm223_vm1, %v5396_v34 }
 0x3e0   :  { %v5400_v36 = vpop.f32.mrf.mxu2 }
 0x3e1   :  { %4102 = vmatmul.msk.f32.gmra.mxu3 %vm223_vm1, %v5400_v36 }
 0x3e8   :  { %v5404_v37 = vpop.f32.mrf.mxu2 }
 0x3e9   :  { %4103 = vmatmul.msk.f32.gmra.mxu3 %vm223_vm1, %v5404_v37 }
 0x3f0   :  { %v5423_v53 = vpop.f32.mrf.mxu2 }
 0x3f1   :  { %4104 = vmatmul.msk.f32.gmra.mxu3 %vm223_vm1, %v5423_v53 }
 0x3f8   :  { %v814_v8 = vpop.f32.mrf.mxu2 }
 0x3f9   :  { %4105 = vmatmul.msk.f32.gmra.mxu3 %vm223_vm1, %v814_v8 }
 0x400   :  { %v817_v57 = vpop.f32.mrf.mxu2 }
 0x401   :  { %4106 = vmatmul.msk.f32.gmra.mxu3 %vm223_vm1, %v817_v57 }
 0x408   :  { %v820_v22 = vpop.f32.mrf.mxu2 }
 0x409   :  { %4107 = vmatmul.msk.f32.gmra.mxu3 %vm223_vm1, %v820_v22 }
 0x454   :  { %v872_v1 = vpop.f32.mrf.mxu3 }
 0x455   :  { %v873_v56 = vadd.f32 %v4481_v62, %v872_v1 }
 0x457   :  { %v896_v63 = vmax.f32 %v873_v56, 0.0 }
 0x459   :  { %4108 = vmatmul.msk.f32.vlgmr.msrb.gmra.mxu3 %vm912_vm10, %v896_v63 }
 0x45c   :  { %v875_v5 = vpop.f32.mrf.mxu3 }
 0x45d   :  { %v876_v3 = vadd.f32 %v4481_v62, %v875_v5  ;;  %v4139_v5 = vld [vmem:[%s7103_s7 + $0x38] sm:$0xff] }
 0x45f   :  { %v897_v41 = vmax.f32 %v876_v3, 0.0  ;;  %v4138_v3 = vld [vmem:[%s7103_s7 + $0x30] sm:$0xff] }
 0x461   :  { %4109 = vmatmul.msk.f32.gmra.mxu3 %vm912_vm10, %v897_v41  ;;  %v4137_v41 = vld [vmem:[%s7103_s7 + $0x28] sm:$0xff] }
 0x464   :  { %v878_v42 = vpop.f32.mrf.mxu3 }
 0x465   :  { %v879_v13 = vadd.f32 %v4481_v62, %v878_v42  ;;  %v1128_v42 = vld [vmem:[%s7108_s12 + $0x8] sm:$0xff] }
 0x467   :  { %v898_v46 = vmax.f32 %v879_v13, 0.0  ;;  %v1129_v13 = vld [vmem:[%s7108_s12 + $0x10] sm:$0xff] }
 0x469   :  { %4110 = vmatmul.msk.f32.gmra.mxu3 %vm912_vm10, %v898_v46  ;;  %v1130_v46 = vld [vmem:[%s7108_s12 + $0x18] sm:$0xff] }
 0x46c   :  { %v881_v7 = vpop.f32.mrf.mxu3 }
 0x46d   :  { %v882_v58 = vadd.f32 %v4481_v62, %v881_v7  ;;  %v4136_v7 = vld [vmem:[%s7103_s7 + $0x20] sm:$0xff] }
 0x46f   :  { %v899_v33 = vmax.f32 %v882_v58, 0.0  ;;  %v4152_v58 = vld [vmem:[%s7105_s9 + $0x78] sm:$0xff] }
 0x471   :  { %4111 = vmatmul.msk.f32.gmra.mxu3 %vm912_vm10, %v899_v33  ;;  %v4151_v33 = vld [vmem:[%s7105_s9 + $0x70] sm:$0xff] }
 0x474   :  { %v884_v4 = vpop.f32.mrf.mxu3 }
 0x475   :  { %v885_v15 = vadd.f32 %v4481_v62, %v884_v4  ;;  %v4150_v4 = vld [vmem:[%s7105_s9 + $0x68] sm:$0xff] }
 0x477   :  { %v900_v10 = vmax.f32 %v885_v15, 0.0  ;;  %v4149_v15 = vld [vmem:[%s7105_s9 + $0x60] sm:$0xff] }
 0x479   :  { %4112 = vmatmul.msk.f32.gmra.mxu3 %vm912_vm10, %v900_v10  ;;  %v4148_v10 = vld [vmem:[%s7105_s9 + $0x58] sm:$0xff] }
 0x47c   :  { %v887_v17 = vpop.f32.mrf.mxu3 }
 0x47d   :  { %v888_v11 = vadd.f32 %v4481_v62, %v887_v17 }
 0x47f   :  { %v901_v23 = vmax.f32 %v888_v11, 0.0 }
 0x481   :  { %4113 = vmatmul.msk.f32.gmra.mxu3 %vm912_vm10, %v901_v23 }
 0x484   :  { %v890_v25 = vpop.f32.mrf.mxu3 }
 0x485   :  { %v891_v27 = vadd.f32 %v4481_v62, %v890_v25 }
 0x487   :  { %v902_v14 = vmax.f32 %v891_v27, 0.0  ;;  %v4147_v27 = vld [vmem:[%s7105_s9 + $0x50] sm:$0xff] }
 0x489   :  { %4114 = vmatmul.msk.f32.gmra.mxu3 %vm912_vm10, %v902_v14  ;;  %v4146_v14 = vld [vmem:[%s7105_s9 + $0x48] sm:$0xff] }
 0x48c   :  { %v893_v28 = vpop.f32.mrf.mxu3 }
 0x48d   :  { %v894_v24 = vadd.f32 %v4481_v62, %v893_v28  ;;  %v4145_v28 = vld [vmem:[%s7105_s9 + $0x40] sm:$0xff] }
 0x48f   :  { %v903_v29 = vmax.f32 %v894_v24, 0.0 }
 0x491   :  { %4115 = vmatmul.msk.f32.gmra.mxu3 %vm912_vm10, %v903_v29  ;;  %v4483_v29 = vld [vmem:[%s7104_s8 + $0x1] ss:$0 sm:$0xff] }
 0x4dc   :  { %v954_v30 = vpop.f32.mrf.mxu3 }
 0x4e4   :  { %v957_v18 = vpop.f32.mrf.mxu3 }
 0x4ec   :  { %v960_v54 = vpop.f32.mrf.mxu3 }
 0x4ed   :  { %v980_v56 = vadd.f32 %v960_v54, %v5400_v36 }
 0x4f4   :  { %v963_v45 = vpop.f32.mrf.mxu3 }
 0x4f5   :  { %v981_v62 = vadd.f32 %v963_v45, %v5404_v37 }
 0x4fc   :  { %v966_v55 = vpop.f32.mrf.mxu3 }
 0x4fd   :  { %v982_v60 = vadd.f32 %v966_v55, %v5423_v53  ;;  %v978_v53 = vadd.f32 %v954_v30, %v5392_v19  ;;  %v1127_v19 = vld [vmem:[%s7108_s12] sm:$0xff] }
 0x4ff   :  { %v994_v63 = vadd.f32 %v4482_v40, %v982_v60  ;;  %v990_v36 = vadd.f32 %v4482_v40, %v978_v53 }
 0x504   :  { %v969_v12 = vpop.f32.mrf.mxu3 }
 0x505   :  { %v983_v51 = vadd.f32 %v969_v12, %v814_v8  ;;  %v979_v8 = vadd.f32 %v957_v18, %v5396_v34  ;;  %v1013_v34 = vld [vmem:[%s7107_s13 + $0x78] sm:$0x3f] }
 0x507   :  { %v995_v1 = vadd.f32 %v4482_v40, %v983_v51  ;;  %v991_v37 = vadd.f32 %v4482_v40, %v979_v8 }
 0x50c   :  { %v972_v49 = vpop.f32.mrf.mxu3 }
 0x50d   :  { %v984_v48 = vadd.f32 %v972_v49, %v817_v57  ;;  %v993_v57 = vadd.f32 %v4482_v40, %v981_v62 }
 0x50f   :  { %v996_v47 = vadd.f32 %v4482_v40, %v984_v48 }
 0x514   :  { %v975_v50 = vpop.f32.mrf.mxu3 }
 0x515   :  { %v985_v2 = vadd.f32 %v975_v50, %v820_v22  ;;  %v992_v22 = vadd.f32 %v4482_v40, %v980_v56 }
 0x517   :  { %v997_v59 = vadd.f32 %v4482_v40, %v985_v2 }
 0x519   :  { %1070 = vmatpush.msrb.mxu2 %v997_v59  ;;  %4462 = vmatpush.msra.mxu3 %v997_v59 }
 0x51a   :  { %1151 = vmatpush.msrb.mxu0 %v997_v59 }
 0x51b   :  { %1071 = vmatpush.msrb.mxu2 %v996_v47  ;;  %4463 = vmatpush.msra.mxu3 %v996_v47 }
 0x51c   :  { %1152 = vmatpush.msrb.mxu0 %v996_v47 }
 0x51d   :  { %1072 = vmatpush.msrb.mxu2 %v995_v1  ;;  %4464 = vmatpush.msra.mxu3 %v995_v1 }
 0x51e   :  { %1153 = vmatpush.msrb.mxu0 %v995_v1  ;;  %v4484_v1 = vld [vmem:[%s7106_s10 + $0x1] ss:$0 sm:$0xff] }
 0x51f   :  { %1073 = vmatpush.msrb.mxu2 %v994_v63  ;;  %4465 = vmatpush.msra.mxu3 %v994_v63 }
 0x520   :  { %1154 = vmatpush.msrb.mxu0 %v994_v63 }
 0x521   :  { %1074 = vmatpush.msrb.mxu2 %v993_v57  ;;  %4466 = vmatpush.msra.mxu3 %v993_v57 }
 0x522   :  { %1155 = vmatpush.msrb.mxu0 %v993_v57 }
 0x523   :  { %1075 = vmatpush.msrb.mxu2 %v992_v22  ;;  %4467 = vmatpush.msra.mxu3 %v992_v22 }
 0x524   :  { %1156 = vmatpush.msrb.mxu0 %v992_v22 }
 0x525   :  { %1076 = vmatpush.msrb.mxu2 %v991_v37  ;;  %4468 = vmatpush.msra.mxu3 %v991_v37 }
 0x526   :  { %1157 = vmatpush.msrb.mxu0 %v991_v37 }
 0x527   :  { %1077 = vmatpush.msrb.mxu2 %v990_v36  ;;  %4469 = vmatpush.msra.mxu3 %v990_v36 }
 0x528   :  { %1158 = vmatpush.msrb.mxu0 %v990_v36  ;;  %4131 = vmatmul.msk.f32.vlgmr.msra.gmra.mxu3 %vm912_vm10, %v1013_v34  ;;  %v1290_v34 = vld [vmem:[%s7109_s14] sm:$0xff] }
 0x529   :  { %4132 = vmatmul.msk.f32.vlgmr.msrb.gmra.mxu0 %vm912_vm10, %v1127_v19  ;;  %1206 = vmatpush.msrb.mxu3 %v4139_v5  ;;  %v1291_v19 = vld [vmem:[%s7109_s14 + $0x8] sm:$0xff]  ;;  %v1292_v5 = vld [vmem:[%s7109_s14 + $0x10] sm:$0xff] }
 0x52b   :  { %1207 = vmatpush.msrb.mxu3 %v4138_v3  ;;  %v1297_v3 = vld [vmem:[%s7109_s14 + $0x38] sm:$0xff] }
 0x52d   :  { %1208 = vmatpush.msrb.mxu3 %v4137_v41  ;;  %v1293_v41 = vld [vmem:[%s7109_s14 + $0x18] sm:$0xff] }
 0x52f   :  { %1209 = vmatpush.msrb.mxu3 %v4136_v7  ;;  %v1295_v7 = vld [vmem:[%s7109_s14 + $0x28] sm:$0xff] }
 0x531   :  { %4133 = vmatmul.msk.f32.gmra.mxu0 %vm912_vm10, %v1128_v42  ;;  %1256 = vmatpush.msra.mxu3 %v4152_v58  ;;  %v1298_v42 = vld [vmem:[%s7109_s14 + $0x40] sm:$0xff]  ;;  %v1300_v58 = vld [vmem:[%s7109_s14 + $0x50] sm:$0xff] }
 0x533   :  { %1257 = vmatpush.msra.mxu3 %v4151_v33  ;;  %v1296_v33 = vld [vmem:[%s7109_s14 + $0x30] sm:$0xff] }
 0x535   :  { %1258 = vmatpush.msra.mxu3 %v4150_v4  ;;  %v1301_v4 = vld [vmem:[%s7109_s14 + $0x58] sm:$0xff] }
 0x537   :  { %1259 = vmatpush.msra.mxu3 %v4149_v15  ;;  %v1502_v15 = vld [vmem:[%s7110_s15 + $0x18] sm:$0xff] }
 0x539   :  { %4134 = vmatmul.msk.f32.gmra.mxu0 %vm912_vm10, %v1129_v13  ;;  %1260 = vmatpush.msra.mxu3 %v4148_v10  ;;  %v1294_v13 = vld [vmem:[%s7109_s14 + $0x20] sm:$0xff]  ;;  %v1639_v10 = vld [vmem:[%s7111_s17 + $0x18] sm:$0xff] }
 0x53b   :  { %1261 = vmatpush.msra.mxu3 %v4147_v27  ;;  %v1637_v27 = vld [vmem:[%s7111_s17 + $0x8] sm:$0xff] }
 0x53d   :  { %1262 = vmatpush.msra.mxu3 %v4146_v14  ;;  %v1302_v14 = vld [vmem:[%s7109_s14 + $0x60] sm:$0xff] }
 0x53f   :  { %1263 = vmatpush.msra.mxu3 %v4145_v28  ;;  %v1303_v28 = vld [vmem:[%s7109_s14 + $0x68] sm:$0xff] }
 0x541   :  { %4135 = vmatmul.msk.f32.gmra.mxu0 %vm912_vm10, %v1130_v46  ;;  %v1299_v46 = vld [vmem:[%s7109_s14 + $0x48] sm:$0xff] }
 0x5a6   :  { %v1160_v17 = vpop.f32.mrf.mxu0 }
 0x5a7   :  { %4141 = vmatmul.msk.f32.vlgmr.msrb.gmra.mxu3 %vm223_vm1, %v1160_v17 }
 0x5a8   :  { %1656 = vmatpush.msrb.mxu3 %v1639_v10 }
 0x5ab   :  { %v5518_v24 = vpop.f32.mrf.mxu3 }
 0x5ae   :  { %v1163_v11 = vpop.f32.mrf.mxu0 }
 0x5af   :  { %4142 = vmatmul.msk.f32.gmra.mxu3 %vm223_vm1, %v1163_v11 }
 0x5b6   :  { %v1166_v23 = vpop.f32.mrf.mxu0 }
 0x5b7   :  { %4143 = vmatmul.msk.f32.gmra.mxu3 %vm223_vm1, %v1166_v23 }
 0x5be   :  { %v1169_v25 = vpop.f32.mrf.mxu0 }
 0x5bf   :  { %4144 = vmatmul.msk.f32.gmra.mxu3 %vm223_vm1, %v1169_v25 }
 0x62a   :  { %v1211_v30 = vpop.f32.mrf.mxu3 }
 0x62b   :  { %v1212_v18 = vadd.f32 %v4483_v29, %v1211_v30  ;;  %v1305_v30 = vld [vmem:[%s7109_s14 + $0x78] sm:$0x3f] }
 0x62d   :  { %v1223_v54 = vmax.f32 %v1212_v18, 0.0  ;;  %v1499_v18 = vld [vmem:[%s7110_s15] sm:$0xff] }
 0x62f   :  { %4153 = vmatmul.msk.f32.vlgmr.msra.gmra.mxu3 %vm912_vm10, %v1223_v54  ;;  %v1636_v54 = vld [vmem:[%s7111_s17] sm:$0xff] }
 0x632   :  { %v1214_v45 = vpop.f32.mrf.mxu3 }
 0x633   :  { %v1215_v55 = vadd.f32 %v4483_v29, %v1214_v45  ;;  %v999_v45 = vld [vmem:[%s7107_s13 + $0x8] sm:$0xff] }
 0x635   :  { %v1224_v12 = vmax.f32 %v1215_v55, 0.0  ;;  %v1000_v55 = vld [vmem:[%s7107_s13 + $0x10] sm:$0xff] }
 0x637   :  { %4154 = vmatmul.msk.f32.gmra.mxu3 %vm912_vm10, %v1224_v12  ;;  %v1001_v12 = vld [vmem:[%s7107_s13 + $0x18] sm:$0xff] }
 0x63a   :  { %v1217_v49 = vpop.f32.mrf.mxu3 }
 0x63b   :  { %v1218_v50 = vadd.f32 %v4483_v29, %v1217_v49  ;;  %v1002_v49 = vld [vmem:[%s7107_s13 + $0x20] sm:$0xff] }
 0x63d   :  { %v1225_v40 = vmax.f32 %v1218_v50, 0.0 }
 0x63f   :  { %4155 = vmatmul.msk.f32.gmra.mxu3 %vm912_vm10, %v1225_v40  ;;  %v1003_v40 = vld [vmem:[%s7107_s13 + $0x28] sm:$0xff] }
 0x642   :  { %v1220_v48 = vpop.f32.mrf.mxu3 }
 0x643   :  { %v1221_v2 = vadd.f32 %v4483_v29, %v1220_v48  ;;  %v1304_v29 = vld [vmem:[%s7109_s14 + $0x70] sm:$0xff] }
 0x645   :  { %v1226_v51 = vmax.f32 %v1221_v2, 0.0  ;;  %v1004_v2 = vld [vmem:[%s7107_s13 + $0x30] sm:$0xff] }
 0x647   :  { %4156 = vmatmul.msk.f32.gmra.mxu3 %vm912_vm10, %v1226_v51 }
 0x6b2   :  { %v1265_v59 = vpop.f32.mrf.mxu3 }
 0x6b3   :  { %v1277_v53 = vadd.f32 %v1265_v59, %v1160_v17  ;;  %v1501_v17 = vld [vmem:[%s7110_s15 + $0x10] sm:$0xff]  ;;  %v1005_v59 = vld [vmem:[%s7107_s13 + $0x38] sm:$0xff] }
 0x6b5   :  { %v1286_v36 = vadd.f32 %v4484_v1, %v1277_v53 }
 0x6ba   :  { %v1268_v60 = vpop.f32.mrf.mxu3 }
 0x6bb   :  { %v1278_v8 = vadd.f32 %v1268_v60, %v1163_v11  ;;  %v1638_v11 = vld [vmem:[%s7111_s17 + $0x10] sm:$0xff] }
 0x6bc   :  { %1657 = vmatpush.msrb.mxu3 %v1638_v11 }
 0x6bd   :  { %v1287_v37 = vadd.f32 %v4484_v1, %v1278_v8  ;;  %v1008_v8 = vld [vmem:[%s7107_s13 + $0x50] sm:$0xff] }
 0x6be   :  { %1658 = vmatpush.msrb.mxu3 %v1637_v27 }
 0x6c0   :  { %1659 = vmatpush.msrb.mxu3 %v1636_v54  ;;  %v2030_v54 = vld [vmem:[%s7114_s19 + $0x8] sm:$0xff] }
 0x6c2   :  { %v1271_v47 = vpop.f32.mrf.mxu3 }
 0x6c3   :  { %v1279_v56 = vadd.f32 %v1271_v47, %v1166_v23  ;;  %v998_v23 = vld [vmem:[%s7107_s13] sm:$0xff] }
 0x6c4   :  { %4116 = vmatmul.msk.f32.vlgmr.msrb.gmra.mxu2 %vm912_vm10, %v998_v23  ;;  %v1006_v47 = vld [vmem:[%s7107_s13 + $0x40] sm:$0xff] }
 0x6c5   :  { %v1288_v22 = vadd.f32 %v4484_v1, %v1279_v56 }
 0x6ca   :  { %v1274_v62 = vpop.f32.mrf.mxu3 }
 0x6cb   :  { %v1280_v63 = vadd.f32 %v1274_v62, %v1169_v25  ;;  %v1500_v25 = vld [vmem:[%s7110_s15 + $0x8] sm:$0xff] }
 0x6cc   :  { %4117 = vmatmul.msk.f32.gmra.mxu2 %vm912_vm10, %v999_v45 }
 0x6cd   :  { %v1289_v57 = vadd.f32 %v4484_v1, %v1280_v63  ;;  %v1007_v1 = vld [vmem:[%s7107_s13 + $0x48] sm:$0xff] }
 0x6cf   :  { %1366 = vmatpush.msra.mxu0 %v1289_v57  ;;  %4470 = vmatpush.msra.mxu1 %v1289_v57 }
 0x6d1   :  { %1367 = vmatpush.msra.mxu0 %v1288_v22  ;;  %4471 = vmatpush.msra.mxu1 %v1288_v22  ;;  %v1009_v22 = vld [vmem:[%s7107_s13 + $0x58] sm:$0xff] }
 0x6d3   :  { %1368 = vmatpush.msra.mxu0 %v1287_v37  ;;  %4472 = vmatpush.msra.mxu1 %v1287_v37 }
 0x6d4   :  { %4118 = vmatmul.msk.f32.gmra.mxu2 %vm912_vm10, %v1000_v55 }
 0x6d5   :  { %1369 = vmatpush.msra.mxu0 %v1286_v36  ;;  %4473 = vmatpush.msra.mxu1 %v1286_v36  ;;  %v1010_v36 = vld [vmem:[%s7107_s13 + $0x60] sm:$0xff] }
 0x6d6   :  { %4158 = vmatmul.msk.f32.vlgmr.msra.gmra.mxu0 %vm223_vm1, %v1290_v34  ;;  %4165 = vmatmul.msk.f32.vlgmr.msra.gmra.mxu1 %vm223_vm1, %v1297_v3  ;;  %v1011_v34 = vld [vmem:[%s7107_s13 + $0x68] sm:$0xff]  ;;  %v1012_v3 = vld [vmem:[%s7107_s13 + $0x70] sm:$0xff] }
 0x6d7   :  { %1567 = vmatpush.msrb.mxu1 %v1502_v15  ;;  %v4275_v15 = vld [vmem:[%s7111_s17 + $0x20] sm:$0xff] }
 0x6d9   :  { %1568 = vmatpush.msrb.mxu1 %v1501_v17 }
 0x6db   :  { %1569 = vmatpush.msrb.mxu1 %v1500_v25 }
 0x6dc   :  { %4119 = vmatmul.msk.f32.gmra.mxu2 %vm912_vm10, %v1001_v12  ;;  %v2029_v12 = vld [vmem:[%s7114_s19] sm:$0xff] }
 0x6dd   :  { %1570 = vmatpush.msrb.mxu1 %v1499_v18  ;;  %v2031_v18 = vld [vmem:[%s7114_s19 + $0x10] sm:$0xff] }
 0x6de   :  { %4159 = vmatmul.msk.f32.gmra.mxu0 %vm223_vm1, %v1291_v19  ;;  %4166 = vmatmul.msk.f32.gmra.mxu1 %vm223_vm1, %v1298_v42 }
 0x6e4   :  { %4120 = vmatmul.msk.f32.gmra.mxu2 %vm912_vm10, %v1002_v49 }
 0x6e6   :  { %4160 = vmatmul.msk.f32.gmra.mxu0 %vm223_vm1, %v1292_v5  ;;  %4167 = vmatmul.msk.f32.gmra.mxu1 %vm223_vm1, %v1299_v46  ;;  %v4278_v5 = vld [vmem:[%s7111_s17 + $0x38] sm:$0xff]  ;;  %v4256_v46 = vld [vmem:[%s7110_s15 + $0x30] sm:$0xff] }
 0x6e7   :  { %2464 = vmatpush.msra.mxu3 %v4278_v5 }
 0x6ec   :  { %4121 = vmatmul.msk.f32.gmra.mxu2 %vm912_vm10, %v1003_v40 }
 0x6ee   :  { %4161 = vmatmul.msk.f32.gmra.mxu0 %vm223_vm1, %v1293_v41  ;;  %4168 = vmatmul.msk.f32.gmra.mxu1 %vm223_vm1, %v1300_v58  ;;  %v4255_v58 = vld [vmem:[%s7110_s15 + $0x28] sm:$0xff] }
 0x6f4   :  { %4122 = vmatmul.msk.f32.gmra.mxu2 %vm912_vm10, %v1004_v2 }
 0x6f6   :  { %4162 = vmatmul.msk.f32.gmra.mxu0 %vm223_vm1, %v1294_v13  ;;  %4169 = vmatmul.msk.f32.gmra.mxu1 %vm223_vm1, %v1301_v4  ;;  %v4257_v13 = vld [vmem:[%s7110_s15 + $0x38] sm:$0xff]  ;;  %v4254_v4 = vld [vmem:[%s7110_s15 + $0x20] sm:$0xff] }
 0x6f7   :  { %2373 = vmatpush.msra.mxu1 %v4257_v13 }
 0x6f9   :  { %2374 = vmatpush.msra.mxu1 %v4256_v46 }
 0x6fb   :  { %2375 = vmatpush.msra.mxu1 %v4255_v58 }
 0x6fc   :  { %4123 = vmatmul.msk.f32.gmra.mxu2 %vm912_vm10, %v1005_v59 }
 0x6fd   :  { %2376 = vmatpush.msra.mxu1 %v4254_v4 }
 0x6fe   :  { %4163 = vmatmul.msk.f32.gmra.mxu0 %vm223_vm1, %v1295_v7  ;;  %4170 = vmatmul.msk.f32.gmra.mxu1 %vm223_vm1, %v1302_v14  ;;  %v4277_v7 = vld [vmem:[%s7111_s17 + $0x30] sm:$0xff] }
 0x6ff   :  { %2465 = vmatpush.msra.mxu3 %v4277_v7 }
 0x704   :  { %4124 = vmatmul.msk.f32.gmra.mxu2 %vm912_vm10, %v1006_v47 }
 0x706   :  { %4164 = vmatmul.msk.f32.gmra.mxu0 %vm223_vm1, %v1296_v33  ;;  %4171 = vmatmul.msk.f32.gmra.mxu1 %vm223_vm1, %v1303_v28  ;;  %v4276_v33 = vld [vmem:[%s7111_s17 + $0x28] sm:$0xff]  ;;  %v2032_v28 = vld [vmem:[%s7114_s19 + $0x18] sm:$0xff] }
 0x707   :  { %2466 = vmatpush.msra.mxu3 %v4276_v33  ;;  %2097 = vmatpush.msra.mxu2 %v2032_v28 }
 0x709   :  { %2467 = vmatpush.msra.mxu3 %v4275_v15  ;;  %2098 = vmatpush.msra.mxu2 %v2031_v18 }
 0x70b   :  { %2099 = vmatpush.msra.mxu2 %v2030_v54 }
 0x70c   :  { %4125 = vmatmul.msk.f32.gmra.mxu2 %vm912_vm10, %v1007_v1 }
 0x70d   :  { %2100 = vmatpush.msra.mxu2 %v2029_v12 }
 0x70e   :  { %4172 = vmatmul.msk.f32.gmra.mxu1 %vm223_vm1, %v1304_v29 }
 0x714   :  { %4126 = vmatmul.msk.f32.gmra.mxu2 %vm912_vm10, %v1008_v8 }
 0x716   :  { %4173 = vmatmul.msk.f32.gmra.mxu1 %vm223_vm1, %v1305_v30  ;;  %v5806_v30 = vld [vmem:[%s7113_s18] ss:$0 sm:$0xff] }
 0x71c   :  { %4127 = vmatmul.msk.f32.gmra.mxu2 %vm912_vm10, %v1009_v22 }
 0x724   :  { %4128 = vmatmul.msk.f32.gmra.mxu2 %vm912_vm10, %v1010_v36 }
 0x72c   :  { %4129 = vmatmul.msk.f32.gmra.mxu2 %vm912_vm10, %v1011_v34  ;;  %v5828_v34 = vld [vmem:[%s7112_s16] ss:$0 sm:$0xff] }
 0x734   :  { %4130 = vmatmul.msk.f32.gmra.mxu2 %vm912_vm10, %v1012_v3 }
 0x747   :  { %v1079_v17 = vpop.f32.mrf.mxu2 }
 0x74f   :  { %v1082_v23 = vpop.f32.mrf.mxu2 }
 0x753   :  { %v5638_v50 = vpop.f32.mrf.mxu0  ;;  %v5688_v56 = vpop.f32.mrf.mxu1 }
 0x754   :  { %4174 = vmatmul.msk.f32.vlgmr.msrb.gmra.mxu1 %vm223_vm1, %v5638_v50  ;;  %4190 = vmatmul.msk.f32.vlgmr.msrb.gmra.mxu3 %vm223_vm1, %v5638_v50 }
 0x757   :  { %v1085_v27 = vpop.f32.mrf.mxu2 }
 0x75b   :  { %v5648_v48 = vpop.f32.mrf.mxu0  ;;  %v5700_v57 = vpop.f32.mrf.mxu1 }
 0x75c   :  { %4175 = vmatmul.msk.f32.gmra.mxu1 %vm223_vm1, %v5648_v48  ;;  %4191 = vmatmul.msk.f32.gmra.mxu3 %vm223_vm1, %v5648_v48 }
 0x75f   :  { %v1088_v29 = vpop.f32.mrf.mxu2 }
 0x763   :  { %v5658_v51 = vpop.f32.mrf.mxu0  ;;  %v5712_v37 = vpop.f32.mrf.mxu1 }
 0x764   :  { %4176 = vmatmul.msk.f32.gmra.mxu1 %vm223_vm1, %v5658_v51  ;;  %4192 = vmatmul.msk.f32.gmra.mxu3 %vm223_vm1, %v5658_v51 }
 0x767   :  { %v1091_v2 = vpop.f32.mrf.mxu2 }
 0x76b   :  { %v5668_v60 = vpop.f32.mrf.mxu0  ;;  %v5729_v19 = vpop.f32.mrf.mxu1 }
 0x76c   :  { %4177 = vmatmul.msk.f32.gmra.mxu1 %vm223_vm1, %v5668_v60  ;;  %4193 = vmatmul.msk.f32.gmra.mxu3 %vm223_vm1, %v5668_v60 }
 0x76f   :  { %v5830_v3 = vpop.f32.mrf.mxu2 }
 0x773   :  { %v5678_v62 = vpop.f32.mrf.mxu0  ;;  %v5743_v41 = vpop.f32.mrf.mxu1 }
 0x774   :  { %4178 = vmatmul.msk.f32.gmra.mxu1 %vm223_vm1, %v5678_v62  ;;  %4194 = vmatmul.msk.f32.gmra.mxu3 %vm223_vm1, %v5678_v62 }
 0x77b   :  { %v5690_v63 = vpop.f32.mrf.mxu0  ;;  %v5749_v42 = vpop.f32.mrf.mxu1 }
 0x77c   :  { %4179 = vmatmul.msk.f32.gmra.mxu1 %vm223_vm1, %v5690_v63  ;;  %4195 = vmatmul.msk.f32.gmra.mxu3 %vm223_vm1, %v5690_v63 }
 0x783   :  { %v5702_v53 = vpop.f32.mrf.mxu0  ;;  %v5776_v10 = vpop.f32.mrf.mxu1 }
 0x784   :  { %4180 = vmatmul.msk.f32.gmra.mxu1 %vm223_vm1, %v5702_v53  ;;  %4196 = vmatmul.msk.f32.gmra.mxu3 %vm223_vm1, %v5702_v53 }
 0x78b   :  { %v5786_v11 = vpop.f32.mrf.mxu1 }
 0x78c   :  { %4181 = vmatmul.msk.f32.gmra.mxu1 %vm223_vm1, %v5688_v56  ;;  %4197 = vmatmul.msk.f32.gmra.mxu3 %vm223_vm1, %v5688_v56 }
 0x793   :  { %v5792_v25 = vpop.f32.mrf.mxu1 }
 0x794   :  { %4182 = vmatmul.msk.f32.gmra.mxu1 %vm223_vm1, %v5700_v57  ;;  %4198 = vmatmul.msk.f32.gmra.mxu3 %vm223_vm1, %v5700_v57 }
 0x79c   :  { %4183 = vmatmul.msk.f32.gmra.mxu1 %vm223_vm1, %v5712_v37  ;;  %4199 = vmatmul.msk.f32.gmra.mxu3 %vm223_vm1, %v5712_v37 }
 0x7a4   :  { %4184 = vmatmul.msk.f32.gmra.mxu1 %vm223_vm1, %v5729_v19  ;;  %4200 = vmatmul.msk.f32.gmra.mxu3 %vm223_vm1, %v5729_v19 }
 0x7ac   :  { %4185 = vmatmul.msk.f32.gmra.mxu1 %vm223_vm1, %v5743_v41  ;;  %4201 = vmatmul.msk.f32.gmra.mxu3 %vm223_vm1, %v5743_v41 }
 0x7b4   :  { %4186 = vmatmul.msk.f32.gmra.mxu1 %vm223_vm1, %v5749_v42  ;;  %4202 = vmatmul.msk.f32.gmra.mxu3 %vm223_vm1, %v5749_v42 }
 0x7bc   :  { %4187 = vmatmul.msk.f32.gmra.mxu1 %vm223_vm1, %v5776_v10  ;;  %4203 = vmatmul.msk.f32.gmra.mxu3 %vm223_vm1, %v5776_v10 }
 0x7c4   :  { %4188 = vmatmul.msk.f32.gmra.mxu1 %vm223_vm1, %v5786_v11  ;;  %4204 = vmatmul.msk.f32.gmra.mxu3 %vm223_vm1, %v5786_v11 }
 0x7cc   :  { %4189 = vmatmul.msk.f32.gmra.mxu1 %vm223_vm1, %v5792_v25  ;;  %4205 = vmatmul.msk.f32.gmra.mxu3 %vm223_vm1, %v5792_v25 }
 0x7d1   :  { %v1572_v14 = vpop.f32.mrf.mxu1 }
 0x7d2   :  { %v1573_v4 = vadd.f32 %v5828_v34, %v1572_v14  ;;  %v5841_v14 = vpop.f32.mrf.mxu2 }
 0x7d4   :  { %4259 = vmatmul.msk.f32.vlgmr.msra.gmra.mxu1 %vm223_vm1, %v1079_v17  ;;  %4280 = vmatmul.msk.f32.vlgmr.msra.gmra.mxu3 %vm223_vm1, %v1079_v17 }
 0x7d7   :  { %v1661_v45 = vpop.f32.mrf.mxu3 }
 0x7d8   :  { %v1662_v55 = vadd.f32 %v5806_v30, %v1661_v45 }
 0x7d9   :  { %v1575_v49 = vpop.f32.mrf.mxu1 }
 0x7da   :  { %v4206_v40 = vmul.f32 -1.442695, %v1662_v55 }
 0x7dc   :  { %4528 = vpow2.f32 %v4206_v40  ;;  %4260 = vmatmul.msk.f32.gmra.mxu1 %vm223_vm1, %v1082_v23  ;;  %4281 = vmatmul.msk.f32.gmra.mxu3 %vm223_vm1, %v1082_v23 }
 0x7df   :  { %v1664_v59 = vpop.f32.mrf.mxu3 }
 0x7e0   :  { %v1665_v47 = vadd.f32 %v5806_v30, %v1664_v59 }
 0x7e1   :  { %v5821_v1 = vpop.f32.mrf.mxu1 }
 0x7e2   :  { %v4529_v8 = vpop.eup %4528  ;;  %v4207_v22 = vmul.f32 -1.442695, %v1665_v47 }
 0x7e3   :  { %v1757_v36 = vadd.f32 1.0, %v4529_v8 }
 0x7e4   :  { %4530 = vpow2.f32 %v4207_v22  ;;  %4261 = vmatmul.msk.f32.gmra.mxu1 %vm223_vm1, %v1085_v27  ;;  %4282 = vmatmul.msk.f32.gmra.mxu3 %vm223_vm1, %v1085_v27 }
 0x7e5   :  { %4532 = vrcp.f32 %v1757_v36  ;;  %v1784_v27 = vand.u32 2147483648, %v1757_v36  ;;  %v1782_v45 = vand.u32 2147483647, %v1757_v36  ;;  %vm1778_vm12 = vweird.f32 %v1757_v36 }
 0x7e7   :  { %v1667_v5 = vpop.f32.mrf.mxu3  ;;  %v1785_v22 = vor.u32 1.1754944e-38, %v1784_v27  ;;  %vm1783_vm14 = vcmp.eq.f32.partialorder %v1782_v45, 8.507059e+37 }
 0x7e8   :  { %v1668_v13 = vadd.f32 %v5806_v30, %v1667_v5 }
 0x7e9   :  { %v5833_v46 = vpop.f32.mrf.mxu1 }
 0x7ea   :  { %v4531_v7 = vpop.eup %4530  ;;  %v4208_v58 = vmul.f32 -1.442695, %v1668_v13 }
 0x7eb   :  { %v4533_v33 = vpop.eup %4532  ;;  %v1758_v15 = vadd.f32 1.0, %v4531_v7 }
 0x7ec   :  { %v1774_v17 = vmul.f32 %v4533_v33, %v1757_v36  ;;  %4534 = vpow2.f32 %v4208_v58  ;;  %4262 = vmatmul.msk.f32.gmra.mxu1 %vm223_vm1, %v1088_v29  ;;  %4283 = vmatmul.msk.f32.gmra.mxu3 %vm223_vm1, %v1088_v29  ;;  %vm1779_vm11 = vweird.f32 %v4533_v33  ;;  %v1576_v29 = vadd.f32 %v5828_v34, %v1575_v49 }
 0x7ed   :  { %4536 = vrcp.f32 %v1758_v15  ;;  %vm1780_vm13 = vmor %vm1778_vm12, %vm1779_vm11  ;;  %vm1793_vm0 = vweird.f32 %v1758_v15 }
 0x7ee   :  { %v1775_v23 = vsub.f32 1.0, %v1774_v17  ;;  %4538 = vtanh.f32 %v1573_v4  ;;  %v1797_v17 = vand.u32 2147483647, %v1758_v15 }
 0x7ef   :  { %v1670_v28 = vpop.f32.mrf.mxu3 }
 0x7f0   :  { %v1776_v18 = vmul.f32 %v4533_v33, %v1775_v23  ;;  %v1671_v54 = vadd.f32 %v5806_v30, %v1670_v28  ;;  %v1799_v23 = vand.u32 2147483648, %v1758_v15  ;;  %vm1798_vm2 = vcmp.eq.f32.partialorder %v1797_v17, 8.507059e+37 }
 0x7f1   :  { %v5839_v55 = vpop.f32.mrf.mxu1 }
 0x7f2   :  { %v4535_v12 = vpop.eup %4534  ;;  %v4209_v40 = vmul.f32 -1.442695, %v1671_v54  ;;  %v1777_v59 = vadd.f32 %v4533_v33, %v1776_v18 }
 0x7f3   :  { %v4537_v47 = vpop.eup %4536  ;;  %v5844_v8 = vadd.f32 1.0, %v4535_v12  ;;  %v1579_v12 = vadd.f32 %v5828_v34, %v5821_v1 }
 0x7f4   :  { %v1789_v5 = vmul.f32 %v4537_v47, %v1758_v15  ;;  %4540 = vpow2.f32 %v4209_v40  ;;  %4263 = vmatmul.msk.f32.gmra.mxu1 %vm223_vm1, %v1091_v2  ;;  %4284 = vmatmul.msk.f32.gmra.mxu3 %vm223_vm1, %v1091_v2  ;;  %v1781_v13 = vsel %vm1780_vm13, %v4533_v33, %v1777_v59  ;;  %v4539_v7 = vpop.eup %4538  ;;  %vm1794_vm15 = vweird.f32 %v4537_v47 }
 0x7f5   :  { %4542 = vrcp.f32 %v5844_v8  ;;  %v1786_v36 = vsel %vm1783_vm14, %v1785_v22, %v1781_v13  ;;  %vm1795_vm7 = vmor %vm1793_vm0, %vm1794_vm15  ;;  %v1800_v59 = vor.u32 1.1754944e-38, %v1799_v23  ;;  %v1812_v17 = vand.u32 2147483647, %v5844_v8 }
 0x7f6   :  { %v1790_v58 = vsub.f32 1.0, %v1789_v5  ;;  %v2013_v4 = vmul.f32 %v4539_v7, %v1786_v36  ;;  %4544 = vtanh.f32 %v1576_v29  ;;  %v5857_v29 = vpop.f32.mrf.mxu2  ;;  %vm1808_vm4 = vweird.f32 %v5844_v8 }
 0x7f7   :  { %v1673_v49 = vpop.f32.mrf.mxu3  ;;  %vm1813_vm6 = vcmp.eq.f32.partialorder %v1812_v17, 8.507059e+37 }
 0x7f8   :  { %v1674_v27 = vadd.f32 %v5806_v30, %v1673_v49  ;;  %4222 = vmatmul.msk.f32.vlgmr.msra.gmra.mxu2 %vm223_vm1, %v2013_v4  ;;  %v1791_v28 = vmul.f32 %v4537_v47, %v1790_v58  ;;  %v1814_v58 = vand.u32 2147483648, %v5844_v8 }
 0x7f9   :  { %v5851_v18 = vpop.f32.mrf.mxu1 }
 0x7fa   :  { %v4541_v2 = vpop.eup %4540  ;;  %v4210_v33 = vmul.f32 -1.442695, %v1674_v27  ;;  %v1792_v54 = vadd.f32 %v4537_v47, %v1791_v28 }
 0x7fb   :  { %v4543_v45 = vpop.eup %4542  ;;  %v5855_v40 = vadd.f32 1.0, %v4541_v2  ;;  %v1582_v2 = vadd.f32 %v5828_v34, %v5833_v46 }
 0x7fc   :  { %v1804_v22 = vmul.f32 %v4543_v45, %v5844_v8  ;;  %4546 = vpow2.f32 %v4210_v33  ;;  %4264 = vmatmul.msk.f32.gmra.mxu1 %vm223_vm1, %v5830_v3  ;;  %4285 = vmatmul.msk.f32.gmra.mxu3 %vm223_vm1, %v5830_v3  ;;  %v1796_v15 = vsel %vm1795_vm7, %v4537_v47, %v1792_v54  ;;  %v4545_v5 = vpop.eup %4544  ;;  %vm1809_vm3 = vweird.f32 %v4543_v45 }
 0x7fd   :  { %4548 = vrcp.f32 %v5855_v40  ;;  %v1801_v1 = vsel %vm1798_vm2, %v1800_v59, %v1796_v15  ;;  %vm1810_vm5 = vmor %vm1808_vm4, %vm1809_vm3  ;;  %v1815_v54 = vor.u32 1.1754944e-38, %v1814_v58  ;;  %vm1823_vm9 = vweird.f32 %v5855_v40 }
 0x7fe   :  { %v1805_v13 = vsub.f32 1.0, %v1804_v22  ;;  %v2014_v7 = vmul.f32 %v4545_v5, %v1801_v1  ;;  %4550 = vtanh.f32 %v1579_v12  ;;  %v1103_v46 = vpop.f32.mrf.mxu2 }
 0x7ff   :  { %v1676_v36 = vpop.f32.mrf.mxu3 }
 0x800   :  { %v1677_v4 = vadd.f32 %v5806_v30, %v1676_v36  ;;  %4223 = vmatmul.msk.f32.gmra.mxu2 %vm223_vm1, %v2014_v7  ;;  %v1806_v49 = vmul.f32 %v4543_v45, %v1805_v13  ;;  %v1829_v13 = vand.u32 2147483648, %v5855_v40 }
 0x801   :  { %v5869_v3 = vpop.f32.mrf.mxu1 }
 0x802   :  { %v4547_v47 = vpop.eup %4546  ;;  %v4211_v23 = vmul.f32 -1.442695, %v1677_v4  ;;  %v1807_v27 = vadd.f32 %v4543_v45, %v1806_v49 }
 0x803   :  { %v4549_v28 = vpop.eup %4548  ;;  %v5874_v33 = vadd.f32 1.0, %v4547_v47  ;;  %v1585_v47 = vadd.f32 %v5828_v34, %v5839_v55 }
 0x804   :  { %v1819_v12 = vmul.f32 %v4549_v28, %v5855_v40  ;;  %4552 = vpow2.f32 %v4211_v23  ;;  %4265 = vmatmul.msk.f32.gmra.mxu1 %vm223_vm1, %v5841_v14  ;;  %4286 = vmatmul.msk.f32.gmra.mxu3 %vm223_vm1, %v5841_v14  ;;  %v1811_v59 = vsel %vm1810_vm5, %v4543_v45, %v1807_v27  ;;  %v4551_v8 = vpop.eup %4550  ;;  %vm1824_vm8 = vweird.f32 %v4549_v28 }
 0x805   :  { %4554 = vrcp.f32 %v5874_v33  ;;  %v1816_v22 = vsel %vm1813_vm6, %v1815_v54, %v1811_v59  ;;  %v1827_v14 = vand.u32 2147483647, %v5855_v40  ;;  %vm1825_vm11 = vmor %vm1823_vm9, %vm1824_vm8  ;;  %v1830_v27 = vor.u32 1.1754944e-38, %v1829_v13 }
 0x806   :  { %v1820_v15 = vsub.f32 1.0, %v1819_v12  ;;  %v2015_v5 = vmul.f32 %v4551_v8, %v1816_v22  ;;  %4556 = vtanh.f32 %v1582_v2  ;;  %v1844_v22 = vand.u32 2147483648, %v5874_v33 }
 0x807   :  { %v1679_v1 = vpop.f32.mrf.mxu3  ;;  %vm1828_vm12 = vcmp.eq.f32.partialorder %v1827_v14, 8.507059e+37  ;;  %vm1838_vm14 = vweird.f32 %v5874_v33 }
 0x808   :  { %v1680_v7 = vadd.f32 %v5806_v30, %v1679_v1  ;;  %4224 = vmatmul.msk.f32.gmra.mxu2 %vm223_vm1, %v2015_v5  ;;  %v1821_v36 = vmul.f32 %v4549_v28, %v1820_v15  ;;  %v1106_v15 = vpop.f32.mrf.mxu2 }
 0x809   :  { %v5886_v45 = vpop.f32.mrf.mxu1 }
 0x80a   :  { %v4553_v58 = vpop.eup %4552  ;;  %v4212_v4 = vmul.f32 -1.442695, %v1680_v7  ;;  %v1822_v49 = vadd.f32 %v4549_v28, %v1821_v36 }
 0x80b   :  { %v4555_v17 = vpop.eup %4554  ;;  %v5891_v23 = vadd.f32 1.0, %v4553_v58  ;;  %v1588_v58 = vadd.f32 %v5828_v34, %v5851_v18 }
 0x80c   :  { %v1834_v2 = vmul.f32 %v4555_v17, %v5874_v33  ;;  %4558 = vpow2.f32 %v4212_v4  ;;  %4266 = vmatmul.msk.f32.gmra.mxu1 %vm223_vm1, %v5857_v29  ;;  %4287 = vmatmul.msk.f32.gmra.mxu3 %vm223_vm1, %v5857_v29  ;;  %v1826_v54 = vsel %vm1825_vm11, %v4549_v28, %v1822_v49  ;;  %v4557_v40 = vpop.eup %4556  ;;  %vm1839_vm13 = vweird.f32 %v4555_v17 }
 0x80d   :  { %4560 = vrcp.f32 %v5891_v23  ;;  %v1831_v12 = vsel %vm1828_vm12, %v1830_v27, %v1826_v54  ;;  %v1842_v29 = vand.u32 2147483647, %v5874_v33  ;;  %vm1840_vm15 = vmor %vm1838_vm14, %vm1839_vm13  ;;  %v1845_v49 = vor.u32 1.1754944e-38, %v1844_v22 }
 0x80e   :  { %v1835_v55 = vsub.f32 1.0, %v1834_v2  ;;  %v2016_v59 = vmul.f32 %v4557_v40, %v1831_v12  ;;  %4562 = vtanh.f32 %v1585_v47  ;;  %v1859_v12 = vand.u32 2147483648, %v5891_v23 }
 0x80f   :  { %v1682_v8 = vpop.f32.mrf.mxu3  ;;  %vm1843_vm0 = vcmp.eq.f32.partialorder %v1842_v29, 8.507059e+37  ;;  %vm1853_vm2 = vweird.f32 %v5891_v23 }
 0x810   :  { %v1683_v5 = vadd.f32 %v5806_v30, %v1682_v8  ;;  %4225 = vmatmul.msk.f32.gmra.mxu2 %vm223_vm1, %v2016_v59  ;;  %v1836_v1 = vmul.f32 %v4555_v17, %v1835_v55  ;;  %v1109_v8 = vpop.f32.mrf.mxu2 }
 0x811   :  { %v5903_v28 = vpop.f32.mrf.mxu1 }
 0x812   :  { %v4559_v13 = vpop.eup %4558  ;;  %v4213_v7 = vmul.f32 -1.442695, %v1683_v5  ;;  %v1837_v36 = vadd.f32 %v4555_v17, %v1836_v1 }
 0x813   :  { %v4561_v14 = vpop.eup %4560  ;;  %v5908_v4 = vadd.f32 1.0, %v4559_v13  ;;  %v1591_v13 = vadd.f32 %v5828_v34, %v5869_v3 }
 0x814   :  { %v1849_v47 = vmul.f32 %v4561_v14, %v5891_v23  ;;  %4564 = vpow2.f32 %v4213_v7  ;;  %4267 = vmatmul.msk.f32.gmra.mxu1 %vm223_vm1, %v1103_v46  ;;  %4288 = vmatmul.msk.f32.gmra.mxu3 %vm223_vm1, %v1103_v46  ;;  %v1841_v27 = vsel %vm1840_vm15, %v4555_v17, %v1837_v36  ;;  %v4563_v2 = vpop.eup %4562  ;;  %vm1854_vm7 = vweird.f32 %v4561_v14 }
 0x815   :  { %4566 = vrcp.f32 %v5908_v4  ;;  %v1846_v33 = vsel %vm1843_vm0, %v1845_v49, %v1841_v27  ;;  %v1857_v46 = vand.u32 2147483647, %v5891_v23  ;;  %vm1855_vm3 = vmor %vm1853_vm2, %vm1854_vm7  ;;  %v1860_v36 = vor.u32 1.1754944e-38, %v1859_v12 }
 0x816   :  { %v1850_v54 = vsub.f32 1.0, %v1849_v47  ;;  %v2017_v40 = vmul.f32 %v4563_v2, %v1846_v33  ;;  %4568 = vtanh.f32 %v1588_v58  ;;  %v1874_v33 = vand.u32 2147483648, %v5908_v4 }
 0x817   :  { %v1685_v18 = vpop.f32.mrf.mxu3  ;;  %vm1858_vm4 = vcmp.eq.f32.partialorder %v1857_v46, 8.507059e+37  ;;  %vm1868_vm6 = vweird.f32 %v5908_v4  ;;  %v1594_v46 = vadd.f32 %v5828_v34, %v5886_v45 }
 0x818   :  { %v1686_v55 = vadd.f32 %v5806_v30, %v1685_v18  ;;  %4226 = vmatmul.msk.f32.gmra.mxu2 %vm223_vm1, %v2017_v40  ;;  %v1851_v59 = vmul.f32 %v4561_v14, %v1850_v54 }
 0x819   :  { %v5918_v17 = vpop.f32.mrf.mxu1 }
 0x81a   :  { %v4565_v22 = vpop.eup %4564  ;;  %v4214_v5 = vmul.f32 -1.442695, %v1686_v55  ;;  %v1852_v1 = vadd.f32 %v4561_v14, %v1851_v59 }
 0x81b   :  { %v4567_v29 = vpop.eup %4566  ;;  %v5923_v7 = vadd.f32 1.0, %v4565_v22 }
 0x81c   :  { %v1864_v58 = vmul.f32 %v4567_v29, %v5908_v4  ;;  %4570 = vpow2.f32 %v4214_v5  ;;  %4268 = vmatmul.msk.f32.gmra.mxu1 %vm223_vm1, %v1106_v15  ;;  %4289 = vmatmul.msk.f32.gmra.mxu3 %vm223_vm1, %v1106_v15  ;;  %v1856_v49 = vsel %vm1855_vm3, %v4561_v14, %v1852_v1  ;;  %v4569_v47 = vpop.eup %4568  ;;  %vm1869_vm5 = vweird.f32 %v4567_v29  ;;  %v1112_v1 = vpop.f32.mrf.mxu2 }
 0x81d   :  { %4572 = vrcp.f32 %v5923_v7  ;;  %v1861_v23 = vsel %vm1858_vm4, %v1860_v36, %v1856_v49  ;;  %v1872_v15 = vand.u32 2147483647, %v5908_v4  ;;  %vm1870_vm8 = vmor %vm1868_vm6, %vm1869_vm5  ;;  %v1875_v5 = vor.u32 1.1754944e-38, %v1874_v33 }
 0x81e   :  { %v1865_v27 = vsub.f32 1.0, %v1864_v58  ;;  %v2018_v2 = vmul.f32 %v4569_v47, %v1861_v23  ;;  %4574 = vtanh.f32 %v1591_v13  ;;  %v1889_v23 = vand.u32 2147483648, %v5923_v7 }
 0x81f   :  { %v1688_v3 = vpop.f32.mrf.mxu3  ;;  %vm1873_vm9 = vcmp.eq.f32.partialorder %v1872_v15, 8.507059e+37  ;;  %vm1883_vm12 = vweird.f32 %v5923_v7  ;;  %v1597_v15 = vadd.f32 %v5828_v34, %v5903_v28 }
 0x820   :  { %v1689_v54 = vadd.f32 %v5806_v30, %v1688_v3  ;;  %4227 = vmatmul.msk.f32.gmra.mxu2 %vm223_vm1, %v2018_v2  ;;  %v1866_v40 = vmul.f32 %v4567_v29, %v1865_v27 }
 0x821   :  { %v5933_v14 = vpop.f32.mrf.mxu1 }
 0x822   :  { %v4571_v18 = vpop.eup %4570  ;;  %v4215_v12 = vmul.f32 -1.442695, %v1689_v54  ;;  %v1867_v55 = vadd.f32 %v4567_v29, %v1866_v40 }
 0x823   :  { %v4573_v59 = vpop.eup %4572  ;;  %v5938_v22 = vadd.f32 1.0, %v4571_v18 }
 0x824   :  { %v1879_v13 = vmul.f32 %v4573_v59, %v5923_v7  ;;  %4576 = vpow2.f32 %v4215_v12  ;;  %4269 = vmatmul.msk.f32.gmra.mxu1 %vm223_vm1, %v1109_v8  ;;  %4290 = vmatmul.msk.f32.gmra.mxu3 %vm223_vm1, %v1109_v8  ;;  %v1871_v36 = vsel %vm1870_vm8, %v4567_v29, %v1867_v55  ;;  %v4575_v58 = vpop.eup %4574  ;;  %vm1884_vm11 = vweird.f32 %v4573_v59 }
 0x825   :  { %4578 = vrcp.f32 %v5938_v22  ;;  %v1876_v4 = vsel %vm1873_vm9, %v1875_v5, %v1871_v36  ;;  %v1887_v8 = vand.u32 2147483647, %v5923_v7  ;;  %vm1885_vm13 = vmor %vm1883_vm12, %vm1884_vm11  ;;  %v1890_v12 = vor.u32 1.1754944e-38, %v1889_v23  ;;  %v4359_v23 = vld [vmem:[%s7110_s15 + $0x50] sm:$0xff] }
 0x826   :  { %v1880_v49 = vsub.f32 1.0, %v1879_v13  ;;  %v2019_v45 = vmul.f32 %v4575_v58, %v1876_v4  ;;  %4580 = vtanh.f32 %v1594_v46  ;;  %v1115_v13 = vpop.f32.mrf.mxu2  ;;  %v4381_v58 = vld [vmem:[%s7111_s17 + $0x58] sm:$0xff]  ;;  %vm1898_vm0 = vweird.f32 %v5938_v22 }
 0x827   :  { %v1691_v47 = vpop.f32.mrf.mxu3  ;;  %vm1888_vm14 = vcmp.eq.f32.partialorder %v1887_v8, 8.507059e+37  ;;  %v4360_v4 = vld [vmem:[%s7110_s15 + $0x58] sm:$0xff]  ;;  %3227 = vmatpush.msrb.mxu3 %v4381_v58 }
 0x828   :  { %v1692_v27 = vadd.f32 %v5806_v30, %v1691_v47  ;;  %4228 = vmatmul.msk.f32.gmra.mxu2 %vm223_vm1, %v2019_v45  ;;  %v1881_v2 = vmul.f32 %v4573_v59, %v1880_v49  ;;  %3136 = vmatpush.msrb.mxu1 %v4360_v4  ;;  %v1902_v47 = vand.u32 2147483647, %v5938_v22 }
 0x829   :  { %v5948_v29 = vpop.f32.mrf.mxu1 }
 0x82a   :  { %v4577_v3 = vpop.eup %4576  ;;  %v4216_v33 = vmul.f32 -1.442695, %v1692_v27  ;;  %v1882_v54 = vadd.f32 %v4573_v59, %v1881_v2  ;;  %v4380_v27 = vld [vmem:[%s7111_s17 + $0x50] sm:$0xff]  ;;  %3137 = vmatpush.msrb.mxu1 %v4359_v23  ;;  %vm1903_vm2 = vcmp.eq.f32.partialorder %v1902_v47, 8.507059e+37 }
 0x82b   :  { %v4579_v40 = vpop.eup %4578  ;;  %v5953_v18 = vadd.f32 1.0, %v4577_v3  ;;  %3228 = vmatpush.msrb.mxu3 %v4380_v27 }
 0x82c   :  { %v1894_v55 = vmul.f32 %v4579_v40, %v5938_v22  ;;  %4582 = vpow2.f32 %v4216_v33  ;;  %4270 = vmatmul.msk.f32.gmra.mxu1 %vm223_vm1, %v1112_v1  ;;  %4291 = vmatmul.msk.f32.gmra.mxu3 %vm223_vm1, %v1112_v1  ;;  %v1886_v46 = vsel %vm1885_vm13, %v4573_v59, %v1882_v54  ;;  %v4581_v5 = vpop.eup %4580  ;;  %v1904_v59 = vand.u32 2147483648, %v5938_v22  ;;  %v4358_v54 = vld [vmem:[%s7110_s15 + $0x48] sm:$0xff] }
 0x82d   :  { %4584 = vrcp.f32 %v5953_v18  ;;  %v1891_v7 = vsel %vm1888_vm14, %v1890_v12, %v1886_v46  ;;  %vm1899_vm15 = vweird.f32 %v4579_v40  ;;  %3138 = vmatpush.msrb.mxu1 %v4358_v54  ;;  %v1917_v47 = vand.u32 2147483647, %v5953_v18 }
 0x82e   :  { %v1895_v36 = vsub.f32 1.0, %v1894_v55  ;;  %v2020_v28 = vmul.f32 %v4581_v5, %v1891_v7  ;;  %4586 = vtanh.f32 %v1597_v15  ;;  %v4379_v15 = vld [vmem:[%s7111_s17 + $0x48] sm:$0xff]  ;;  %v1600_v55 = vadd.f32 %v5828_v34, %v5918_v17  ;;  %vm1900_vm7 = vmor %vm1898_vm0, %vm1899_vm15  ;;  %v4357_v17 = vld [vmem:[%s7110_s15 + $0x40] sm:$0xff] }
 0x82f   :  { %v1694_v49 = vpop.f32.mrf.mxu3  ;;  %v1905_v5 = vor.u32 1.1754944e-38, %v1904_v59  ;;  %3229 = vmatpush.msrb.mxu3 %v4379_v15  ;;  %3139 = vmatpush.msrb.mxu1 %v4357_v17  ;;  %v1919_v59 = vand.u32 2147483648, %v5953_v18  ;;  %vm1913_vm4 = vweird.f32 %v5953_v18  ;;  %v1603_v54 = vadd.f32 %v5828_v34, %v5933_v14 }
 0x830   :  { %v1695_v1 = vadd.f32 %v5806_v30, %v1694_v49  ;;  %4229 = vmatmul.msk.f32.gmra.mxu2 %vm223_vm1, %v2020_v28  ;;  %v1896_v45 = vmul.f32 %v4579_v40, %v1895_v36  ;;  %v4378_v36 = vld [vmem:[%s7111_s17 + $0x40] sm:$0xff]  ;;  %vm1918_vm6 = vcmp.eq.f32.partialorder %v1917_v47, 8.507059e+37  ;;  %v1606_v47 = vadd.f32 %v5828_v34, %v5948_v29 }
 0x831   :  { %v5975_v2 = vpop.f32.mrf.mxu1  ;;  %3230 = vmatpush.msrb.mxu3 %v4378_v36 }
 0x832   :  { %v4583_v8 = vpop.eup %4582  ;;  %v4217_v3 = vmul.f32 -1.442695, %v1695_v1  ;;  %v1897_v33 = vadd.f32 %v4579_v40, %v1896_v45 }
 0x833   :  { %v4585_v12 = vpop.eup %4584  ;;  %v5986_v46 = vadd.f32 1.0, %v4583_v8 }
 0x834   :  { %v1909_v22 = vmul.f32 %v4585_v12, %v5953_v18  ;;  %4588 = vpow2.f32 %v4217_v3  ;;  %4271 = vmatmul.msk.f32.gmra.mxu1 %vm223_vm1, %v1115_v13  ;;  %4292 = vmatmul.msk.f32.gmra.mxu3 %vm223_vm1, %v1115_v13  ;;  %v1901_v7 = vsel %vm1900_vm7, %v4579_v40, %v1897_v33  ;;  %v4587_v28 = vpop.eup %4586  ;;  %v1118_v40 = vpop.f32.mrf.mxu2  ;;  %vm1914_vm3 = vweird.f32 %v4585_v12 }
 0x835   :  { %4590 = vrcp.f32 %v5986_v46  ;;  %v1906_v58 = vsel %vm1903_vm2, %v1905_v5, %v1901_v7  ;;  %vm1915_vm5 = vmor %vm1913_vm4, %vm1914_vm3  ;;  %vm1928_vm9 = vweird.f32 %v5986_v46 }
 0x836   :  { %v1910_v4 = vsub.f32 1.0, %v1909_v22  ;;  %v2021_v49 = vmul.f32 %v4587_v28, %v1906_v58  ;;  %4592 = vtanh.f32 %v1600_v55  ;;  %v1920_v55 = vor.u32 1.1754944e-38, %v1919_v59 }
 0x837   :  { %v1697_v13 = vpop.f32.mrf.mxu3  ;;  %v1934_v28 = vand.u32 2147483648, %v5986_v46 }
 0x838   :  { %v1698_v1 = vadd.f32 %v5806_v30, %v1697_v13  ;;  %4230 = vmatmul.msk.f32.gmra.mxu2 %vm223_vm1, %v2021_v49  ;;  %v1911_v45 = vmul.f32 %v4585_v12, %v1910_v4  ;;  %v1932_v49 = vand.u32 2147483647, %v5986_v46 }
 0x839   :  { %v6003_v23 = vpop.f32.mrf.mxu1 }
 0x83a   :  { %v4589_v27 = vpop.eup %4588  ;;  %v4218_v8 = vmul.f32 -1.442695, %v1698_v1  ;;  %v1912_v3 = vadd.f32 %v4585_v12, %v1911_v45  ;;  %vm1933_vm12 = vcmp.eq.f32.partialorder %v1932_v49, 8.507059e+37  ;;  %v1609_v49 = vadd.f32 %v5828_v34, %v5975_v2 }
 0x83b   :  { %v4591_v33 = vpop.eup %4590  ;;  %v6008_v15 = vadd.f32 1.0, %v4589_v27 }
 0x83c   :  { %v1924_v5 = vmul.f32 %v4591_v33, %v5986_v46  ;;  %4594 = vpow2.f32 %v4218_v8  ;;  %4272 = vmatmul.msk.f32.gmra.mxu1 %vm223_vm1, %v1118_v40  ;;  %4293 = vmatmul.msk.f32.gmra.mxu3 %vm223_vm1, %v1118_v40  ;;  %v1916_v22 = vsel %vm1915_vm5, %v4585_v12, %v1912_v3  ;;  %v4593_v7 = vpop.eup %4592  ;;  %vm1929_vm8 = vweird.f32 %v4591_v33  ;;  %v1121_v13 = vpop.f32.mrf.mxu2 }
 0x83d   :  { %4596 = vrcp.f32 %v6008_v15  ;;  %v1921_v18 = vsel %vm1918_vm6, %v1920_v55, %v1916_v22  ;;  %vm1930_vm11 = vmor %vm1928_vm9, %vm1929_vm8  ;;  %v1935_v8 = vor.u32 1.1754944e-38, %v1934_v28  ;;  %vm1943_vm14 = vweird.f32 %v6008_v15 }
 0x83e   :  { %v1925_v17 = vsub.f32 1.0, %v1924_v5  ;;  %v2022_v36 = vmul.f32 %v4593_v7, %v1921_v18  ;;  %4598 = vtanh.f32 %v1603_v54  ;;  %v1949_v7 = vand.u32 2147483648, %v6008_v15 }
 0x83f   :  { %v1700_v14 = vpop.f32.mrf.mxu3 }
 0x840   :  { %v1701_v58 = vadd.f32 %v5806_v30, %v1700_v14  ;;  %4231 = vmatmul.msk.f32.gmra.mxu2 %vm223_vm1, %v2022_v36  ;;  %v1926_v4 = vmul.f32 %v4591_v33, %v1925_v17  ;;  %v1947_v36 = vand.u32 2147483647, %v6008_v15 }
 0x841   :  { %v6018_v12 = vpop.f32.mrf.mxu1 }
 0x842   :  { %v4595_v40 = vpop.eup %4594  ;;  %v4219_v59 = vmul.f32 -1.442695, %v1701_v58  ;;  %v1927_v1 = vadd.f32 %v4591_v33, %v1926_v4  ;;  %vm1948_vm0 = vcmp.eq.f32.partialorder %v1947_v36, 8.507059e+37 }
 0x843   :  { %v4597_v45 = vpop.eup %4596  ;;  %v6023_v27 = vadd.f32 1.0, %v4595_v40  ;;  %v1950_v40 = vor.u32 1.1754944e-38, %v1949_v7  ;;  %v4315_v7 = vld [vmem:[%s7114_s19 + $0x38] sm:$0xff] }
 0x844   :  { %v1939_v3 = vmul.f32 %v4597_v45, %v6008_v15  ;;  %4600 = vpow2.f32 %v4219_v59  ;;  %4273 = vmatmul.msk.f32.gmra.mxu1 %vm223_vm1, %v1121_v13  ;;  %4294 = vmatmul.msk.f32.gmra.mxu3 %vm223_vm1, %v1121_v13  ;;  %v1931_v54 = vsel %vm1930_vm11, %v4591_v33, %v1927_v1  ;;  %v4599_v55 = vpop.eup %4598  ;;  %vm1944_vm13 = vweird.f32 %v4597_v45 }
 0x845   :  { %4602 = vrcp.f32 %v6023_v27  ;;  %v1936_v46 = vsel %vm1933_vm12, %v1935_v8, %v1931_v54  ;;  %vm1945_vm15 = vmor %vm1943_vm14, %vm1944_vm13  ;;  %v1964_v54 = vand.u32 2147483648, %v6023_v27  ;;  %vm1958_vm2 = vweird.f32 %v6023_v27  ;;  %2907 = vmatpush.msrb.mxu2 %v4315_v7 }
 0x846   :  { %v1940_v5 = vsub.f32 1.0, %v1939_v3  ;;  %v2023_v22 = vmul.f32 %v4599_v55, %v1936_v46  ;;  %4604 = vtanh.f32 %v1606_v47 }
 0x847   :  { %v1703_v29 = vpop.f32.mrf.mxu3  ;;  %v1965_v36 = vor.u32 1.1754944e-38, %v1964_v54  ;;  %v2187_v54 = vld [vmem:[%s7116_s21 + $0x28] sm:$0xff] }
 0x848   :  { %v1704_v18 = vadd.f32 %v5806_v30, %v1703_v29  ;;  %4232 = vmatmul.msk.f32.gmra.mxu2 %vm223_vm1, %v2023_v22  ;;  %v1941_v17 = vmul.f32 %v4597_v45, %v1940_v5 }
 0x849   :  { %v6033_v33 = vpop.f32.mrf.mxu1 }
 0x84a   :  { %v4601_v14 = vpop.eup %4600  ;;  %v4220_v28 = vmul.f32 -1.442695, %v1704_v18  ;;  %v1942_v58 = vadd.f32 %v4597_v45, %v1941_v17 }
 0x84b   :  { %v4603_v4 = vpop.eup %4602  ;;  %v6038_v13 = vadd.f32 1.0, %v4601_v14 }
 0x84c   :  { %v1954_v59 = vmul.f32 %v4603_v4, %v6023_v27  ;;  %4606 = vpow2.f32 %v4220_v28  ;;  %4274 = vmatmul.msk.f32.gmra.mxu1 %vm223_vm1, %v5518_v24  ;;  %4295 = vmatmul.msk.f32.gmra.mxu3 %vm223_vm1, %v5518_v24  ;;  %v1946_v1 = vsel %vm1945_vm15, %v4597_v45, %v1942_v58  ;;  %v4605_v15 = vpop.eup %4604  ;;  %vm1959_vm7 = vweird.f32 %v4603_v4  ;;  %v2189_v28 = vld [vmem:[%s7116_s21 + $0x38] sm:$0xff]  ;;  %v4314_v58 = vld [vmem:[%s7114_s19 + $0x30] sm:$0xff] }
 0x84d   :  { %4608 = vrcp.f32 %v6038_v13  ;;  %v1951_v47 = vsel %vm1948_vm0, %v1950_v40, %v1946_v1  ;;  %v1962_v24 = vand.u32 2147483647, %v6023_v27  ;;  %vm1960_vm3 = vmor %vm1958_vm2, %vm1959_vm7  ;;  %v6068_v27 = vld [vmem:[%s7113_s18 + $0x1] ss:$0 sm:$0xff]  ;;  %2246 = vmatpush.msrb.mxu0 %v2189_v28  ;;  %2908 = vmatpush.msrb.mxu2 %v4314_v58  ;;  %v4313_v1 = vld [vmem:[%s7114_s19 + $0x28] sm:$0xff]  ;;  %vm1973_vm6 = vweird.f32 %v6038_v13 }
 0x84e   :  { %v1955_v2 = vsub.f32 1.0, %v1954_v59  ;;  %v2024_v8 = vmul.f32 %v4605_v15, %v1951_v47  ;;  %4610 = vtanh.f32 %v1609_v49  ;;  %v1979_v47 = vand.u32 2147483648, %v6038_v13 }
 0x84f   :  { %v1706_v3 = vpop.f32.mrf.mxu3  ;;  %vm1963_vm4 = vcmp.eq.f32.partialorder %v1962_v24, 8.507059e+37  ;;  %2909 = vmatpush.msrb.mxu2 %v4313_v1  ;;  %v2183_v1 = vld [vmem:[%s7116_s21 + $0x8] sm:$0xff] }
 0x850   :  { %v1707_v55 = vadd.f32 %v5806_v30, %v1706_v3  ;;  %4233 = vmatmul.msk.f32.gmra.mxu2 %vm223_vm1, %v2024_v8  ;;  %v1956_v46 = vmul.f32 %v4603_v4, %v1955_v2  ;;  %v1612_v30 = vadd.f32 %v5828_v34, %v6003_v23  ;;  %v1977_v3 = vand.u32 2147483647, %v6038_v13 }
 0x851   :  { %v6050_v45 = vpop.f32.mrf.mxu1 }
 0x852   :  { %v4607_v5 = vpop.eup %4606  ;;  %v4221_v22 = vmul.f32 -1.442695, %v1707_v55  ;;  %v1957_v29 = vadd.f32 %v4603_v4, %v1956_v46  ;;  %v4312_v55 = vld [vmem:[%s7114_s19 + $0x20] sm:$0xff]  ;;  %vm1978_vm9 = vcmp.eq.f32.partialorder %v1977_v3, 8.507059e+37 }
 0x853   :  { %v4609_v18 = vpop.eup %4608  ;;  %v6058_v17 = vadd.f32 1.0, %v4607_v5  ;;  %2910 = vmatpush.msrb.mxu2 %v4312_v55 }
 0x854   :  { %v1969_v14 = vmul.f32 %v4609_v18, %v6038_v13  ;;  %4612 = vpow2.f32 %v4221_v22  ;;  %4362 = vmatmul.msk.f32.vlgmr.msrb.gmra.mxu1 %vm223_vm1, %v5638_v50  ;;  %4383 = vmatmul.msk.f32.vlgmr.msrb.gmra.mxu3 %vm223_vm1, %v5638_v50  ;;  %v1961_v23 = vsel %vm1960_vm3, %v4603_v4, %v1957_v29  ;;  %v4611_v49 = vpop.eup %4610  ;;  %v2188_v4 = vld [vmem:[%s7116_s21 + $0x30] sm:$0xff]  ;;  %vm1974_vm5 = vweird.f32 %v4609_v18  ;;  %v2186_v29 = vld [vmem:[%s7116_s21 + $0x20] sm:$0xff] }
 0x855   :  { %4614 = vrcp.f32 %v6058_v17  ;;  %v1966_v40 = vsel %vm1963_vm4, %v1965_v36, %v1961_v23  ;;  %2247 = vmatpush.msrb.mxu0 %v2188_v4  ;;  %vm1975_vm8 = vmor %vm1973_vm6, %vm1974_vm5  ;;  %v1994_v4 = vand.u32 2147483648, %v6058_v17  ;;  %vm1988_vm12 = vweird.f32 %v6058_v17 }
 0x856   :  { %v1970_v50 = vsub.f32 1.0, %v1969_v14  ;;  %v2025_v59 = vmul.f32 %v4611_v49, %v1966_v40  ;;  %4616 = vtanh.f32 %v1612_v30  ;;  %v1615_v30 = vadd.f32 %v5828_v34, %v6018_v12  ;;  %v2185_v12 = vld [vmem:[%s7116_s21 + $0x18] sm:$0xff] }
 0x857   :  { %v2469_v15 = vpop.f32.mrf.mxu3  ;;  %2248 = vmatpush.msrb.mxu0 %v2187_v54  ;;  %v1980_v14 = vor.u32 1.1754944e-38, %v1979_v47  ;;  %v1992_v47 = vand.u32 2147483647, %v6058_v17  ;;  %v2182_v54 = vld [vmem:[%s7116_s21] sm:$0xff] }
 0x858   :  { %v2470_v2 = vadd.f32 %v6068_v27, %v2469_v15  ;;  %4234 = vmatmul.msk.f32.gmra.mxu2 %vm223_vm1, %v2025_v59  ;;  %v1971_v8 = vmul.f32 %v4609_v18, %v1970_v50  ;;  %v2184_v50 = vld [vmem:[%s7116_s21 + $0x10] sm:$0xff] }
 0x859   :  { %v6093_v46 = vpop.f32.mrf.mxu1  ;;  %2249 = vmatpush.msrb.mxu0 %v2186_v29  ;;  %v1995_v29 = vor.u32 1.1754944e-38, %v1994_v4  ;;  %vm1993_vm14 = vcmp.eq.f32.partialorder %v1992_v47, 8.507059e+37 }
 0x85a   :  { %v4613_v24 = vpop.eup %4612  ;;  %v4296_v5 = vmul.f32 -1.442695, %v2470_v2  ;;  %v1972_v22 = vadd.f32 %v4609_v18, %v1971_v8 }
 0x85b   :  { %v4615_v7 = vpop.eup %4614  ;;  %v6101_v36 = vadd.f32 1.0, %v4613_v24  ;;  %2250 = vmatpush.msrb.mxu0 %v2185_v12  ;;  %v1618_v24 = vadd.f32 %v5828_v34, %v6033_v33 }
 0x85c   :  { %v1984_v23 = vmul.f32 %v4615_v7, %v6058_v17  ;;  %4618 = vpow2.f32 %v4296_v5  ;;  %4363 = vmatmul.msk.f32.gmra.mxu1 %vm223_vm1, %v5648_v48  ;;  %4384 = vmatmul.msk.f32.gmra.mxu3 %vm223_vm1, %v5648_v48  ;;  %v1976_v13 = vsel %vm1975_vm8, %v4609_v18, %v1972_v22  ;;  %v4617_v28 = vpop.eup %4616  ;;  %vm1989_vm11 = vweird.f32 %v4615_v7 }
 0x85d   :  { %4620 = vrcp.f32 %v6101_v36  ;;  %v1981_v58 = vsel %vm1978_vm9, %v1980_v14, %v1976_v13  ;;  %2251 = vmatpush.msrb.mxu0 %v2184_v50  ;;  %vm1990_vm13 = vmor %vm1988_vm12, %vm1989_vm11  ;;  %v6142_v14 = vld [vmem:[%s7112_s16 + $0x1] ss:$0 sm:$0xff]  ;;  %v2009_v12 = vand.u32 2147483648, %v6101_v36  ;;  %vm2003_vm0 = vweird.f32 %v6101_v36 }
 0x85e   :  { %v1985_v49 = vsub.f32 1.0, %v1984_v23  ;;  %v2026_v40 = vmul.f32 %v4617_v28, %v1981_v58  ;;  %4622 = vtanh.f32 %v1615_v30  ;;  %v2007_v28 = vand.u32 2147483647, %v6101_v36 }
 0x85f   :  { %v2472_v59 = vpop.f32.mrf.mxu3  ;;  %2252 = vmatpush.msrb.mxu0 %v2183_v1  ;;  %v2010_v4 = vor.u32 1.1754944e-38, %v2009_v12 }
 0x860   :  { %v2473_v48 = vadd.f32 %v6068_v27, %v2472_v59  ;;  %4235 = vmatmul.msk.f32.gmra.mxu2 %vm223_vm1, %v2026_v40  ;;  %v1986_v18 = vmul.f32 %v4615_v7, %v1985_v49  ;;  %vm2008_vm2 = vcmp.eq.f32.partialorder %v2007_v28, 8.507059e+37 }
 0x861   :  { %v6122_v15 = vpop.f32.mrf.mxu1  ;;  %2253 = vmatpush.msrb.mxu0 %v2182_v54 }
 0x862   :  { %v4619_v2 = vpop.eup %4618  ;;  %v4297_v8 = vmul.f32 -1.442695, %v2473_v48  ;;  %v1987_v3 = vadd.f32 %v4615_v7, %v1986_v18  ;;  %v2379_v48 = vadd.f32 %v6142_v14, %v6050_v45 }
 0x863   :  { %v4621_v55 = vpop.eup %4620  ;;  %v6131_v5 = vadd.f32 1.0, %v4619_v2 }
 0x864   :  { %v1999_v22 = vmul.f32 %v4621_v55, %v6101_v36  ;;  %4624 = vpow2.f32 %v4297_v8  ;;  %4364 = vmatmul.msk.f32.gmra.mxu1 %vm223_vm1, %v5658_v51  ;;  %4385 = vmatmul.msk.f32.gmra.mxu3 %vm223_vm1, %v5658_v51  ;;  %v1991_v17 = vsel %vm1990_vm13, %v4615_v7, %v1987_v3  ;;  %v4623_v30 = vpop.eup %4622  ;;  %vm2004_vm15 = vweird.f32 %v4621_v55 }
 0x865   :  { %4626 = vrcp.f32 %v6131_v5  ;;  %v1996_v33 = vsel %vm1993_vm14, %v1995_v29, %v1991_v17  ;;  %vm2005_vm7 = vmor %vm2003_vm0, %vm2004_vm15  ;;  %v2592_v3 = vand.u32 2147483648, %v6131_v5  ;;  %vm2586_vm4 = vweird.f32 %v6131_v5 }
 0x866   :  { %v2000_v34 = vsub.f32 1.0, %v1999_v22  ;;  %4628 = vtanh.f32 %v1618_v24  ;;  %v2027_v13 = vmul.f32 %v4623_v30, %v1996_v33  ;;  %v2590_v22 = vand.u32 2147483647, %v6131_v5 }
 0x867   :  { %v2475_v23 = vpop.f32.mrf.mxu3  ;;  %v2593_v33 = vor.u32 1.1754944e-38, %v2592_v3 }
 0x868   :  { %v2476_v51 = vadd.f32 %v6068_v27, %v2475_v23  ;;  %v2001_v7 = vmul.f32 %v4621_v55, %v2000_v34  ;;  %4236 = vmatmul.msk.f32.gmra.mxu2 %vm223_vm1, %v2027_v13  ;;  %v2382_v23 = vadd.f32 %v6142_v14, %v6093_v46  ;;  %vm2591_vm6 = vcmp.eq.f32.partialorder %v2590_v22, 8.507059e+37 }
 0x869   :  { %v6148_v58 = vpop.f32.mrf.mxu1 }
 0x86a   :  { %v4625_v49 = vpop.eup %4624  ;;  %v4298_v40 = vmul.f32 -1.442695, %v2476_v51  ;;  %v2002_v50 = vadd.f32 %v4621_v55, %v2001_v7 }
 0x86b   :  { %v4627_v59 = vpop.eup %4626  ;;  %v6153_v18 = vadd.f32 1.0, %v4625_v49 }
 0x86c   :  { %v2582_v1 = vmul.f32 %v4627_v59, %v6131_v5  ;;  %4630 = vpow2.f32 %v4298_v40  ;;  %4365 = vmatmul.msk.f32.gmra.mxu1 %vm223_vm1, %v5668_v60  ;;  %4386 = vmatmul.msk.f32.gmra.mxu3 %vm223_vm1, %v5668_v60  ;;  %v2006_v47 = vsel %vm2005_vm7, %v4621_v55, %v2002_v50  ;;  %v4629_v36 = vpop.eup %4628  ;;  %vm2587_vm3 = vweird.f32 %v4627_v59 }
 0x86d   :  { %4632 = vrcp.f32 %v6153_v18  ;;  %v2011_v2 = vsel %vm2008_vm2, %v2010_v4, %v2006_v47  ;;  %vm2588_vm5 = vmor %vm2586_vm4, %vm2587_vm3  ;;  %v2605_v40 = vand.u32 2147483647, %v6153_v18  ;;  %v2607_v50 = vand.u32 2147483648, %v6153_v18 }
 0x86e   :  { %v2583_v45 = vsub.f32 1.0, %v2582_v1  ;;  %v2028_v8 = vmul.f32 %v4629_v36, %v2011_v2  ;;  %4634 = vtanh.f32 %v2379_v48  ;;  %v6184_v48 = vld [vmem:[%s7115_s20] ss:$0 sm:$0xff]  ;;  %vm2601_vm9 = vweird.f32 %v6153_v18 }
 0x86f   :  { %v2478_v54 = vpop.f32.mrf.mxu3  ;;  %vm2606_vm12 = vcmp.eq.f32.partialorder %v2605_v40, 8.507059e+37 }
 0x870   :  { %v2584_v24 = vmul.f32 %v4627_v59, %v2583_v45  ;;  %v2479_v17 = vadd.f32 %v6068_v27, %v2478_v54  ;;  %4237 = vmatmul.msk.f32.gmra.mxu2 %vm223_vm1, %v2028_v8  ;;  %v2385_v45 = vadd.f32 %v6142_v14, %v6122_v15  ;;  %v2608_v54 = vor.u32 1.1754944e-38, %v2607_v50 }
 0x871   :  { %v6165_v60 = vpop.f32.mrf.mxu1  ;;  %v2388_v50 = vadd.f32 %v6142_v14, %v6148_v58 }
 0x872   :  { %v4631_v55 = vpop.eup %4630  ;;  %v2585_v29 = vadd.f32 %v4627_v59, %v2584_v24  ;;  %v4299_v30 = vmul.f32 -1.442695, %v2479_v17  ;;  %v1436_v24 = vpop.permute.xlu2 %1435 }
 0x873   :  { %v4633_v34 = vpop.eup %4632  ;;  %v6170_v13 = vadd.f32 1.0, %v4631_v55 }
 0x874   :  { %v2589_v12 = vsel %vm2588_vm5, %v4627_v59, %v2585_v29  ;;  %v2597_v51 = vmul.f32 %v4633_v34, %v6153_v18  ;;  %4636 = vpow2.f32 %v4299_v30  ;;  %4366 = vmatmul.msk.f32.gmra.mxu1 %vm223_vm1, %v5678_v62  ;;  %4387 = vmatmul.msk.f32.gmra.mxu3 %vm223_vm1, %v5678_v62  ;;  %v4635_v5 = vpop.eup %4634  ;;  %vm2602_vm8 = vweird.f32 %v4633_v34 }
 0x875   :  { %4638 = vrcp.f32 %v6170_v13  ;;  %v2594_v7 = vsel %vm2591_vm6, %v2593_v33, %v2589_v12  ;;  %vm2603_vm11 = vmor %vm2601_vm9, %vm2602_vm8  ;;  %vm2616_vm14 = vweird.f32 %v6170_v13 }
 0x876   :  { %v2598_v28 = vsub.f32 1.0, %v2597_v51  ;;  %v2821_v49 = vmul.f32 %v4635_v5, %v2594_v7  ;;  %4640 = vtanh.f32 %v2382_v23  ;;  %v6203_v23 = vsel %vm223_vm1, %v4995_v16, %v1436_v24 }
 0x877   :  { %v2481_v46 = vpop.f32.mrf.mxu3  ;;  %v2620_v51 = vand.u32 2147483647, %v6170_v13  ;;  %v2622_v5 = vand.u32 2147483648, %v6170_v13 }
 0x878   :  { %v2482_v59 = vadd.f32 %v6068_v27, %v2481_v46  ;;  %v2599_v62 = vmul.f32 %v4633_v34, %v2598_v28  ;;  %4317 = vmatmul.msk.f32.vlgmr.msrb.gmra.mxu2 %vm223_vm1, %v2821_v49 }
 0x879   :  { %v6187_v4 = vpop.f32.mrf.mxu1  ;;  %vm2621_vm0 = vcmp.eq.f32.partialorder %v2620_v51, 8.507059e+37 }
 0x87a   :  { %v4637_v1 = vpop.eup %4636  ;;  %v4300_v47 = vmul.f32 -1.442695, %v2482_v59  ;;  %v2600_v36 = vadd.f32 %v4633_v34, %v2599_v62 }
 0x87b   :  { %v4639_v2 = vpop.eup %4638  ;;  %v6192_v8 = vadd.f32 1.0, %v4637_v1  ;;  %v2102_v3 = vpop.f32.mrf.mxu2  ;;  %v2623_v1 = vor.u32 1.1754944e-38, %v2622_v5  ;;  %v2391_v5 = vadd.f32 %v6142_v14, %v6165_v60 }
 0x87c   :  { %v2612_v22 = vmul.f32 %v4639_v2, %v6170_v13  ;;  %4642 = vpow2.f32 %v4300_v47  ;;  %v2103_v17 = vadd.f32 %v6184_v48, %v2102_v3  ;;  %4367 = vmatmul.msk.f32.gmra.mxu1 %vm223_vm1, %v5690_v63  ;;  %4388 = vmatmul.msk.f32.gmra.mxu3 %vm223_vm1, %v5690_v63  ;;  %v2604_v18 = vsel %vm2603_vm11, %v4633_v34, %v2600_v36  ;;  %v4641_v15 = vpop.eup %4640  ;;  %v1438_v47 = vpop.permute.xlu0 %1437 }
 0x87d   :  { %4644 = vrcp.f32 %v6192_v8  ;;  %v2609_v55 = vsel %vm2606_vm12, %v2608_v54, %v2604_v18  ;;  %vm2617_vm13 = vweird.f32 %v4639_v2  ;;  %vm2631_vm2 = vweird.f32 %v6192_v8 }
 0x87e   :  { %v2613_v29 = vsub.f32 1.0, %v2612_v22  ;;  %v2150_v30 = vmax.f32 %v2103_v17, 0.0  ;;  %v2822_v33 = vmul.f32 %v4641_v15, %v2609_v55  ;;  %4646 = vtanh.f32 %v2385_v45  ;;  %vm2618_vm15 = vmor %vm2616_vm14, %vm2617_vm13 }
 0x87f   :  { %v2484_v12 = vpop.f32.mrf.mxu3  ;;  %v6227_v17 = vsel %vm223_vm1, %v5004_v21, %v1438_v47  ;;  %v2635_v15 = vand.u32 2147483647, %v6192_v8  ;;  %v2637_v55 = vand.u32 2147483648, %v6192_v8 }
 0x880   :  { %v2166_v63 = vmul.f32 %v2150_v30, %v6203_v23  ;;  %v2485_v34 = vadd.f32 %v6068_v27, %v2484_v12  ;;  %v2614_v7 = vmul.f32 %v4639_v2, %v2613_v29  ;;  %4318 = vmatmul.msk.f32.gmra.mxu2 %vm223_vm1, %v2822_v33 }
 0x881   :  { %v6210_v28 = vpop.f32.mrf.mxu1  ;;  %vm2636_vm4 = vcmp.eq.f32.partialorder %v2635_v15, 8.507059e+37  ;;  %v2394_v15 = vadd.f32 %v6142_v14, %v6187_v4 }
 0x882   :  { %v4643_v49 = vpop.eup %4642  ;;  %v4301_v46 = vmul.f32 -1.442695, %v2485_v34  ;;  %4238 = vmatmul.msk.f32.vlgmr.msrb.gmra.mxu0 %vm912_vm10, %v2166_v63  ;;  %v2615_v16 = vadd.f32 %v4639_v2, %v2614_v7  ;;  %v2638_v7 = vor.u32 1.1754944e-38, %v2637_v55 }
 0x883   :  { %v4645_v40 = vpop.eup %4644  ;;  %v6216_v59 = vadd.f32 1.0, %v4643_v49  ;;  %v2105_v62 = vpop.f32.mrf.mxu2 }
 0x884   :  { %v2627_v36 = vmul.f32 %v4645_v40, %v6192_v8  ;;  %4648 = vpow2.f32 %v4301_v46  ;;  %v2106_v45 = vadd.f32 %v6184_v48, %v2105_v62  ;;  %4368 = vmatmul.msk.f32.gmra.mxu1 %vm223_vm1, %v5702_v53  ;;  %4389 = vmatmul.msk.f32.gmra.mxu3 %vm223_vm1, %v5702_v53  ;;  %v2619_v13 = vsel %vm2618_vm15, %v4639_v2, %v2615_v16  ;;  %v4647_v58 = vpop.eup %4646  ;;  %v1440_v49 = vpop.permute.xlu1 %1439 }
 0x885   :  { %4650 = vrcp.f32 %v6216_v59  ;;  %v2624_v3 = vsel %vm2621_vm0, %v2623_v1, %v2619_v13  ;;  %vm2632_vm7 = vweird.f32 %v4645_v40  ;;  %v2650_v13 = vand.u32 2147483647, %v6216_v59 }
 0x886   :  { %v2628_v54 = vsub.f32 1.0, %v2627_v36  ;;  %v2151_v24 = vmax.f32 %v2106_v45, 0.0  ;;  %v2823_v22 = vmul.f32 %v4647_v58, %v2624_v3  ;;  %4652 = vtanh.f32 %v2388_v50  ;;  %vm2633_vm3 = vmor %vm2631_vm2, %vm2632_vm7 }
 0x887   :  { %v2487_v18 = vpop.f32.mrf.mxu3  ;;  %v6251_v36 = vsel %vm223_vm1, %v5013_v26, %v1440_v49  ;;  %v2652_v58 = vand.u32 2147483648, %v6216_v59  ;;  %vm2646_vm6 = vweird.f32 %v6216_v59  ;;  %vm2651_vm9 = vcmp.eq.f32.partialorder %v2650_v13, 8.507059e+37 }
 0x888   :  { %v2167_v53 = vmul.f32 %v2151_v24, %v6227_v17  ;;  %v2488_v2 = vadd.f32 %v6068_v27, %v2487_v18  ;;  %v2629_v29 = vmul.f32 %v4645_v40, %v2628_v54  ;;  %4319 = vmatmul.msk.f32.gmra.mxu2 %vm223_vm1, %v2823_v22 }
 0x889   :  { %v6234_v30 = vpop.f32.mrf.mxu1 }
 0x88a   :  { %v4649_v33 = vpop.eup %4648  ;;  %v4302_v12 = vmul.f32 -1.442695, %v2488_v2  ;;  %4239 = vmatmul.msk.f32.gmra.mxu0 %vm912_vm10, %v2167_v53  ;;  %v2630_v21 = vadd.f32 %v4645_v40, %v2629_v29  ;;  %v2653_v2 = vor.u32 1.1754944e-38, %v2652_v58  ;;  %v1442_v29 = vpop.permute.xlu2 %1441 }
 0x88b   :  { %v4651_v51 = vpop.eup %4650  ;;  %v6240_v63 = vadd.f32 1.0, %v4649_v33  ;;  %v2108_v34 = vpop.f32.mrf.mxu2  ;;  %v6275_v49 = vsel %vm223_vm1, %v5022_v31, %v1442_v29 }
 0x88c   :  { %v2642_v46 = vmul.f32 %v4651_v51, %v6216_v59  ;;  %4654 = vpow2.f32 %v4302_v12  ;;  %v2109_v16 = vadd.f32 %v6184_v48, %v2108_v34  ;;  %4369 = vmatmul.msk.f32.gmra.mxu1 %vm223_vm1, %v5688_v56  ;;  %4390 = vmatmul.msk.f32.gmra.mxu3 %vm223_vm1, %v5688_v56  ;;  %v2634_v8 = vsel %vm2633_vm3, %v4645_v40, %v2630_v21  ;;  %v4653_v60 = vpop.eup %4652 }
 0x88d   :  { %4656 = vrcp.f32 %v6240_v63  ;;  %v2639_v50 = vsel %vm2636_vm4, %v2638_v7, %v2634_v8  ;;  %vm2647_vm5 = vweird.f32 %v4651_v51  ;;  %v2667_v8 = vand.u32 2147483648, %v6240_v63 }
 0x88e   :  { %v2643_v62 = vsub.f32 1.0, %v2642_v46  ;;  %v2152_v1 = vmax.f32 %v2109_v16, 0.0  ;;  %v2824_v47 = vmul.f32 %v4653_v60, %v2639_v50  ;;  %4658 = vtanh.f32 %v2391_v5  ;;  %vm2648_vm8 = vmor %vm2646_vm6, %vm2647_vm5 }
 0x88f   :  { %v2490_v45 = vpop.f32.mrf.mxu3  ;;  %v2665_v16 = vand.u32 2147483647, %v6240_v63  ;;  %vm2661_vm12 = vweird.f32 %v6240_v63 }
 0x890   :  { %v2168_v56 = vmul.f32 %v2152_v1, %v6251_v36  ;;  %v2491_v40 = vadd.f32 %v6068_v27, %v2490_v45  ;;  %v2644_v3 = vmul.f32 %v4651_v51, %v2643_v62  ;;  %4320 = vmatmul.msk.f32.gmra.mxu2 %vm223_vm1, %v2824_v47  ;;  %v2397_v45 = vadd.f32 %v6142_v14, %v6210_v28 }
 0x891   :  { %v6258_v54 = vpop.f32.mrf.mxu1  ;;  %vm2666_vm14 = vcmp.eq.f32.partialorder %v2665_v16, 8.507059e+37 }
 0x892   :  { %v4655_v24 = vpop.eup %4654  ;;  %v4303_v22 = vmul.f32 -1.442695, %v2491_v40  ;;  %4240 = vmatmul.msk.f32.gmra.mxu0 %vm912_vm10, %v2168_v56  ;;  %v2645_v26 = vadd.f32 %v4651_v51, %v2644_v3  ;;  %v2668_v56 = vor.u32 1.1754944e-38, %v2667_v8  ;;  %v1444_v40 = vpop.permute.xlu0 %1443 }
 0x893   :  { %v4657_v18 = vpop.eup %4656  ;;  %v6264_v55 = vadd.f32 1.0, %v4655_v24  ;;  %v2111_v53 = vpop.f32.mrf.mxu2 }
 0x894   :  { %v2657_v33 = vmul.f32 %v4657_v18, %v6240_v63  ;;  %4660 = vpow2.f32 %v4303_v22  ;;  %v2112_v12 = vadd.f32 %v6184_v48, %v2111_v53  ;;  %4370 = vmatmul.msk.f32.gmra.mxu1 %vm223_vm1, %v5700_v57  ;;  %4391 = vmatmul.msk.f32.gmra.mxu3 %vm223_vm1, %v5700_v57  ;;  %v2649_v59 = vsel %vm2648_vm8, %v4651_v51, %v2645_v26  ;;  %v4659_v4 = vpop.eup %4658 }
 0x895   :  { %4662 = vrcp.f32 %v6264_v55  ;;  %v2654_v21 = vsel %vm2651_vm9, %v2653_v2, %v2649_v59  ;;  %vm2662_vm11 = vweird.f32 %v4657_v18  ;;  %v6299_v2 = vsel %vm223_vm1, %v5027_v35, %v1444_v40 }
 0x896   :  { %v2658_v5 = vsub.f32 1.0, %v2657_v33  ;;  %v2153_v34 = vmax.f32 %v2112_v12, 0.0  ;;  %v2825_v7 = vmul.f32 %v4659_v4, %v2654_v21  ;;  %4664 = vtanh.f32 %v2394_v15  ;;  %vm2663_vm13 = vmor %vm2661_vm12, %vm2662_vm11 }
 0x897   :  { %v2493_v46 = vpop.f32.mrf.mxu3  ;;  %v2680_v33 = vand.u32 2147483647, %v6264_v55  ;;  %v2682_v12 = vand.u32 2147483648, %v6264_v55  ;;  %vm2676_vm0 = vweird.f32 %v6264_v55 }
 0x898   :  { %v2169_v57 = vmul.f32 %v2153_v34, %v6275_v49  ;;  %v2494_v51 = vadd.f32 %v6068_v27, %v2493_v46  ;;  %v2659_v60 = vmul.f32 %v4657_v18, %v2658_v5  ;;  %4321 = vmatmul.msk.f32.gmra.mxu2 %vm223_vm1, %v2825_v7  ;;  %v2400_v7 = vadd.f32 %v6142_v14, %v6234_v30 }
 0x899   :  { %v6282_v50 = vpop.f32.mrf.mxu1  ;;  %vm2681_vm2 = vcmp.eq.f32.partialorder %v2680_v33, 8.507059e+37  ;;  %v2683_v8 = vor.u32 1.1754944e-38, %v2682_v12  ;;  %v1448_v12 = vpop.permute.xlu1 %1447 }
 0x89a   :  { %v4661_v62 = vpop.eup %4660  ;;  %v4304_v1 = vmul.f32 -1.442695, %v2494_v51  ;;  %4241 = vmatmul.msk.f32.gmra.mxu0 %vm912_vm10, %v2169_v57  ;;  %v2660_v31 = vadd.f32 %v4657_v18, %v2659_v60  ;;  %v1446_v57 = vpop.permute.xlu2 %1445 }
 0x89b   :  { %v4663_v47 = vpop.eup %4662  ;;  %v6288_v13 = vadd.f32 1.0, %v4661_v62  ;;  %v2114_v58 = vpop.f32.mrf.mxu2 }
 0x89c   :  { %v2672_v3 = vmul.f32 %v4663_v47, %v6264_v55  ;;  %4666 = vpow2.f32 %v4304_v1  ;;  %v2115_v24 = vadd.f32 %v6184_v48, %v2114_v58  ;;  %4371 = vmatmul.msk.f32.gmra.mxu1 %vm223_vm1, %v5712_v37  ;;  %4392 = vmatmul.msk.f32.gmra.mxu3 %vm223_vm1, %v5712_v37  ;;  %v2664_v63 = vsel %vm2663_vm13, %v4657_v18, %v2660_v31  ;;  %v4665_v28 = vpop.eup %4664 }
 0x89d   :  { %4668 = vrcp.f32 %v6288_v13  ;;  %v2669_v22 = vsel %vm2666_vm14, %v2668_v56, %v2664_v63  ;;  %vm2677_vm15 = vweird.f32 %v4663_v47  ;;  %v6323_v58 = vsel %vm223_vm1, %v5032_v39, %v1446_v57 }
 0x89e   :  { %v2673_v26 = vsub.f32 1.0, %v2672_v3  ;;  %v2154_v15 = vmax.f32 %v2115_v24, 0.0  ;;  %v2826_v53 = vmul.f32 %v4665_v28, %v2669_v22  ;;  %4670 = vtanh.f32 %v2397_v45  ;;  %vm2678_vm7 = vmor %vm2676_vm0, %vm2677_vm15 }
 0x89f   :  { %v2496_v29 = vpop.f32.mrf.mxu3  ;;  %v2695_v40 = vand.u32 2147483647, %v6288_v13  ;;  %v2697_v3 = vand.u32 2147483648, %v6288_v13  ;;  %vm2691_vm4 = vweird.f32 %v6288_v13 }
 0x8a0   :  { %v2170_v37 = vmul.f32 %v2154_v15, %v6299_v2  ;;  %v2497_v18 = vadd.f32 %v6068_v27, %v2496_v29  ;;  %v2674_v59 = vmul.f32 %v4663_v47, %v2673_v26  ;;  %4322 = vmatmul.msk.f32.gmra.mxu2 %vm223_vm1, %v2826_v53  ;;  %v2403_v15 = vadd.f32 %v6142_v14, %v6258_v54 }
 0x8a1   :  { %v6306_v4 = vpop.f32.mrf.mxu1  ;;  %vm2696_vm6 = vcmp.eq.f32.partialorder %v2695_v40, 8.507059e+37  ;;  %v2698_v33 = vor.u32 1.1754944e-38, %v2697_v3  ;;  %v1450_v40 = vpop.permute.xlu0 %1449 }
 0x8a2   :  { %v4667_v21 = vpop.eup %4666  ;;  %v4305_v5 = vmul.f32 -1.442695, %v2497_v18  ;;  %4242 = vmatmul.msk.f32.gmra.mxu0 %vm912_vm10, %v2170_v37  ;;  %v2675_v35 = vadd.f32 %v4663_v47, %v2674_v59 }
 0x8a3   :  { %v4669_v34 = vpop.eup %4668  ;;  %v6312_v46 = vadd.f32 1.0, %v4667_v21  ;;  %v2117_v16 = vpop.f32.mrf.mxu2 }
 0x8a4   :  { %v2687_v51 = vmul.f32 %v4669_v34, %v6288_v13  ;;  %4672 = vpow2.f32 %v4305_v5  ;;  %v2118_v60 = vadd.f32 %v6184_v48, %v2117_v16  ;;  %4372 = vmatmul.msk.f32.gmra.mxu1 %vm223_vm1, %v5729_v19  ;;  %4393 = vmatmul.msk.f32.gmra.mxu3 %vm223_vm1, %v5729_v19  ;;  %v2679_v55 = vsel %vm2678_vm7, %v4663_v47, %v2675_v35  ;;  %v4671_v30 = vpop.eup %4670 }
 0x8a5   :  { %4674 = vrcp.f32 %v6312_v46  ;;  %v2684_v62 = vsel %vm2681_vm2, %v2683_v8, %v2679_v55  ;;  %vm2692_vm3 = vweird.f32 %v4669_v34  ;;  %v2710_v8 = vand.u32 2147483647, %v6312_v46 }
 0x8a6   :  { %v2688_v1 = vsub.f32 1.0, %v2687_v51  ;;  %v2155_v31 = vmax.f32 %v2118_v60, 0.0  ;;  %v2827_v45 = vmul.f32 %v4671_v30, %v2684_v62  ;;  %4676 = vtanh.f32 %v2400_v7  ;;  %vm2693_vm5 = vmor %vm2691_vm4, %vm2692_vm3 }
 0x8a7   :  { %v2499_v56 = vpop.f32.mrf.mxu3  ;;  %v6347_v7 = vsel %vm223_vm1, %v5037_v43, %v1448_v12  ;;  %v2712_v57 = vand.u32 2147483648, %v6312_v46  ;;  %vm2706_vm9 = vweird.f32 %v6312_v46  ;;  %vm2711_vm12 = vcmp.eq.f32.partialorder %v2710_v8, 8.507059e+37 }
 0x8a8   :  { %v2171_v19 = vmul.f32 %v2155_v31, %v6323_v58  ;;  %v2500_v47 = vadd.f32 %v6068_v27, %v2499_v56  ;;  %v2689_v24 = vmul.f32 %v4669_v34, %v2688_v1  ;;  %4323 = vmatmul.msk.f32.gmra.mxu2 %vm223_vm1, %v2827_v45  ;;  %v2406_v1 = vadd.f32 %v6142_v14, %v6282_v50 }
 0x8a9   :  { %v6330_v63 = vpop.f32.mrf.mxu1  ;;  %v2713_v56 = vor.u32 1.1754944e-38, %v2712_v57 }
 0x8aa   :  { %v4673_v28 = vpop.eup %4672  ;;  %v4306_v22 = vmul.f32 -1.442695, %v2500_v47  ;;  %4243 = vmatmul.msk.f32.gmra.mxu0 %vm912_vm10, %v2171_v19  ;;  %v2690_v39 = vadd.f32 %v4669_v34, %v2689_v24 }
 0x8ab   :  { %v4675_v26 = vpop.eup %4674  ;;  %v6336_v53 = vadd.f32 1.0, %v4673_v28  ;;  %v2120_v29 = vpop.f32.mrf.mxu2 }
 0x8ac   :  { %v2702_v37 = vmul.f32 %v4675_v26, %v6312_v46  ;;  %4678 = vpow2.f32 %v4306_v22  ;;  %v2121_v18 = vadd.f32 %v6184_v48, %v2120_v29  ;;  %4373 = vmatmul.msk.f32.gmra.mxu1 %vm223_vm1, %v5743_v41  ;;  %4394 = vmatmul.msk.f32.gmra.mxu3 %vm223_vm1, %v5743_v41  ;;  %v2694_v13 = vsel %vm2693_vm5, %v4669_v34, %v2690_v39  ;;  %v4677_v54 = vpop.eup %4676 }
 0x8ad   :  { %4680 = vrcp.f32 %v6336_v53  ;;  %v2699_v59 = vsel %vm2696_vm6, %v2698_v33, %v2694_v13  ;;  %vm2707_vm8 = vweird.f32 %v4675_v26  ;;  %v6371_v39 = vsel %vm223_vm1, %v5060_v0, %v1450_v40 }
 0x8ae   :  { %v2703_v21 = vsub.f32 1.0, %v2702_v37  ;;  %v2156_v5 = vmax.f32 %v2121_v18, 0.0  ;;  %v2828_v35 = vmul.f32 %v4677_v54, %v2699_v59  ;;  %4682 = vtanh.f32 %v2403_v15  ;;  %vm2708_vm11 = vmor %vm2706_vm9, %vm2707_vm8 }
 0x8af   :  { %v2502_v16 = vpop.f32.mrf.mxu3  ;;  %v2725_v29 = vand.u32 2147483647, %v6336_v53  ;;  %v2727_v33 = vand.u32 2147483648, %v6336_v53  ;;  %vm2721_vm14 = vweird.f32 %v6336_v53  ;;  %v2409_v59 = vadd.f32 %v6142_v14, %v6306_v4 }
 0x8b0   :  { %v2172_v41 = vmul.f32 %v2156_v5, %v6347_v7  ;;  %v2503_v34 = vadd.f32 %v6068_v27, %v2502_v16  ;;  %v2704_v51 = vmul.f32 %v4675_v26, %v2703_v21  ;;  %4324 = vmatmul.msk.f32.gmra.mxu2 %vm223_vm1, %v2828_v35  ;;  %v1452_v16 = vpop.permute.xlu2 %1451 }
 0x8b1   :  { %v6354_v60 = vpop.f32.mrf.mxu1  ;;  %vm2726_vm0 = vcmp.eq.f32.partialorder %v2725_v29, 8.507059e+37  ;;  %v2728_v35 = vor.u32 1.1754944e-38, %v2727_v33 }
 0x8b2   :  { %v4679_v55 = vpop.eup %4678  ;;  %v4307_v30 = vmul.f32 -1.442695, %v2503_v34  ;;  %4244 = vmatmul.msk.f32.gmra.mxu0 %vm912_vm10, %v2172_v41  ;;  %v2705_v43 = vadd.f32 %v4675_v26, %v2704_v51 }
 0x8b3   :  { %v4681_v62 = vpop.eup %4680  ;;  %v6360_v31 = vadd.f32 1.0, %v4679_v55  ;;  %v2123_v45 = vpop.f32.mrf.mxu2 }
 0x8b4   :  { %v2717_v3 = vmul.f32 %v4681_v62, %v6336_v53  ;;  %4684 = vpow2.f32 %v4307_v30  ;;  %v2124_v19 = vadd.f32 %v6184_v48, %v2123_v45  ;;  %4374 = vmatmul.msk.f32.gmra.mxu1 %vm223_vm1, %v5749_v42  ;;  %4395 = vmatmul.msk.f32.gmra.mxu3 %vm223_vm1, %v5749_v42  ;;  %v2709_v46 = vsel %vm2708_vm11, %v4675_v26, %v2705_v43  ;;  %v4683_v50 = vpop.eup %4682 }
 0x8b5   :  { %4686 = vrcp.f32 %v6360_v31  ;;  %v2714_v47 = vsel %vm2711_vm12, %v2713_v56, %v2709_v46  ;;  %vm2722_vm13 = vweird.f32 %v4681_v62  ;;  %v6395_v30 = vsel %vm223_vm1, %v5072_v9, %v1452_v16 }
 0x8b6   :  { %v2718_v24 = vsub.f32 1.0, %v2717_v3  ;;  %v2157_v28 = vmax.f32 %v2124_v19, 0.0  ;;  %v2829_v22 = vmul.f32 %v4683_v50, %v2714_v47  ;;  %4688 = vtanh.f32 %v2406_v1  ;;  %vm2723_vm15 = vmor %vm2721_vm14, %vm2722_vm13 }
 0x8b7   :  { %v2505_v15 = vpop.f32.mrf.mxu3  ;;  %v2740_v1 = vand.u32 2147483647, %v6360_v31  ;;  %v2742_v45 = vand.u32 2147483648, %v6360_v31  ;;  %vm2736_vm2 = vweird.f32 %v6360_v31  ;;  %v2412_v50 = vadd.f32 %v6142_v14, %v6330_v63 }
 0x8b8   :  { %v2173_v42 = vmul.f32 %v2157_v28, %v6371_v39  ;;  %v2506_v26 = vadd.f32 %v6068_v27, %v2505_v15  ;;  %v2719_v12 = vmul.f32 %v4681_v62, %v2718_v24  ;;  %4325 = vmatmul.msk.f32.gmra.mxu2 %vm223_vm1, %v2829_v22  ;;  %v1454_v22 = vpop.permute.xlu1 %1453 }
 0x8b9   :  { %v6378_v37 = vpop.f32.mrf.mxu1  ;;  %vm2741_vm4 = vcmp.eq.f32.partialorder %v2740_v1, 8.507059e+37  ;;  %v2743_v28 = vor.u32 1.1754944e-38, %v2742_v45 }
 0x8ba   :  { %v4685_v18 = vpop.eup %4684  ;;  %v4308_v13 = vmul.f32 -1.442695, %v2506_v26  ;;  %4245 = vmatmul.msk.f32.gmra.mxu0 %vm912_vm10, %v2173_v42  ;;  %v2720_v0 = vadd.f32 %v4681_v62, %v2719_v12 }
 0x8bb   :  { %v4687_v54 = vpop.eup %4686  ;;  %v6384_v21 = vadd.f32 1.0, %v4685_v18  ;;  %v2126_v5 = vpop.f32.mrf.mxu2  ;;  %v6419_v18 = vsel %vm223_vm1, %v5084_v20, %v1454_v22 }
 0x8bc   :  { %v2732_v8 = vmul.f32 %v4687_v54, %v6360_v31  ;;  %4690 = vpow2.f32 %v4308_v13  ;;  %v2127_v57 = vadd.f32 %v6184_v48, %v2126_v5  ;;  %4375 = vmatmul.msk.f32.gmra.mxu1 %vm223_vm1, %v5776_v10  ;;  %4396 = vmatmul.msk.f32.gmra.mxu3 %vm223_vm1, %v5776_v10  ;;  %v2724_v53 = vsel %vm2723_vm15, %v4681_v62, %v2720_v0  ;;  %v4689_v4 = vpop.eup %4688 }
 0x8bd   :  { %4692 = vrcp.f32 %v6384_v21  ;;  %v2729_v41 = vsel %vm2726_vm0, %v2728_v35, %v2724_v53  ;;  %vm2737_vm7 = vweird.f32 %v4687_v54  ;;  %v2755_v0 = vand.u32 2147483647, %v6384_v21 }
 0x8be   :  { %v2733_v34 = vsub.f32 1.0, %v2732_v8  ;;  %v2158_v51 = vmax.f32 %v2127_v57, 0.0  ;;  %v2830_v55 = vmul.f32 %v4689_v4, %v2729_v41  ;;  %4694 = vtanh.f32 %v2409_v59  ;;  %vm2738_vm3 = vmor %vm2736_vm2, %vm2737_vm7 }
 0x8bf   :  { %v2508_v43 = vpop.f32.mrf.mxu3  ;;  %v2757_v59 = vand.u32 2147483648, %v6384_v21  ;;  %vm2751_vm6 = vweird.f32 %v6384_v21  ;;  %v2415_v53 = vadd.f32 %v6142_v14, %v6354_v60  ;;  %vm2756_vm9 = vcmp.eq.f32.partialorder %v2755_v0, 8.507059e+37 }
 0x8c0   :  { %v2174_v10 = vmul.f32 %v2158_v51, %v6395_v30  ;;  %v2509_v62 = vadd.f32 %v6068_v27, %v2508_v43  ;;  %v2734_v56 = vmul.f32 %v4687_v54, %v2733_v34  ;;  %4326 = vmatmul.msk.f32.gmra.mxu2 %vm223_vm1, %v2830_v55  ;;  %v1456_v34 = vpop.permute.xlu0 %1455 }
 0x8c1   :  { %v6402_v40 = vpop.f32.mrf.mxu1  ;;  %v2758_v41 = vor.u32 1.1754944e-38, %v2757_v59 }
 0x8c2   :  { %v4691_v3 = vpop.eup %4690  ;;  %v4309_v19 = vmul.f32 -1.442695, %v2509_v62  ;;  %4246 = vmatmul.msk.f32.gmra.mxu0 %vm912_vm10, %v2174_v10  ;;  %v2735_v9 = vadd.f32 %v4687_v54, %v2734_v56  ;;  %v6443_v62 = vsel %vm223_vm1, %v5096_v32, %v1456_v34 }
 0x8c3   :  { %v4693_v46 = vpop.eup %4692  ;;  %v6408_v47 = vadd.f32 1.0, %v4691_v3  ;;  %v2129_v24 = vpop.f32.mrf.mxu2 }
 0x8c4   :  { %v2747_v15 = vmul.f32 %v4693_v46, %v6384_v21  ;;  %4696 = vpow2.f32 %v4309_v19  ;;  %v2130_v29 = vadd.f32 %v6184_v48, %v2129_v24  ;;  %4376 = vmatmul.msk.f32.gmra.mxu1 %vm223_vm1, %v5786_v11  ;;  %4397 = vmatmul.msk.f32.gmra.mxu3 %vm223_vm1, %v5786_v11  ;;  %v2739_v31 = vsel %vm2738_vm3, %v4687_v54, %v2735_v9  ;;  %v4695_v63 = vpop.eup %4694  ;;  %v4816_v9 = vld [vmem:[%s7113_s18 + $0x1] ss:$0 sm:$0xff] }
 0x8c5   :  { %4698 = vrcp.f32 %v6408_v47  ;;  %v2744_v33 = vsel %vm2741_vm4, %v2743_v28, %v2739_v31  ;;  %vm2752_vm5 = vweird.f32 %v4693_v46  ;;  %v2770_v3 = vand.u32 2147483647, %v6408_v47 }
 0x8c6   :  { %v2748_v42 = vsub.f32 1.0, %v2747_v15  ;;  %v2159_v26 = vmax.f32 %v2130_v29, 0.0  ;;  %v2831_v12 = vmul.f32 %v4695_v63, %v2744_v33  ;;  %4700 = vtanh.f32 %v2412_v50  ;;  %vm2753_vm8 = vmor %vm2751_vm6, %vm2752_vm5  ;;  %v4418_v15 = vld [vmem:[%s7114_s19 + $0x58] sm:$0xff] }
 0x8c7   :  { %v2511_v13 = vpop.f32.mrf.mxu3  ;;  %v2772_v19 = vand.u32 2147483648, %v6408_v47  ;;  %vm2766_vm12 = vweird.f32 %v6408_v47  ;;  %v2418_v31 = vadd.f32 %v6142_v14, %v6378_v37  ;;  %vm2771_vm14 = vcmp.eq.f32.partialorder %v2770_v3, 8.507059e+37  ;;  %3670 = vmatpush.msra.mxu2 %v4418_v15  ;;  %v4340_v37 = vld [vmem:[%s7116_s21 + $0x78] sm:$0xff] }
 0x8c8   :  { %v2175_v11 = vmul.f32 %v2159_v26, %v6419_v18  ;;  %v2512_v54 = vadd.f32 %v6068_v27, %v2511_v13  ;;  %v2749_v5 = vmul.f32 %v4693_v46, %v2748_v42  ;;  %4327 = vmatmul.msk.f32.gmra.mxu2 %vm223_vm1, %v2831_v12  ;;  %v1458_v26 = vpop.permute.xlu2 %1457  ;;  %v6471_v13 = vld [vmem:[%s7113_s18 + $0x2] ss:$0 sm:$0xff]  ;;  %3057 = vmatpush.msra.mxu0 %v4340_v37  ;;  %v4336_v15 = vld [vmem:[%s7116_s21 + $0x58] sm:$0xff] }
 0x8c9   :  { %v6426_v35 = vpop.f32.mrf.mxu1  ;;  %v2773_v42 = vor.u32 1.1754944e-38, %v2772_v19 }
 0x8ca   :  { %v4697_v16 = vpop.eup %4696  ;;  %v4310_v8 = vmul.f32 -1.442695, %v2512_v54  ;;  %4247 = vmatmul.msk.f32.gmra.mxu0 %vm912_vm10, %v2175_v11  ;;  %v2750_v20 = vadd.f32 %v4693_v46, %v2749_v5  ;;  %v4417_v11 = vld [vmem:[%s7114_s19 + $0x50] sm:$0xff] }
 0x8cb   :  { %v4699_v57 = vpop.eup %4698  ;;  %v6432_v4 = vadd.f32 1.0, %v4697_v16  ;;  %v2132_v27 = vpop.f32.mrf.mxu2  ;;  %3671 = vmatpush.msra.mxu2 %v4417_v11  ;;  %v4334_v11 = vld [vmem:[%s7116_s21 + $0x48] sm:$0xff] }
 0x8cc   :  { %v2762_v51 = vmul.f32 %v4699_v57, %v6408_v47  ;;  %4702 = vpow2.f32 %v4310_v8  ;;  %v2133_v55 = vadd.f32 %v6184_v48, %v2132_v27  ;;  %4377 = vmatmul.msk.f32.gmra.mxu1 %vm223_vm1, %v5792_v25  ;;  %4398 = vmatmul.msk.f32.gmra.mxu3 %vm223_vm1, %v5792_v25  ;;  %v2754_v21 = vsel %vm2753_vm8, %v4693_v46, %v2750_v20  ;;  %v4701_v60 = vpop.eup %4700  ;;  %v4339_v27 = vld [vmem:[%s7116_s21 + $0x70] sm:$0xff] }
 0x8cd   :  { %4704 = vrcp.f32 %v6432_v4  ;;  %v2759_v43 = vsel %vm2756_vm9, %v2758_v41, %v2754_v21  ;;  %vm2767_vm11 = vweird.f32 %v4699_v57  ;;  %v6482_v8 = vsel %vm223_vm1, %v5108_v44, %v1458_v26  ;;  %v4416_v41 = vld [vmem:[%s7114_s19 + $0x48] sm:$0xff]  ;;  %3058 = vmatpush.msra.mxu0 %v4339_v27 }
 0x8ce   :  { %v2763_v1 = vsub.f32 1.0, %v2762_v51  ;;  %v2160_v45 = vmax.f32 %v2133_v55, 0.0  ;;  %v2832_v10 = vmul.f32 %v4701_v60, %v2759_v43  ;;  %4706 = vtanh.f32 %v2415_v53  ;;  %vm2768_vm13 = vmor %vm2766_vm12, %vm2767_vm11  ;;  %3672 = vmatpush.msra.mxu2 %v4416_v41  ;;  %v4338_v21 = vld [vmem:[%s7116_s21 + $0x68] sm:$0xff]  ;;  %v4415_v60 = vld [vmem:[%s7114_s19 + $0x40] sm:$0xff] }
 0x8cf   :  { %v2514_v56 = vpop.f32.mrf.mxu3  ;;  %v2787_v53 = vand.u32 2147483648, %v6432_v4  ;;  %vm2781_vm0 = vweird.f32 %v6432_v4  ;;  %3059 = vmatpush.msra.mxu0 %v4338_v21 }
 0x8d0   :  { %v2176_v25 = vmul.f32 %v2160_v45, %v6443_v62  ;;  %v2515_v46 = vadd.f32 %v4816_v9, %v2514_v56  ;;  %v2764_v50 = vmul.f32 %v4699_v57, %v2763_v1  ;;  %4328 = vmatmul.msk.f32.gmra.mxu2 %vm223_vm1, %v2832_v10  ;;  %v4817_v56 = vld [vmem:[%s7112_s16 + $0x1] ss:$0 sm:$0xff] }
 0x8d1   :  { %v6452_v24 = vpop.f32.mrf.mxu1  ;;  %3673 = vmatpush.msra.mxu2 %v4415_v60  ;;  %v2421_v3 = vadd.f32 %v4817_v56, %v6402_v40  ;;  %v2788_v9 = vor.u32 1.1754944e-38, %v2787_v53  ;;  %v2424_v53 = vadd.f32 %v4817_v56, %v6426_v35 }
 0x8d2   :  { %v4703_v32 = vpop.eup %4702  ;;  %v4311_v28 = vmul.f32 -1.442695, %v2515_v46  ;;  %4248 = vmatmul.msk.f32.gmra.mxu0 %vm912_vm10, %v2176_v25  ;;  %v2765_v22 = vadd.f32 %v4699_v57, %v2764_v50  ;;  %v1460_v46 = vpop.permute.xlu1 %1459 }
 0x8d3   :  { %v6459_v29 = vpop.eup %4704  ;;  %v6463_v63 = vadd.f32 1.0, %v4703_v32  ;;  %v2135_v33 = vpop.f32.mrf.mxu2  ;;  %v6531_v26 = vsel %vm223_vm1, %v5120_v52, %v1460_v46 }
 0x8d4   :  { %v2777_v47 = vmul.f32 %v6459_v29, %v6432_v4  ;;  %4708 = vpow2.f32 %v4311_v28  ;;  %v2136_v12 = vadd.f32 %v6184_v48, %v2135_v33  ;;  %v2769_v14 = vsel %vm2768_vm13, %v4699_v57, %v2765_v22  ;;  %v4707_v0 = vpop.eup %4706 }
 0x8d5   :  { %4710 = vrcp.f32 %v6463_v63  ;;  %v2774_v59 = vsel %vm2771_vm14, %v2773_v42, %v2769_v14  ;;  %v2785_v57 = vand.u32 2147483647, %v6432_v4  ;;  %vm2782_vm15 = vweird.f32 %v6459_v29  ;;  %v4337_v4 = vld [vmem:[%s7116_s21 + $0x60] sm:$0xff] }
 0x8d6   :  { %v2778_v54 = vsub.f32 1.0, %v2777_v47  ;;  %v2161_v5 = vmax.f32 %v2136_v12, 0.0  ;;  %v2833_v16 = vmul.f32 %v4707_v0, %v2774_v59  ;;  %4712 = vtanh.f32 %v2418_v31  ;;  %vm2783_vm7 = vmor %vm2781_vm0, %vm2782_vm15  ;;  %3060 = vmatpush.msra.mxu0 %v4337_v4  ;;  %v4335_v12 = vld [vmem:[%s7116_s21 + $0x50] sm:$0xff] }
 0x8d7   :  { %v3232_v20 = vpop.f32.mrf.mxu3  ;;  %vm2786_vm2 = vcmp.eq.f32.partialorder %v2785_v57, 8.507059e+37  ;;  %v2800_v59 = vand.u32 2147483647, %v6463_v63  ;;  %vm2796_vm4 = vweird.f32 %v6463_v63  ;;  %v1462_v57 = vpop.permute.xlu0 %1461 }
 0x8d8   :  { %v2177_v34 = vmul.f32 %v2161_v5, %v6482_v8  ;;  %v3233_v51 = vadd.f32 %v6471_v13, %v3232_v20  ;;  %v2779_v44 = vmul.f32 %v6459_v29, %v2778_v54  ;;  %4329 = vmatmul.msk.f32.gmra.mxu2 %vm223_vm1, %v2833_v16  ;;  %3061 = vmatpush.msra.mxu0 %v4336_v15 }
 0x8d9   :  { %v6497_v55 = vpop.f32.mrf.mxu1  ;;  %vm2801_vm6 = vcmp.eq.f32.partialorder %v2800_v59, 8.507059e+37 }
 0x8da   :  { %v4709_v43 = vpop.eup %4708  ;;  %v4399_v1 = vmul.f32 -1.442695, %v3233_v51  ;;  %4249 = vmatmul.msk.f32.gmra.mxu0 %vm912_vm10, %v2177_v34  ;;  %v2780_v45 = vadd.f32 %v6459_v29, %v2779_v44  ;;  %v4333_v44 = vld [vmem:[%s7116_s21 + $0x40] sm:$0xff] }
 0x8db   :  { %v6508_v10 = vpop.eup %4710  ;;  %v6514_v19 = vadd.f32 1.0, %v4709_v43  ;;  %v2138_v25 = vpop.f32.mrf.mxu2  ;;  %3062 = vmatpush.msra.mxu0 %v4335_v12  ;;  %v6571_v43 = vsel %vm223_vm1, %v5131_v61, %v1462_v57 }
 0x8dc   :  { %v2792_v50 = vmul.f32 %v6508_v10, %v6463_v63  ;;  %4714 = vpow2.f32 %v4399_v1  ;;  %v2139_v40 = vadd.f32 %v6184_v48, %v2138_v25  ;;  %v2784_v32 = vsel %vm2783_vm7, %v6459_v29, %v2780_v45  ;;  %v4713_v28 = vpop.eup %4712 }
 0x8dd   :  { %4716 = vrcp.f32 %v6514_v19  ;;  %v2789_v22 = vsel %vm2786_vm2, %v2788_v9, %v2784_v32  ;;  %v2802_v29 = vand.u32 2147483648, %v6463_v63  ;;  %vm2797_vm3 = vweird.f32 %v6508_v10  ;;  %3063 = vmatpush.msra.mxu0 %v4334_v11 }
 0x8de   :  { %v2793_v31 = vsub.f32 1.0, %v2792_v50  ;;  %v2162_v33 = vmax.f32 %v2139_v40, 0.0  ;;  %v2834_v42 = vmul.f32 %v4713_v28, %v2789_v22  ;;  %4718 = vtanh.f32 %v2421_v3  ;;  %vm6556_vm5 = vmor %vm2796_vm4, %vm2797_vm3 }
 0x8df   :  { %v3235_v47 = vpop.f32.mrf.mxu3  ;;  %v2803_v51 = vor.u32 1.1754944e-38, %v2802_v29  ;;  %3064 = vmatpush.msra.mxu0 %v4333_v44  ;;  %v2815_v25 = vand.u32 2147483647, %v6514_v19  ;;  %v2817_v9 = vand.u32 2147483648, %v6514_v19  ;;  %vm2811_vm9 = vweird.f32 %v6514_v19 }
 0x8e0   :  { %v2178_v14 = vmul.f32 %v2162_v33, %v6531_v26  ;;  %v3236_v37 = vadd.f32 %v6471_v13, %v3235_v47  ;;  %v2794_v0 = vmul.f32 %v6508_v10, %v2793_v31  ;;  %4330 = vmatmul.msk.f32.gmra.mxu2 %vm223_vm1, %v2834_v42  ;;  %v1464_v42 = vpop.permute.xlu2 %1463 }
 0x8e1   :  { %v6542_v52 = vpop.f32.mrf.mxu1  ;;  %v2818_v33 = vor.u32 1.1754944e-38, %v2817_v9  ;;  %vm2816_vm12 = vcmp.eq.f32.partialorder %v2815_v25, 8.507059e+37  ;;  %v6598_v11 = vsel %vm223_vm1, %v5159_v38, %v1464_v42 }
 0x8e2   :  { %v4715_v54 = vpop.eup %4714  ;;  %v4400_v5 = vmul.f32 -1.442695, %v3236_v37  ;;  %4250 = vmatmul.msk.f32.gmra.mxu0 %vm912_vm10, %v2178_v14  ;;  %v2795_v16 = vadd.f32 %v6508_v10, %v2794_v0 }
 0x8e3   :  { %v4717_v20 = vpop.eup %4716  ;;  %v6552_v27 = vadd.f32 1.0, %v4715_v54  ;;  %v2141_v41 = vpop.f32.mrf.mxu2 }
 0x8e4   :  { %v2807_v63 = vmul.f32 %v4717_v20, %v6514_v19  ;;  %4720 = vpow2.f32 %v4400_v5  ;;  %v2142_v35 = vadd.f32 %v6184_v48, %v2141_v41  ;;  %v2799_v21 = vsel %vm6556_vm5, %v6508_v10, %v2795_v16  ;;  %v4719_v60 = vpop.eup %4718  ;;  %v6576_v48 = vld [vmem:[%s7112_s16 + $0x2] ss:$0 sm:$0xff]  ;;  %v4818_v19 = vld [vmem:[%s7115_s20] ss:$0 sm:$0xff] }
 0x8e5   :  { %4722 = vrcp.f32 %v6552_v27  ;;  %v2804_v56 = vsel %vm2801_vm6, %v2803_v51, %v2799_v21  ;;  %vm2812_vm8 = vweird.f32 %v4717_v20  ;;  %v3142_v15 = vadd.f32 %v6576_v48, %v6452_v24 }
 0x8e6   :  { %v2808_v1 = vsub.f32 1.0, %v2807_v63  ;;  %v2163_v45 = vmax.f32 %v2142_v35, 0.0  ;;  %4724 = vtanh.f32 %v2424_v53  ;;  %v2835_v10 = vmul.f32 %v4719_v60, %v2804_v56  ;;  %vm2813_vm11 = vmor %vm2811_vm9, %vm2812_vm8 }
 0x8e7   :  { %v3238_v3 = vpop.f32.mrf.mxu3  ;;  %v3355_v54 = vand.u32 2147483648, %v6552_v27  ;;  %v3353_v57 = vand.u32 2147483647, %v6552_v27  ;;  %vm3349_vm14 = vweird.f32 %v6552_v27  ;;  %v3145_v21 = vadd.f32 %v6576_v48, %v6497_v55 }
 0x8e8   :  { %v2179_v4 = vmul.f32 %v2163_v45, %v6571_v43  ;;  %v3239_v61 = vadd.f32 %v6471_v13, %v3238_v3  ;;  %v2809_v46 = vmul.f32 %v4717_v20, %v2808_v1  ;;  %4331 = vmatmul.msk.f32.gmra.mxu2 %vm223_vm1, %v2835_v10  ;;  %v1466_v1 = vpop.permute.xlu1 %1465 }
 0x8e9   :  { %v6583_v50 = vpop.f32.mrf.mxu1  ;;  %v3356_v35 = vor.u32 1.1754944e-38, %v3355_v54  ;;  %vm3354_vm0 = vcmp.eq.f32.partialorder %v3353_v57, 8.507059e+37  ;;  %v6617_v55 = vsel %vm223_vm1, %v5183_v6, %v1466_v1  ;;  %v6627_v6 = vld [vmem:[%s7115_s20 + $0x1] ss:$0 sm:$0xff] }
 0x8ea   :  { %v4721_v40 = vpop.eup %4720  ;;  %v4401_v32 = vmul.f32 -1.442695, %v3239_v61  ;;  %4251 = vmatmul.msk.f32.gmra.mxu0 %vm912_vm10, %v2179_v4  ;;  %v2810_v28 = vadd.f32 %v4717_v20, %v2809_v46 }
 0x8eb   :  { %v4723_v22 = vpop.eup %4722  ;;  %v6589_v31 = vadd.f32 1.0, %v4721_v40  ;;  %v2144_v29 = vpop.f32.mrf.mxu2 }
 0x8ec   :  { %v3345_v47 = vmul.f32 %v4723_v22, %v6552_v27  ;;  %4726 = vpow2.f32 %v4401_v32  ;;  %v2814_v12 = vsel %vm2813_vm11, %v4717_v20, %v2810_v28  ;;  %v4725_v14 = vpop.eup %4724  ;;  %v2145_v37 = vadd.f32 %v4818_v19, %v2144_v29 }
 0x8ed   :  { %4728 = vrcp.f32 %v6589_v31  ;;  %v2819_v24 = vsel %vm2816_vm12, %v2818_v33, %v2814_v12  ;;  %vm3350_vm13 = vweird.f32 %v4723_v22  ;;  %v3370_v40 = vand.u32 2147483648, %v6589_v31 }
 0x8ee   :  { %v3346_v0 = vsub.f32 1.0, %v3345_v47  ;;  %v2836_v59 = vmul.f32 %v4725_v14, %v2819_v24  ;;  %4730 = vtanh.f32 %v3142_v15  ;;  %v2164_v5 = vmax.f32 %v2145_v37, 0.0  ;;  %vm3351_vm15 = vmor %vm3349_vm14, %vm3350_vm13 }
 0x8ef   :  { %v3241_v16 = vpop.f32.mrf.mxu3  ;;  %vm3364_vm2 = vweird.f32 %v6589_v31  ;;  %v3148_v12 = vadd.f32 %v6576_v48, %v6542_v52 }
 0x8f0   :  { %v3347_v20 = vmul.f32 %v4723_v22, %v3346_v0  ;;  %v3242_v53 = vadd.f32 %v6471_v13, %v3241_v16  ;;  %v2180_v41 = vmul.f32 %v2164_v5, %v6598_v11  ;;  %4332 = vmatmul.msk.f32.gmra.mxu2 %vm223_vm1, %v2836_v59 }
 0x8f1   :  { %v6606_v44 = vpop.f32.mrf.mxu1 }
 0x8f2   :  { %v4727_v34 = vpop.eup %4726  ;;  %v3348_v51 = vadd.f32 %v4723_v22, %v3347_v20  ;;  %v4402_v38 = vmul.f32 -1.442695, %v3242_v53  ;;  %4252 = vmatmul.msk.f32.gmra.mxu0 %vm912_vm10, %v2180_v41 }
 0x8f3   :  { %v4729_v63 = vpop.eup %4728  ;;  %v6610_v60 = vadd.f32 1.0, %v4727_v34  ;;  %v2147_v27 = vpop.f32.mrf.mxu2 }
 0x8f4   :  { %v3352_v45 = vsel %vm3351_vm15, %v4723_v22, %v3348_v51  ;;  %v3360_v56 = vmul.f32 %v4729_v63, %v6589_v31  ;;  %4732 = vpow2.f32 %v4402_v38  ;;  %v4731_v3 = vpop.eup %4730  ;;  %v2148_v10 = vadd.f32 %v4818_v19, %v2147_v27 }
 0x8f5   :  { %4734 = vrcp.f32 %v6610_v60  ;;  %v3357_v25 = vsel %vm3354_vm0, %v3356_v35, %v3352_v45  ;;  %vm3365_vm7 = vweird.f32 %v4729_v63  ;;  %v3368_v22 = vand.u32 2147483647, %v6589_v31 }
 0x8f6   :  { %v3361_v9 = vsub.f32 1.0, %v3360_v56  ;;  %v3584_v4 = vmul.f32 %v4731_v3, %v3357_v25  ;;  %4736 = vtanh.f32 %v3145_v21  ;;  %v2165_v61 = vmax.f32 %v2148_v10, 0.0  ;;  %vm3366_vm3 = vmor %vm3364_vm2, %vm3365_vm7 }
 0x8f7   :  { %v3244_v46 = vpop.f32.mrf.mxu3  ;;  %v3371_v19 = vor.u32 1.1754944e-38, %v3370_v40  ;;  %vm3369_vm4 = vcmp.eq.f32.partialorder %v3368_v22, 8.507059e+37  ;;  %v3385_v41 = vand.u32 2147483648, %v6610_v60  ;;  %v3383_v38 = vand.u32 2147483647, %v6610_v60 }
 0x8f8   :  { %v3245_v32 = vadd.f32 %v6471_v13, %v3244_v46  ;;  %v3362_v28 = vmul.f32 %v4729_v63, %v3361_v9  ;;  %v2181_v15 = vmul.f32 %v2165_v61, %v6617_v55  ;;  %4420 = vmatmul.msk.f32.vlgmr.msra.gmra.mxu2 %vm223_vm1, %v3584_v4  ;;  %vm3379_vm6 = vweird.f32 %v6610_v60 }
 0x8f9   :  { %v6636_v24 = vpop.f32.mrf.mxu1  ;;  %v3151_v56 = vadd.f32 %v6576_v48, %v6583_v50  ;;  %v3386_v3 = vor.u32 1.1754944e-38, %v3385_v41  ;;  %vm3384_vm9 = vcmp.eq.f32.partialorder %v3383_v38, 8.507059e+37 }
 0x8fa   :  { %v4733_v33 = vpop.eup %4732  ;;  %v4403_v42 = vmul.f32 -1.442695, %v3245_v32  ;;  %v3363_v47 = vadd.f32 %v4729_v63, %v3362_v28  ;;  %4253 = vmatmul.msk.f32.gmra.mxu0 %vm912_vm10, %v2181_v15 }
 0x8fb   :  { %v4735_v29 = vpop.eup %4734  ;;  %v6632_v14 = vadd.f32 1.0, %v4733_v33  ;;  %v2912_v0 = vpop.f32.mrf.mxu2 }
 0x8fc   :  { %v3375_v37 = vmul.f32 %v4735_v29, %v6610_v60  ;;  %4738 = vpow2.f32 %v4403_v42  ;;  %v3367_v59 = vsel %vm3366_vm3, %v4729_v63, %v3363_v47  ;;  %v4737_v54 = vpop.eup %4736  ;;  %v2913_v31 = vadd.f32 %v6627_v6, %v2912_v0 }
 0x8fd   :  { %4740 = vrcp.f32 %v6632_v14  ;;  %v3372_v52 = vsel %vm3369_vm4, %v3371_v19, %v3367_v59  ;;  %vm3380_vm5 = vweird.f32 %v4735_v29  ;;  %v3400_v15 = vand.u32 2147483648, %v6632_v14 }
 0x8fe   :  { %v3376_v5 = vsub.f32 1.0, %v3375_v37  ;;  %v3585_v16 = vmul.f32 %v4737_v54, %v3372_v52  ;;  %4742 = vtanh.f32 %v3148_v12  ;;  %v2960_v20 = vmax.f32 %v2913_v31, 0.0  ;;  %vm3381_vm8 = vmor %vm3379_vm6, %vm3380_vm5 }
 0x8ff   :  { %v6640_v57 = vpop.f32.mrf.mxu0  ;;  %v3247_v53 = vpop.f32.mrf.mxu3  ;;  %v3398_v47 = vand.u32 2147483647, %v6632_v14  ;;  %vm3394_vm12 = vweird.f32 %v6632_v14  ;;  %v3154_v59 = vadd.f32 %v6576_v48, %v6606_v44  ;;  %v3401_v31 = vor.u32 1.1754944e-38, %v3400_v15 }
 0x900   :  { %v3248_v34 = vadd.f32 %v6471_v13, %v3247_v53  ;;  %v3377_v51 = vmul.f32 %v4735_v29, %v3376_v5  ;;  %v2976_v63 = vmul.f32 %v2960_v20, %v6203_v23  ;;  %4421 = vmatmul.msk.f32.gmra.mxu2 %vm223_vm1, %v3585_v16 }
 0x901   :  { %v6656_v50 = vpop.f32.mrf.mxu1  ;;  %vm3399_vm14 = vcmp.eq.f32.partialorder %v3398_v47, 8.507059e+37 }
 0x902   :  { %v4739_v35 = vpop.eup %4738  ;;  %v4404_v21 = vmul.f32 -1.442695, %v3248_v34  ;;  %v3378_v1 = vadd.f32 %v4735_v29, %v3377_v51  ;;  %4341 = vmatmul.msk.f32.vlgmr.msra.gmra.mxu0 %vm912_vm10, %v2976_v63 }
 0x903   :  { %v4741_v45 = vpop.eup %4740  ;;  %v6650_v27 = vadd.f32 1.0, %v4739_v35  ;;  %v2915_v25 = vpop.f32.mrf.mxu2 }
 0x904   :  { %v3390_v10 = vmul.f32 %v4741_v45, %v6632_v14  ;;  %4744 = vpow2.f32 %v4404_v21  ;;  %v3382_v9 = vsel %vm3381_vm8, %v4735_v29, %v3378_v1  ;;  %v4743_v4 = vpop.eup %4742  ;;  %v2916_v60 = vadd.f32 %v6627_v6, %v2915_v25 }
 0x905   :  { %4746 = vrcp.f32 %v6650_v27  ;;  %v3387_v61 = vsel %vm3384_vm9, %v3386_v3, %v3382_v9  ;;  %vm3395_vm11 = vweird.f32 %v4741_v45  ;;  %v3415_v63 = vand.u32 2147483648, %v6650_v27 }
 0x906   :  { %v3391_v46 = vsub.f32 1.0, %v3390_v10  ;;  %v3586_v40 = vmul.f32 %v4743_v4, %v3387_v61  ;;  %4748 = vtanh.f32 %v3151_v56  ;;  %v2961_v32 = vmax.f32 %v2916_v60, 0.0  ;;  %vm3396_vm13 = vmor %vm3394_vm12, %vm3395_vm11 }
 0x907   :  { %v6658_v28 = vpop.f32.mrf.mxu0  ;;  %v3250_v22 = vpop.f32.mrf.mxu3  ;;  %vm3409_vm0 = vweird.f32 %v6650_v27  ;;  %v3157_v4 = vadd.f32 %v6576_v48, %v6636_v24  ;;  %v3416_v61 = vor.u32 1.1754944e-38, %v3415_v63 }
 0x908   :  { %v3251_v33 = vadd.f32 %v6471_v13, %v3250_v22  ;;  %v3392_v42 = vmul.f32 %v4741_v45, %v3391_v46  ;;  %v2977_v29 = vmul.f32 %v2961_v32, %v6227_v17  ;;  %4422 = vmatmul.msk.f32.gmra.mxu2 %vm223_vm1, %v3586_v40 }
 0x909   :  { %v6677_v35 = vpop.f32.mrf.mxu1 }
 0x90a   :  { %v4745_v12 = vpop.eup %4744  ;;  %v4405_v19 = vmul.f32 -1.442695, %v3251_v33  ;;  %v3393_v37 = vadd.f32 %v4741_v45, %v3392_v42  ;;  %4342 = vmatmul.msk.f32.gmra.mxu0 %vm912_vm10, %v2977_v29 }
 0x90b   :  { %v4747_v0 = vpop.eup %4746  ;;  %v6668_v54 = vadd.f32 1.0, %v4745_v12  ;;  %v2918_v5 = vpop.f32.mrf.mxu2 }
 0x90c   :  { %v3405_v52 = vmul.f32 %v4747_v0, %v6650_v27  ;;  %4750 = vpow2.f32 %v4405_v19  ;;  %v3397_v16 = vsel %vm3396_vm13, %v4741_v45, %v3393_v37  ;;  %v4749_v20 = vpop.eup %4748  ;;  %v2919_v14 = vadd.f32 %v6627_v6, %v2918_v5 }
 0x90d   :  { %4752 = vrcp.f32 %v6668_v54  ;;  %v3402_v53 = vsel %vm3399_vm14, %v3401_v31, %v3397_v16  ;;  %vm3410_vm15 = vweird.f32 %v4747_v0  ;;  %v3413_v45 = vand.u32 2147483647, %v6650_v27 }
 0x90e   :  { %v3406_v41 = vsub.f32 1.0, %v3405_v52  ;;  %v3587_v44 = vmul.f32 %v4749_v20, %v3402_v53  ;;  %4754 = vtanh.f32 %v3154_v59  ;;  %v2962_v34 = vmax.f32 %v2919_v14, 0.0  ;;  %vm3411_vm7 = vmor %vm3409_vm0, %vm3410_vm15 }
 0x90f   :  { %v6674_v51 = vpop.f32.mrf.mxu0  ;;  %v3253_v38 = vpop.f32.mrf.mxu3  ;;  %vm3414_vm2 = vcmp.eq.f32.partialorder %v3413_v45, 8.507059e+37  ;;  %v3430_v12 = vand.u32 2147483648, %v6668_v54  ;;  %vm3424_vm4 = vweird.f32 %v6668_v54  ;;  %v3160_v14 = vadd.f32 %v6576_v48, %v6656_v50 }
 0x910   :  { %v3254_v21 = vadd.f32 %v6471_v13, %v3253_v38  ;;  %v3407_v1 = vmul.f32 %v4747_v0, %v3406_v41  ;;  %v2978_v56 = vmul.f32 %v2962_v34, %v6251_v36  ;;  %4423 = vmatmul.msk.f32.gmra.mxu2 %vm223_vm1, %v3587_v44 }
 0x911   :  { %v6699_v52 = vpop.f32.mrf.mxu1  ;;  %v3431_v41 = vor.u32 1.1754944e-38, %v3430_v12 }
 0x912   :  { %v4751_v3 = vpop.eup %4750  ;;  %v4406_v10 = vmul.f32 -1.442695, %v3254_v21  ;;  %v3408_v25 = vadd.f32 %v4747_v0, %v3407_v1  ;;  %4343 = vmatmul.msk.f32.gmra.mxu0 %vm912_vm10, %v2978_v56 }
 0x913   :  { %v4753_v9 = vpop.eup %4752  ;;  %v6686_v60 = vadd.f32 1.0, %v4751_v3  ;;  %v2921_v40 = vpop.f32.mrf.mxu2 }
 0x914   :  { %v3420_v46 = vmul.f32 %v4753_v9, %v6668_v54  ;;  %4756 = vpow2.f32 %v4406_v10  ;;  %v3412_v32 = vsel %vm3411_vm7, %v4747_v0, %v3408_v25  ;;  %v4755_v22 = vpop.eup %4754  ;;  %v2922_v27 = vadd.f32 %v6627_v6, %v2921_v40 }
 0x915   :  { %4758 = vrcp.f32 %v6686_v60  ;;  %v3417_v15 = vsel %vm3414_vm2, %v3416_v61, %v3412_v32  ;;  %vm3425_vm3 = vweird.f32 %v4753_v9  ;;  %v3428_v0 = vand.u32 2147483647, %v6668_v54 }
 0x916   :  { %v3421_v33 = vsub.f32 1.0, %v3420_v46  ;;  %v3588_v24 = vmul.f32 %v4755_v22, %v3417_v15  ;;  %4760 = vtanh.f32 %v3157_v4  ;;  %v2963_v42 = vmax.f32 %v2922_v27, 0.0  ;;  %vm3426_vm5 = vmor %vm3424_vm4, %vm3425_vm3 }
 0x917   :  { %v6692_v47 = vpop.f32.mrf.mxu0  ;;  %v3256_v29 = vpop.f32.mrf.mxu3  ;;  %vm3429_vm6 = vcmp.eq.f32.partialorder %v3428_v0, 8.507059e+37  ;;  %v3445_v10 = vand.u32 2147483648, %v6686_v60  ;;  %vm3439_vm9 = vweird.f32 %v6686_v60  ;;  %v3163_v27 = vadd.f32 %v6576_v48, %v6677_v35 }
 0x918   :  { %v3257_v19 = vadd.f32 %v6471_v13, %v3256_v29  ;;  %v3422_v37 = vmul.f32 %v4753_v9, %v3421_v33  ;;  %v2979_v59 = vmul.f32 %v2963_v42, %v6275_v49  ;;  %4424 = vmatmul.msk.f32.gmra.mxu2 %vm223_vm1, %v3588_v24 }
 0x919   :  { %v3446_v33 = vor.u32 1.1754944e-38, %v3445_v10  ;;  %v3168_v42 = vpop.f32.mrf.mxu1 }
 0x91a   :  { %v4757_v31 = vpop.eup %4756  ;;  %v4407_v5 = vmul.f32 -1.442695, %v3257_v19  ;;  %v3423_v16 = vadd.f32 %v4753_v9, %v3422_v37  ;;  %4344 = vmatmul.msk.f32.gmra.mxu0 %vm912_vm10, %v2979_v59 }
 0x91b   :  { %v4759_v20 = vpop.eup %4758  ;;  %v6704_v53 = vadd.f32 1.0, %v4757_v31  ;;  %v2924_v34 = vpop.f32.mrf.mxu2 }
 0x91c   :  { %v3435_v44 = vmul.f32 %v4759_v20, %v6686_v60  ;;  %4762 = vpow2.f32 %v4407_v5  ;;  %v3427_v38 = vsel %vm3426_vm5, %v4753_v9, %v3423_v16  ;;  %v4761_v63 = vpop.eup %4760  ;;  %v2925_v54 = vadd.f32 %v6627_v6, %v2924_v34 }
 0x91d   :  { %4764 = vrcp.f32 %v6704_v53  ;;  %v3432_v21 = vsel %vm3429_vm6, %v3431_v41, %v3427_v38  ;;  %vm3440_vm8 = vweird.f32 %v4759_v20  ;;  %v3443_v9 = vand.u32 2147483647, %v6686_v60 }
 0x91e   :  { %v3436_v1 = vsub.f32 1.0, %v3435_v44  ;;  %v3589_v50 = vmul.f32 %v4761_v63, %v3432_v21  ;;  %4766 = vtanh.f32 %v3160_v14  ;;  %v2964_v45 = vmax.f32 %v2925_v54, 0.0  ;;  %vm3441_vm11 = vmor %vm3439_vm9, %vm3440_vm8 }
 0x91f   :  { %v6710_v56 = vpop.f32.mrf.mxu0  ;;  %v3259_v3 = vpop.f32.mrf.mxu3  ;;  %vm3444_vm12 = vcmp.eq.f32.partialorder %v3443_v9, 8.507059e+37  ;;  %v3460_v16 = vand.u32 2147483648, %v6704_v53  ;;  %vm3454_vm14 = vweird.f32 %v6704_v53  ;;  %v3166_v21 = vadd.f32 %v6576_v48, %v6699_v52 }
 0x920   :  { %v3260_v25 = vadd.f32 %v6471_v13, %v3259_v3  ;;  %v3437_v4 = vmul.f32 %v4759_v20, %v3436_v1  ;;  %v2980_v61 = vmul.f32 %v2964_v45, %v6299_v2  ;;  %4425 = vmatmul.msk.f32.gmra.mxu2 %vm223_vm1, %v3589_v50 }
 0x921   :  { %v3461_v50 = vor.u32 1.1754944e-38, %v3460_v16  ;;  %v3171_v52 = vpop.f32.mrf.mxu1 }
 0x922   :  { %v4763_v46 = vpop.eup %4762  ;;  %v4408_v40 = vmul.f32 -1.442695, %v3260_v25  ;;  %v3438_v32 = vadd.f32 %v4759_v20, %v3437_v4  ;;  %4345 = vmatmul.msk.f32.gmra.mxu0 %vm912_vm10, %v2980_v61 }
 0x923   :  { %v4765_v22 = vpop.eup %4764  ;;  %v6720_v15 = vadd.f32 1.0, %v4763_v46  ;;  %v2927_v29 = vpop.f32.mrf.mxu2 }
 0x924   :  { %v3450_v24 = vmul.f32 %v4765_v22, %v6704_v53  ;;  %4768 = vpow2.f32 %v4408_v40  ;;  %v3442_v12 = vsel %vm3441_vm11, %v4759_v20, %v3438_v32  ;;  %v4767_v19 = vpop.eup %4766  ;;  %v2928_v60 = vadd.f32 %v6627_v6, %v2927_v29 }
 0x925   :  { %4770 = vrcp.f32 %v6720_v15  ;;  %v3447_v37 = vsel %vm3444_vm12, %v3446_v33, %v3442_v12  ;;  %vm3455_vm13 = vweird.f32 %v4765_v22  ;;  %v3458_v20 = vand.u32 2147483647, %v6704_v53 }
 0x926   :  { %v3451_v35 = vsub.f32 1.0, %v3450_v24  ;;  %v3590_v0 = vmul.f32 %v4767_v19, %v3447_v37  ;;  %4772 = vtanh.f32 %v3163_v27  ;;  %v2965_v59 = vmax.f32 %v2928_v60, 0.0  ;;  %vm3456_vm15 = vmor %vm3454_vm14, %vm3455_vm13 }
 0x927   :  { %v6726_v31 = vpop.f32.mrf.mxu0  ;;  %v3262_v5 = vpop.f32.mrf.mxu3  ;;  %vm3459_vm0 = vcmp.eq.f32.partialorder %v3458_v20, 8.507059e+37  ;;  %v3475_v27 = vand.u32 2147483648, %v6720_v15  ;;  %v3473_v24 = vand.u32 2147483647, %v6720_v15  ;;  %vm3469_vm2 = vweird.f32 %v6720_v15 }
 0x928   :  { %v3263_v14 = vadd.f32 %v6471_v13, %v3262_v5  ;;  %v3452_v41 = vmul.f32 %v4765_v22, %v3451_v35  ;;  %v2981_v44 = vmul.f32 %v2965_v59, %v6323_v58  ;;  %4426 = vmatmul.msk.f32.gmra.mxu2 %vm223_vm1, %v3590_v0  ;;  %v3169_v35 = vadd.f32 %v6576_v48, %v3168_v42 }
 0x929   :  { %v3476_v59 = vor.u32 1.1754944e-38, %v3475_v27  ;;  %vm3474_vm4 = vcmp.eq.f32.partialorder %v3473_v24, 8.507059e+37 }
 0x92a   :  { %v4769_v34 = vpop.eup %4768  ;;  %v4409_v38 = vmul.f32 -1.442695, %v3263_v14  ;;  %v3453_v63 = vadd.f32 %v4765_v22, %v3452_v41  ;;  %4346 = vmatmul.msk.f32.gmra.mxu0 %vm912_vm10, %v2981_v44 }
 0x92b   :  { %v4771_v54 = vpop.eup %4770  ;;  %v6736_v1 = vadd.f32 1.0, %v4769_v34  ;;  %v2930_v3 = vpop.f32.mrf.mxu2 }
 0x92c   :  { %v3465_v45 = vmul.f32 %v4771_v54, %v6720_v15  ;;  %4774 = vpow2.f32 %v4409_v38  ;;  %v3457_v10 = vsel %vm3456_vm15, %v4765_v22, %v3453_v63  ;;  %v4773_v25 = vpop.eup %4772  ;;  %v2931_v53 = vadd.f32 %v6627_v6, %v2930_v3 }
 0x92d   :  { %4776 = vrcp.f32 %v6736_v1  ;;  %v3462_v4 = vsel %vm3459_vm0, %v3461_v50, %v3457_v10  ;;  %vm3470_vm7 = vweird.f32 %v4771_v54  ;;  %v3174_v50 = vpop.f32.mrf.mxu1  ;;  %v3488_v3 = vand.u32 2147483647, %v6736_v1 }
 0x92e   :  { %v3466_v9 = vsub.f32 1.0, %v3465_v45  ;;  %v3591_v61 = vmul.f32 %v4773_v25, %v3462_v4  ;;  %4778 = vtanh.f32 %v3166_v21  ;;  %v2966_v46 = vmax.f32 %v2931_v53, 0.0  ;;  %vm3471_vm3 = vmor %vm3469_vm2, %vm3470_vm7 }
 0x92f   :  { %v6742_v40 = vpop.f32.mrf.mxu0  ;;  %v3265_v32 = vpop.f32.mrf.mxu3  ;;  %v3490_v21 = vand.u32 2147483648, %v6736_v1  ;;  %vm3484_vm6 = vweird.f32 %v6736_v1  ;;  %vm3489_vm9 = vcmp.eq.f32.partialorder %v3488_v3, 8.507059e+37 }
 0x930   :  { %v3266_v33 = vadd.f32 %v6471_v13, %v3265_v32  ;;  %v3467_v22 = vmul.f32 %v4771_v54, %v3466_v9  ;;  %v2982_v29 = vmul.f32 %v2966_v46, %v6347_v7  ;;  %4427 = vmatmul.msk.f32.gmra.mxu2 %vm223_vm1, %v3591_v61  ;;  %v3172_v61 = vadd.f32 %v6576_v48, %v3171_v52 }
 0x931   :  { %v3491_v32 = vor.u32 1.1754944e-38, %v3490_v21 }
 0x932   :  { %v4775_v12 = vpop.eup %4774  ;;  %v4410_v19 = vmul.f32 -1.442695, %v3266_v33  ;;  %v3468_v60 = vadd.f32 %v4771_v54, %v3467_v22  ;;  %4347 = vmatmul.msk.f32.gmra.mxu0 %vm912_vm10, %v2982_v29 }
 0x933   :  { %v4777_v37 = vpop.eup %4776  ;;  %v6751_v0 = vadd.f32 1.0, %v4775_v12  ;;  %v2933_v16 = vpop.f32.mrf.mxu2 }
 0x934   :  { %v3480_v5 = vmul.f32 %v4777_v37, %v6736_v1  ;;  %4780 = vpow2.f32 %v4410_v19  ;;  %v3472_v14 = vsel %vm3471_vm3, %v4771_v54, %v3468_v60  ;;  %v4779_v41 = vpop.eup %4778  ;;  %v2934_v15 = vadd.f32 %v6627_v6, %v2933_v16 }
 0x935   :  { %4782 = vrcp.f32 %v6751_v0  ;;  %v3477_v20 = vsel %vm3474_vm4, %v3476_v59, %v3472_v14  ;;  %vm3485_vm5 = vweird.f32 %v4777_v37  ;;  %v3505_v59 = vand.u32 2147483648, %v6751_v0 }
 0x936   :  { %v3481_v44 = vsub.f32 1.0, %v3480_v5  ;;  %v3592_v42 = vmul.f32 %v4779_v41, %v3477_v20  ;;  %4784 = vtanh.f32 %v3169_v35  ;;  %v2967_v34 = vmax.f32 %v2934_v15, 0.0  ;;  %vm3486_vm8 = vmor %vm3484_vm6, %vm3485_vm5  ;;  %v3177_v15 = vpop.f32.mrf.mxu1 }
 0x937   :  { %v6757_v38 = vpop.f32.mrf.mxu0  ;;  %v3268_v63 = vpop.f32.mrf.mxu3  ;;  %vm3499_vm12 = vweird.f32 %v6751_v0  ;;  %v3506_v21 = vor.u32 1.1754944e-38, %v3505_v59 }
 0x938   :  { %v3269_v45 = vadd.f32 %v6471_v13, %v3268_v63  ;;  %v3482_v54 = vmul.f32 %v4777_v37, %v3481_v44  ;;  %v2983_v10 = vmul.f32 %v2967_v34, %v6371_v39  ;;  %4428 = vmatmul.msk.f32.gmra.mxu2 %vm223_vm1, %v3592_v42  ;;  %v3175_v34 = vadd.f32 %v6576_v48, %v3174_v50 }
 0x93a   :  { %v4781_v25 = vpop.eup %4780  ;;  %v4411_v53 = vmul.f32 -1.442695, %v3269_v45  ;;  %v3483_v4 = vadd.f32 %v4777_v37, %v3482_v54  ;;  %4348 = vmatmul.msk.f32.gmra.mxu0 %vm912_vm10, %v2983_v10 }
 0x93b   :  { %v4783_v9 = vpop.eup %4782  ;;  %v6766_v46 = vadd.f32 1.0, %v4781_v25  ;;  %v2936_v33 = vpop.f32.mrf.mxu2 }
 0x93c   :  { %v3495_v27 = vmul.f32 %v4783_v9, %v6751_v0  ;;  %4786 = vpow2.f32 %v4411_v53  ;;  %v3487_v22 = vsel %vm3486_vm8, %v4777_v37, %v3483_v4  ;;  %v4785_v24 = vpop.eup %4784  ;;  %v2937_v1 = vadd.f32 %v6627_v6, %v2936_v33 }
 0x93d   :  { %4788 = vrcp.f32 %v6766_v46  ;;  %v3492_v29 = vsel %vm3489_vm9, %v3491_v32, %v3487_v22  ;;  %vm3500_vm11 = vweird.f32 %v4783_v9  ;;  %v3503_v37 = vand.u32 2147483647, %v6751_v0 }
 0x93e   :  { %v3496_v12 = vsub.f32 1.0, %v3495_v27  ;;  %v3593_v52 = vmul.f32 %v4785_v24, %v3492_v29  ;;  %4790 = vtanh.f32 %v3172_v61  ;;  %v2968_v19 = vmax.f32 %v2937_v1, 0.0  ;;  %vm3501_vm13 = vmor %vm3499_vm12, %vm3500_vm11 }
 0x93f   :  { %v6772_v60 = vpop.f32.mrf.mxu0  ;;  %v3271_v35 = vpop.f32.mrf.mxu3  ;;  %vm3504_vm14 = vcmp.eq.f32.partialorder %v3503_v37, 8.507059e+37  ;;  %v3520_v27 = vand.u32 2147483648, %v6766_v46  ;;  %vm3514_vm0 = vweird.f32 %v6766_v46 }
 0x940   :  { %v3272_v5 = vadd.f32 %v6471_v13, %v3271_v35  ;;  %v3497_v16 = vmul.f32 %v4783_v9, %v3496_v12  ;;  %v2984_v14 = vmul.f32 %v2968_v19, %v6395_v30  ;;  %4429 = vmatmul.msk.f32.gmra.mxu2 %vm223_vm1, %v3593_v52  ;;  %v3178_v19 = vadd.f32 %v6576_v48, %v3177_v15 }
 0x942   :  { %v4787_v41 = vpop.eup %4786  ;;  %v4412_v20 = vmul.f32 -1.442695, %v3272_v5  ;;  %v3498_v44 = vadd.f32 %v4783_v9, %v3497_v16  ;;  %4349 = vmatmul.msk.f32.gmra.mxu0 %vm912_vm10, %v2984_v14  ;;  %v3180_v5 = vpop.f32.mrf.mxu1 }
 0x943   :  { %v4789_v42 = vpop.eup %4788  ;;  %v6781_v63 = vadd.f32 1.0, %v4787_v41  ;;  %v2939_v54 = vpop.f32.mrf.mxu2 }
 0x944   :  { %v3510_v45 = vmul.f32 %v4789_v42, %v6766_v46  ;;  %4792 = vpow2.f32 %v4412_v20  ;;  %v3502_v3 = vsel %vm3501_vm13, %v4783_v9, %v3498_v44  ;;  %v4791_v10 = vpop.eup %4790  ;;  %v2940_v0 = vadd.f32 %v6627_v6, %v2939_v54 }
 0x945   :  { %4794 = vrcp.f32 %v6781_v63  ;;  %v3507_v25 = vsel %vm3504_vm14, %v3506_v21, %v3502_v3  ;;  %vm3515_vm15 = vweird.f32 %v4789_v42  ;;  %v3518_v9 = vand.u32 2147483647, %v6766_v46 }
 0x946   :  { %v3511_v53 = vsub.f32 1.0, %v3510_v45  ;;  %v3594_v50 = vmul.f32 %v4791_v10, %v3507_v25  ;;  %4796 = vtanh.f32 %v3175_v34  ;;  %v2969_v4 = vmax.f32 %v2940_v0, 0.0  ;;  %vm3516_vm7 = vmor %vm3514_vm0, %vm3515_vm15  ;;  %v4443_v25 = vld [vmem:[%s7116_s21 + $0xb8] sm:$0xff] }
 0x947   :  { %v6787_v61 = vpop.f32.mrf.mxu0  ;;  %v3274_v32 = vpop.f32.mrf.mxu3  ;;  %vm3519_vm2 = vcmp.eq.f32.partialorder %v3518_v9, 8.507059e+37  ;;  %v3535_v45 = vand.u32 2147483648, %v6781_v63  ;;  %v3533_v10 = vand.u32 2147483647, %v6781_v63  ;;  %vm3529_vm4 = vweird.f32 %v6781_v63  ;;  %3820 = vmatpush.msrb.mxu0 %v4443_v25 }
 0x948   :  { %v3275_v33 = vadd.f32 %v6471_v13, %v3274_v32  ;;  %v3512_v22 = vmul.f32 %v4789_v42, %v3511_v53  ;;  %v2985_v24 = vmul.f32 %v2969_v4, %v6419_v18  ;;  %4430 = vmatmul.msk.f32.gmra.mxu2 %vm223_vm1, %v3594_v50  ;;  %v3521_v13 = vor.u32 1.1754944e-38, %v3520_v27 }
 0x949   :  { %v3181_v27 = vadd.f32 %v6576_v48, %v3180_v5  ;;  %vm3534_vm6 = vcmp.eq.f32.partialorder %v3533_v10, 8.507059e+37 }
 0x94a   :  { %v4793_v1 = vpop.eup %4792  ;;  %v4413_v29 = vmul.f32 -1.442695, %v3275_v33  ;;  %v3513_v12 = vadd.f32 %v4789_v42, %v3512_v22  ;;  %4350 = vmatmul.msk.f32.gmra.mxu0 %vm912_vm10, %v2985_v24  ;;  %v3536_v22 = vor.u32 1.1754944e-38, %v3535_v45 }
 0x94b   :  { %v4795_v52 = vpop.eup %4794  ;;  %v6796_v35 = vadd.f32 1.0, %v4793_v1  ;;  %v2942_v16 = vpop.f32.mrf.mxu2 }
 0x94c   :  { %v3525_v59 = vmul.f32 %v4795_v52, %v6781_v63  ;;  %4798 = vpow2.f32 %v4413_v29  ;;  %v3517_v37 = vsel %vm3516_vm7, %v4789_v42, %v3513_v12  ;;  %v4797_v14 = vpop.eup %4796  ;;  %v2943_v46 = vadd.f32 %v6627_v6, %v2942_v16  ;;  %v4819_v42 = vld [vmem:[%s7113_s18 + $0x2] ss:$0 sm:$0xff] }
 0x94d   :  { %4800 = vrcp.f32 %v6796_v35  ;;  %v3522_v41 = vsel %vm3519_vm2, %v3521_v13, %v3517_v37  ;;  %vm3530_vm3 = vweird.f32 %v4795_v52  ;;  %v3183_v13 = vpop.f32.mrf.mxu1  ;;  %v3550_v37 = vand.u32 2147483648, %v6796_v35 }
 0x94e   :  { %v3526_v15 = vsub.f32 1.0, %v3525_v59  ;;  %v3595_v20 = vmul.f32 %v4797_v14, %v3522_v41  ;;  %4802 = vtanh.f32 %v3178_v19  ;;  %v2970_v44 = vmax.f32 %v2943_v46, 0.0  ;;  %vm3531_vm5 = vmor %vm3529_vm4, %vm3530_vm3 }
 0x94f   :  { %v6802_v34 = vpop.f32.mrf.mxu0  ;;  %v3277_v21 = vpop.f32.mrf.mxu3  ;;  %v3548_v46 = vand.u32 2147483647, %v6796_v35  ;;  %vm3544_vm9 = vweird.f32 %v6796_v35 }
 0x950   :  { %v3278_v54 = vadd.f32 %v4819_v42, %v3277_v21  ;;  %v3527_v3 = vmul.f32 %v4795_v52, %v3526_v15  ;;  %v2986_v0 = vmul.f32 %v2970_v44, %v6443_v62  ;;  %4431 = vmatmul.msk.f32.gmra.mxu2 %vm223_vm1, %v3595_v20  ;;  %v4441_v15 = vld [vmem:[%s7116_s21 + $0xa8] sm:$0xff]  ;;  %v4440_v20 = vld [vmem:[%s7116_s21 + $0xa0] sm:$0xff]  ;;  %v3184_v42 = vadd.f32 %v6576_v48, %v3183_v13  ;;  %v4439_v48 = vld [vmem:[%s7116_s21 + $0x98] sm:$0xff] }
 0x951   :  { %vm3549_vm12 = vcmp.eq.f32.partialorder %v3548_v46, 8.507059e+37  ;;  %v4436_v13 = vld [vmem:[%s7116_s21 + $0x80] sm:$0xff] }
 0x952   :  { %v4799_v53 = vpop.eup %4798  ;;  %v4414_v50 = vmul.f32 -1.442695, %v3278_v54  ;;  %v3528_v4 = vadd.f32 %v4795_v52, %v3527_v3  ;;  %4351 = vmatmul.msk.f32.gmra.mxu0 %vm912_vm10, %v2986_v0  ;;  %v3551_v3 = vor.u32 1.1754944e-38, %v3550_v37  ;;  %v4820_v37 = vld [vmem:[%s7112_s16 + $0x2] ss:$0 sm:$0xff] }
 0x953   :  { %v4801_v32 = vpop.eup %4800  ;;  %v6816_v33 = vadd.f32 1.0, %v4799_v53  ;;  %v2945_v24 = vpop.f32.mrf.mxu2 }
 0x954   :  { %v3540_v9 = vmul.f32 %v4801_v32, %v6796_v35  ;;  %4804 = vpow2.f32 %v4414_v50  ;;  %v3532_v1 = vsel %vm3531_vm5, %v4795_v52, %v3528_v4  ;;  %v4803_v29 = vpop.eup %4802  ;;  %v2946_v63 = vadd.f32 %v6627_v6, %v2945_v24  ;;  %v4442_v52 = vld [vmem:[%s7116_s21 + $0xb0] sm:$0xff] }
 0x955   :  { %4806 = vrcp.f32 %v6816_v33  ;;  %v3537_v12 = vsel %vm3534_vm6, %v3536_v22, %v3532_v1  ;;  %vm3545_vm8 = vweird.f32 %v4801_v32  ;;  %3821 = vmatpush.msrb.mxu0 %v4442_v52  ;;  %v4438_v24 = vld [vmem:[%s7116_s21 + $0x90] sm:$0xff]  ;;  %v3186_v1 = vpop.f32.mrf.mxu1  ;;  %vm3559_vm14 = vweird.f32 %v6816_v33 }
 0x956   :  { %v3541_v19 = vsub.f32 1.0, %v3540_v9  ;;  %v3596_v59 = vmul.f32 %v4803_v29, %v3537_v12  ;;  %4808 = vtanh.f32 %v3181_v27  ;;  %v2971_v5 = vmax.f32 %v2946_v63, 0.0  ;;  %vm3546_vm11 = vmor %vm3544_vm9, %vm3545_vm8 }
 0x957   :  { %v6822_v16 = vpop.f32.mrf.mxu0  ;;  %3822 = vmatpush.msrb.mxu0 %v4441_v15  ;;  %v3563_v63 = vand.u32 2147483647, %v6816_v33  ;;  %v3187_v52 = vadd.f32 %v4820_v37, %v3186_v1  ;;  %vm4037_vm5 = vcmask 785408   ;;  %vm4053_vm6 = vcmask 783360  }
 0x958   :  { %v3542_v14 = vmul.f32 %v4801_v32, %v3541_v19  ;;  %v2987_v41 = vmul.f32 %v2971_v5, %v6482_v8  ;;  %4432 = vmatmul.msk.f32.gmra.mxu2 %vm223_vm1, %v3596_v59  ;;  %v4437_v19 = vld [vmem:[%s7116_s21 + $0x88] sm:$0xff] }
 0x959   :  { %3823 = vmatpush.msrb.mxu0 %v4440_v20  ;;  %vm3564_vm0 = vcmp.eq.f32.partialorder %v3563_v63, 8.507059e+37 }
 0x95a   :  { %v4805_v44 = vpop.eup %4804  ;;  %v3543_v21 = vadd.f32 %v4801_v32, %v3542_v14  ;;  %4352 = vmatmul.msk.f32.gmra.mxu0 %vm912_vm10, %v2987_v41 }
 0x95b   :  { %v4807_v45 = vpop.eup %4806  ;;  %v6839_v54 = vadd.f32 1.0, %v4805_v44  ;;  %v2948_v0 = vpop.f32.mrf.mxu2  ;;  %3824 = vmatpush.msrb.mxu0 %v4439_v48 }
 0x95c   :  { %v3555_v10 = vmul.f32 %v4807_v45, %v6816_v33  ;;  %v3547_v25 = vsel %vm3546_vm11, %v4801_v32, %v3543_v21  ;;  %v4809_v53 = vpop.eup %4808  ;;  %v2949_v35 = vadd.f32 %v6627_v6, %v2948_v0  ;;  %v3565_v32 = vand.u32 2147483648, %v6816_v33 }
 0x95d   :  { %4810 = vrcp.f32 %v6839_v54  ;;  %v3552_v50 = vsel %vm3549_vm12, %v3551_v3, %v3547_v25  ;;  %vm3560_vm13 = vweird.f32 %v4807_v45  ;;  %3825 = vmatpush.msrb.mxu0 %v4438_v24  ;;  %v3580_v0 = vand.u32 2147483648, %v6839_v54 }
 0x95e   :  { %v3556_v4 = vsub.f32 1.0, %v3555_v10  ;;  %v3597_v27 = vmul.f32 %v4809_v53, %v3552_v50  ;;  %4812 = vtanh.f32 %v3184_v42  ;;  %v2972_v22 = vmax.f32 %v2949_v35, 0.0  ;;  %vm3561_vm15 = vmor %vm3559_vm14, %vm3560_vm13 }
 0x95f   :  { %v6849_v9 = vpop.f32.mrf.mxu0  ;;  %3826 = vmatpush.msrb.mxu0 %v4437_v19  ;;  %v3566_v14 = vor.u32 1.1754944e-38, %v3565_v32  ;;  %4814 = vtanh.f32 %v3187_v52  ;;  %v3578_v53 = vand.u32 2147483647, %v6839_v54  ;;  %vm3574_vm2 = vweird.f32 %v6839_v54 }
 0x960   :  { %v3557_v29 = vmul.f32 %v4807_v45, %v3556_v4  ;;  %v2988_v12 = vmul.f32 %v2972_v22, %v6531_v26  ;;  %4433 = vmatmul.msk.f32.gmra.mxu2 %vm223_vm1, %v3597_v27  ;;  %v3581_v50 = vor.u32 1.1754944e-38, %v3580_v0 }
 0x961   :  { %3827 = vmatpush.msrb.mxu0 %v4436_v13  ;;  %vm3579_vm4 = vcmp.eq.f32.partialorder %v3578_v53, 8.507059e+37 }
 0x962   :  { %v3558_v59 = vadd.f32 %v4807_v45, %v3557_v29  ;;  %4353 = vmatmul.msk.f32.gmra.mxu0 %vm912_vm10, %v2988_v12 }
 0x963   :  { %v4811_v5 = vpop.eup %4810  ;;  %v2951_v41 = vpop.f32.mrf.mxu2 }
 0x964   :  { %v3570_v46 = vmul.f32 %v4811_v5, %v6839_v54  ;;  %v3562_v15 = vsel %vm3561_vm15, %v4807_v45, %v3558_v59  ;;  %v4813_v20 = vpop.eup %4812  ;;  %v2952_v33 = vadd.f32 %v6627_v6, %v2951_v41  ;;  %vm3575_vm7 = vweird.f32 %v4811_v5 }
 0x965   :  { %v3567_v44 = vsel %vm3564_vm0, %v3566_v14, %v3562_v15  ;;  %vm3576_vm3 = vmor %vm3574_vm2, %vm3575_vm7  ;;  %v4815_v27 = vpop.eup %4814 }
 0x966   :  { %v3571_v21 = vsub.f32 1.0, %v3570_v46  ;;  %v3598_v42 = vmul.f32 %v4813_v20, %v3567_v44  ;;  %v2973_v3 = vmax.f32 %v2952_v33, 0.0 }
 0x967   :  { %v6871_v10 = vpop.f32.mrf.mxu0 }
 0x968   :  { %v3572_v25 = vmul.f32 %v4811_v5, %v3571_v21  ;;  %v2989_v45 = vmul.f32 %v2973_v3, %v6571_v43  ;;  %4434 = vmatmul.msk.f32.gmra.mxu2 %vm223_vm1, %v3598_v42 }
 0x96a   :  { %v3573_v35 = vadd.f32 %v4811_v5, %v3572_v25  ;;  %4354 = vmatmul.msk.f32.gmra.mxu0 %vm912_vm10, %v2989_v45 }
 0x96b   :  { %v2954_v48 = vpop.f32.mrf.mxu2 }
 0x96c   :  { %v3577_v4 = vsel %vm3576_vm3, %v4811_v5, %v3573_v35  ;;  %v2955_v22 = vadd.f32 %v6627_v6, %v2954_v48  ;;  %v6892_v5 = vld [vmem:[%s7115_s20 + $0x2] ss:$0 sm:$0xff]  ;;  %s4823_s20 = smov 64  }
 0x96d   :  { %v3582_v32 = vsel %vm3579_vm4, %v3581_v50, %v3577_v4 }
 0x96e   :  { %v3599_v24 = vmul.f32 %v4815_v27, %v3582_v32  ;;  %v2974_v1 = vmax.f32 %v2955_v22, 0.0 }
 0x96f   :  { %v6880_v29 = vpop.f32.mrf.mxu0 }
 0x970   :  { %v2990_v63 = vmul.f32 %v2974_v1, %v6598_v11  ;;  %4435 = vmatmul.msk.f32.gmra.mxu2 %vm223_vm1, %v3599_v24 }
 0x972   :  { %4355 = vmatmul.msk.f32.gmra.mxu0 %vm912_vm10, %v2990_v63 }
 0x973   :  { %v2957_v54 = vpop.f32.mrf.mxu2 }
 0x974   :  { %v2958_v12 = vadd.f32 %v6627_v6, %v2957_v54 }
 0x976   :  { %v2975_v19 = vmax.f32 %v2958_v12, 0.0 }
 0x977   :  { %v6886_v13 = vpop.f32.mrf.mxu0 }
 0x978   :  { %v2991_v59 = vmul.f32 %v2975_v19, %v6617_v55 }
 0x97a   :  { %4356 = vmatmul.msk.f32.gmra.mxu0 %vm912_vm10, %v2991_v59 }
 0x97b   :  { %v3675_v37 = vpop.f32.mrf.mxu2 }
 0x97c   :  { %v3676_v52 = vadd.f32 %v6892_v5, %v3675_v37 }
 0x97e   :  { %v3723_v14 = vmax.f32 %v3676_v52, 0.0 }
 0x97f   :  { %v3066_v46 = vpop.f32.mrf.mxu0 }
 0x980   :  { %v3739_v41 = vmul.f32 %v3723_v14, %v6203_v23  ;;  %3893 = vrot.lane.b32.xlu0 %v3066_v46, %s4822_s0 }
 0x982   :  { %4444 = vmatmul.msk.f32.vlgmr.msrb.gmra.mxu0 %vm912_vm10, %v3739_v41 }
 0x983   :  { %v3678_v6 = vpop.f32.mrf.mxu2 }
 0x984   :  { %v3679_v15 = vadd.f32 %v6892_v5, %v3678_v6 }
 0x986   :  { %v3724_v20 = vmax.f32 %v3679_v15, 0.0 }
 0x987   :  { %v3069_v33 = vpop.f32.mrf.mxu0 }
 0x988   :  { %v3740_v44 = vmul.f32 %v3724_v20, %v6227_v17  ;;  %3895 = vrot.lane.b32.xlu2 %v3069_v33, %s4822_s0 }
 0x98a   :  { %4445 = vmatmul.msk.f32.gmra.mxu0 %vm912_vm10, %v3740_v44 }
 0x98b   :  { %v3681_v21 = vpop.f32.mrf.mxu2 }
 0x98c   :  { %v3682_v42 = vadd.f32 %v6892_v5, %v3681_v21 }
 0x98e   :  { %v3725_v3 = vmax.f32 %v3682_v42, 0.0 }
 0x98f   :  { %v3072_v23 = vpop.f32.mrf.mxu0 }
 0x990   :  { %v3741_v0 = vmul.f32 %v3725_v3, %v6251_v36  ;;  %3897 = vrot.lane.b32.xlu1 %v3072_v23, %s4822_s0 }
 0x992   :  { %4446 = vmatmul.msk.f32.gmra.mxu0 %vm912_vm10, %v3741_v0 }
 0x993   :  { %v3684_v25 = vpop.f32.mrf.mxu2 }
 0x994   :  { %v3685_v53 = vadd.f32 %v6892_v5, %v3684_v25 }
 0x996   :  { %v3726_v45 = vmax.f32 %v3685_v53, 0.0 }
 0x997   :  { %v3075_v17 = vpop.f32.mrf.mxu0 }
 0x998   :  { %v3742_v35 = vmul.f32 %v3726_v45, %v6275_v49  ;;  %3899 = vrot.lane.b32.xlu0 %v3075_v17, %s4822_s0 }
 0x99a   :  { %4447 = vmatmul.msk.f32.gmra.mxu0 %vm912_vm10, %v3742_v35 }
 0x99b   :  { %v3687_v50 = vpop.f32.mrf.mxu2 }
 0x99c   :  { %v3688_v48 = vadd.f32 %v6892_v5, %v3687_v50 }
 0x99e   :  { %v3727_v4 = vmax.f32 %v3688_v48, 0.0 }
 0x99f   :  { %v3078_v36 = vpop.f32.mrf.mxu0 }
 0x9a0   :  { %v3743_v27 = vmul.f32 %v3727_v4, %v6299_v2  ;;  %3901 = vrot.lane.b32.xlu2 %v3078_v36, %s4822_s0 }
 0x9a2   :  { %4448 = vmatmul.msk.f32.gmra.mxu0 %vm912_vm10, %v3743_v27 }
 0x9a3   :  { %v3690_v22 = vpop.f32.mrf.mxu2 }
 0x9a4   :  { %v3691_v32 = vadd.f32 %v6892_v5, %v3690_v22 }
 0x9a6   :  { %v3728_v24 = vmax.f32 %v3691_v32, 0.0 }
 0x9a7   :  { %v3081_v49 = vpop.f32.mrf.mxu0 }
 0x9a8   :  { %v3744_v1 = vmul.f32 %v3728_v24, %v6323_v58  ;;  %3903 = vrot.lane.b32.xlu1 %v3081_v49, %s4822_s0 }
 0x9aa   :  { %4449 = vmatmul.msk.f32.gmra.mxu0 %vm912_vm10, %v3744_v1 }
 0x9ab   :  { %v3693_v63 = vpop.f32.mrf.mxu2 }
 0x9ac   :  { %v3694_v54 = vadd.f32 %v6892_v5, %v3693_v63 }
 0x9ae   :  { %v3729_v12 = vmax.f32 %v3694_v54, 0.0 }
 0x9af   :  { %v3084_v2 = vpop.f32.mrf.mxu0 }
 0x9b0   :  { %v3745_v19 = vmul.f32 %v3729_v12, %v6347_v7  ;;  %3905 = vrot.lane.b32.xlu0 %v3084_v2, %s4822_s0 }
 0x9b2   :  { %4450 = vmatmul.msk.f32.gmra.mxu0 %vm912_vm10, %v3745_v19 }
 0x9b3   :  { %v3696_v59 = vpop.f32.mrf.mxu2 }
 0x9b4   :  { %v3697_v37 = vadd.f32 %v6892_v5, %v3696_v59 }
 0x9b6   :  { %v3730_v52 = vmax.f32 %v3697_v37, 0.0 }
 0x9b7   :  { %v3087_v58 = vpop.f32.mrf.mxu0 }
 0x9b8   :  { %v3746_v14 = vmul.f32 %v3730_v52, %v6371_v39  ;;  %3907 = vrot.lane.b32.xlu2 %v3087_v58, %s4822_s0 }
 0x9ba   :  { %4451 = vmatmul.msk.f32.gmra.mxu0 %vm912_vm10, %v3746_v14 }
 0x9bb   :  { %v3699_v46 = vpop.f32.mrf.mxu2 }
 0x9bc   :  { %v3700_v41 = vadd.f32 %v6892_v5, %v3699_v46 }
 0x9be   :  { %v3731_v6 = vmax.f32 %v3700_v41, 0.0 }
 0x9bf   :  { %v3090_v7 = vpop.f32.mrf.mxu0 }
 0x9c0   :  { %v3747_v15 = vmul.f32 %v3731_v6, %v6395_v30  ;;  %3909 = vrot.lane.b32.xlu1 %v3090_v7, %s4822_s0 }
 0x9c2   :  { %4452 = vmatmul.msk.f32.gmra.mxu0 %vm912_vm10, %v3747_v15 }
 0x9c3   :  { %v3702_v20 = vpop.f32.mrf.mxu2 }
 0x9c4   :  { %v3703_v33 = vadd.f32 %v6892_v5, %v3702_v20 }
 0x9c6   :  { %v3732_v44 = vmax.f32 %v3703_v33, 0.0 }
 0x9c7   :  { %v3093_v39 = vpop.f32.mrf.mxu0 }
 0x9c8   :  { %v3748_v21 = vmul.f32 %v3732_v44, %v6419_v18  ;;  %3911 = vrot.lane.b32.xlu0 %v3093_v39, %s4822_s0 }
 0x9ca   :  { %4453 = vmatmul.msk.f32.gmra.mxu0 %vm912_vm10, %v3748_v21 }
 0x9cb   :  { %v3705_v42 = vpop.f32.mrf.mxu2 }
 0x9cc   :  { %v3706_v3 = vadd.f32 %v6892_v5, %v3705_v42 }
 0x9ce   :  { %v3733_v23 = vmax.f32 %v3706_v3, 0.0 }
 0x9cf   :  { %v3096_v30 = vpop.f32.mrf.mxu0 }
 0x9d0   :  { %v3749_v0 = vmul.f32 %v3733_v23, %v6443_v62  ;;  %3913 = vrot.lane.b32.xlu2 %v3096_v30, %s4822_s0 }
 0x9d2   :  { %4454 = vmatmul.msk.f32.gmra.mxu0 %vm912_vm10, %v3749_v0 }
 0x9d3   :  { %v3708_v25 = vpop.f32.mrf.mxu2 }
 0x9d4   :  { %v3709_v53 = vadd.f32 %v6892_v5, %v3708_v25 }
 0x9d6   :  { %v3734_v45 = vmax.f32 %v3709_v53, 0.0 }
 0x9d7   :  { %v3099_v18 = vpop.f32.mrf.mxu0 }
 0x9d8   :  { %v3750_v17 = vmul.f32 %v3734_v45, %v6482_v8  ;;  %3915 = vrot.lane.b32.xlu1 %v3099_v18, %s4822_s0 }
 0x9da   :  { %4455 = vmatmul.msk.f32.gmra.mxu0 %vm912_vm10, %v3750_v17 }
 0x9db   :  { %v3711_v35 = vpop.f32.mrf.mxu2 }
 0x9dc   :  { %v3712_v50 = vadd.f32 %v6892_v5, %v3711_v35 }
 0x9de   :  { %v3735_v48 = vmax.f32 %v3712_v50, 0.0 }
 0x9df   :  { %v3102_v62 = vpop.f32.mrf.mxu0 }
 0x9e0   :  { %v3751_v4 = vmul.f32 %v3735_v48, %v6531_v26  ;;  %3917 = vrot.lane.b32.xlu0 %v3102_v62, %s4822_s0 }
 0x9e2   :  { %4456 = vmatmul.msk.f32.gmra.mxu0 %vm912_vm10, %v3751_v4  ;;  %v3896_v14 = vpop.permute.xlu2 %3895 }
 0x9e3   :  { %v3714_v36 = vpop.f32.mrf.mxu2 }
 0x9e4   :  { %v3715_v27 = vadd.f32 %v6892_v5, %v3714_v36 }
 0x9e6   :  { %v3736_v22 = vmax.f32 %v3715_v27, 0.0 }
 0x9e7   :  { %v3105_v8 = vpop.f32.mrf.mxu0 }
 0x9e8   :  { %v3752_v32 = vmul.f32 %v3736_v22, %v6571_v43  ;;  %3919 = vrot.lane.b32.xlu2 %v3105_v8, %s4822_s0  ;;  %v4006_v8 = vsel %vm223_vm1, %v6658_v28, %v3896_v14 }
 0x9ea   :  { %4457 = vmatmul.msk.f32.gmra.mxu0 %vm912_vm10, %v3752_v32 }
 0x9eb   :  { %v3717_v24 = vpop.f32.mrf.mxu2 }
 0x9ec   :  { %v3718_v49 = vadd.f32 %v6892_v5, %v3717_v24 }
 0x9ee   :  { %v3737_v1 = vmax.f32 %v3718_v49, 0.0 }
 0x9ef   :  { %v3108_v26 = vpop.f32.mrf.mxu0 }
 0x9f0   :  { %v3753_v63 = vmul.f32 %v3737_v1, %v6598_v11  ;;  %3921 = vrot.lane.b32.xlu1 %v3108_v26, %s4822_s0 }
 0x9f2   :  { %4458 = vmatmul.msk.f32.gmra.mxu0 %vm912_vm10, %v3753_v63  ;;  %v3894_v44 = vpop.permute.xlu0 %3893 }
 0x9f3   :  { %v3720_v54 = vpop.f32.mrf.mxu2  ;;  %v4005_v23 = vsel %vm223_vm1, %v6640_v57, %v3894_v44 }
 0x9f4   :  { %v3721_v12 = vadd.f32 %v6892_v5, %v3720_v54 }
 0x9f6   :  { %v3738_v2 = vmax.f32 %v3721_v12, 0.0 }
 0x9f7   :  { %v3111_v43 = vpop.f32.mrf.mxu0 }
 0x9f8   :  { %v3754_v19 = vmul.f32 %v3738_v2, %v6617_v55  ;;  %3923 = vrot.lane.b32.xlu0 %v3111_v43, %s4822_s0 }
 0x9fa   :  { %4459 = vmatmul.msk.f32.gmra.mxu0 %vm912_vm10, %v3754_v19  ;;  %v3902_v41 = vpop.permute.xlu2 %3901 }
 0x9ff   :  { %v3829_v59 = vpop.f32.mrf.mxu0 }
 0xa00   :  { %3957 = vrot.lane.b32.xlu2 %v3829_v59, %s4823_s20 }
 0xa02   :  { %v3898_v39 = vpop.permute.xlu1 %3897 }
 0xa07   :  { %v3832_v11 = vpop.f32.mrf.mxu0 }
 0xa08   :  { %3959 = vrot.lane.b32.xlu1 %v3832_v11, %s4823_s20 }
 0xa0a   :  { %v3900_v3 = vpop.permute.xlu0 %3899 }
 0xa0b   :  { %v4008_v62 = vsel %vm223_vm1, %v6692_v47, %v3900_v3  ;;  %v4007_v47 = vsel %vm223_vm1, %v6674_v51, %v3898_v39  ;;  %v4009_v51 = vsel %vm223_vm1, %v6710_v56, %v3902_v41 }
 0xa0f   :  { %v3835_v37 = vpop.f32.mrf.mxu0 }
 0xa10   :  { %3961 = vrot.lane.b32.xlu0 %v3835_v37, %s4823_s20 }
 0xa12   :  { %v6968_v7 = vpop.permute.xlu2 %3907 }
 0xa17   :  { %v3838_v52 = vpop.f32.mrf.mxu0 }
 0xa18   :  { %3963 = vrot.lane.b32.xlu2 %v3838_v52, %s4823_s20 }
 0xa1a   :  { %v3904_v30 = vpop.permute.xlu1 %3903 }
 0xa1f   :  { %v3841_v5 = vpop.f32.mrf.mxu0 }
 0xa20   :  { %3965 = vrot.lane.b32.xlu1 %v3841_v5, %s4823_s20 }
 0xa22   :  { %v3906_v45 = vpop.permute.xlu0 %3905 }
 0xa23   :  { %v4011_v28 = vsel %vm223_vm1, %v6742_v40, %v3906_v45  ;;  %v4010_v40 = vsel %vm223_vm1, %v6726_v31, %v3904_v30  ;;  %v4012_v31 = vsel %vm223_vm1, %v6757_v38, %v6968_v7 }
 0xa27   :  { %v3844_v55 = vpop.f32.mrf.mxu0 }
 0xa28   :  { %3967 = vrot.lane.b32.xlu0 %v3844_v55, %s4823_s20 }
 0xa2a   :  { %v6971_v20 = vpop.permute.xlu2 %3913 }
 0xa2f   :  { %v3847_v58 = vpop.f32.mrf.mxu0 }
 0xa30   :  { %3969 = vrot.lane.b32.xlu2 %v3847_v58, %s4823_s20 }
 0xa32   :  { %v3910_v18 = vpop.permute.xlu1 %3909 }
 0xa37   :  { %v3850_v46 = vpop.f32.mrf.mxu0 }
 0xa38   :  { %3971 = vrot.lane.b32.xlu1 %v3850_v46, %s4823_s20 }
 0xa3a   :  { %v3912_v35 = vpop.permute.xlu0 %3911 }
 0xa3b   :  { %v4014_v56 = vsel %vm223_vm1, %v6787_v61, %v3912_v35  ;;  %v4013_v61 = vsel %vm223_vm1, %v6772_v60, %v3910_v18  ;;  %v4015_v60 = vsel %vm223_vm1, %v6802_v34, %v6971_v20 }
 0xa3f   :  { %v3853_v6 = vpop.f32.mrf.mxu0 }
 0xa40   :  { %3973 = vrot.lane.b32.xlu0 %v3853_v6, %s4823_s20 }
 0xa42   :  { %v6974_v21 = vpop.permute.xlu2 %3919 }
 0xa47   :  { %v3856_v15 = vpop.f32.mrf.mxu0 }
 0xa48   :  { %3975 = vrot.lane.b32.xlu2 %v3856_v15, %s4823_s20 }
 0xa4a   :  { %v3916_v50 = vpop.permute.xlu1 %3915 }
 0xa4f   :  { %v3859_v33 = vpop.f32.mrf.mxu0 }
 0xa50   :  { %3977 = vrot.lane.b32.xlu1 %v3859_v33, %s4823_s20 }
 0xa52   :  { %v3918_v48 = vpop.permute.xlu0 %3917 }
 0xa53   :  { %v4017_v38 = vsel %vm223_vm1, %v6849_v9, %v3918_v48  ;;  %v4016_v9 = vsel %vm223_vm1, %v6822_v16, %v3916_v50  ;;  %v4018_v16 = vsel %vm223_vm1, %v6871_v10, %v6974_v21 }
 0xa57   :  { %v3862_v42 = vpop.f32.mrf.mxu0 }
 0xa58   :  { %3979 = vrot.lane.b32.xlu0 %v3862_v42, %s4823_s20 }
 0xa5a   :  { %v3958_v0 = vpop.permute.xlu2 %3957 }
 0xa5b   :  { %v4021_v25 = vsel %vm912_vm10, %v4005_v23, %v3958_v0 }
 0xa5c   :  { %4038 = vst.msk [vmem:[%s7117_s22] sm:$0xff] %vm4037_vm5, %v4021_v25 }
 0xa5f   :  { %v3865_v53 = vpop.f32.mrf.mxu0 }
 0xa60   :  { %3981 = vrot.lane.b32.xlu2 %v3865_v53, %s4823_s20 }
 0xa62   :  { %v3922_v4 = vpop.permute.xlu1 %3921 }
 0xa67   :  { %v3868_v17 = vpop.f32.mrf.mxu0 }
 0xa68   :  { %3983 = vrot.lane.b32.xlu1 %v3868_v17, %s4823_s20 }
 0xa6a   :  { %v3924_v32 = vpop.permute.xlu0 %3923 }
 0xa6b   :  { %v4020_v34 = vsel %vm223_vm1, %v6886_v13, %v3924_v32  ;;  %v4019_v13 = vsel %vm223_vm1, %v6880_v29, %v3922_v4 }
 0xa6f   :  { %v3871_v57 = vpop.f32.mrf.mxu0 }
 0xa70   :  { %3985 = vrot.lane.b32.xlu0 %v3871_v57, %s4823_s20 }
 0xa72   :  { %v3964_v36 = vpop.permute.xlu2 %3963 }
 0xa73   :  { %v4024_v27 = vsel %vm912_vm10, %v4008_v62, %v3964_v36 }
 0xa74   :  { %4041 = vst.msk [vmem:[%s7117_s22 + $0x18] sm:$0xff] %vm4037_vm5, %v4024_v27 }
 0xa77   :  { %v3874_v22 = vpop.f32.mrf.mxu0 }
 0xa78   :  { %3987 = vrot.lane.b32.xlu2 %v3874_v22, %s4823_s20 }
 0xa7a   :  { %v3960_v24 = vpop.permute.xlu1 %3959 }
 0xa7b   :  { %v4022_v49 = vsel %vm912_vm10, %v4006_v8, %v3960_v24 }
 0xa7c   :  { %4039 = vst.msk [vmem:[%s7117_s22 + $0x8] sm:$0xff] %vm4037_vm5, %v4022_v49 }
 0xa82   :  { %v3962_v1 = vpop.permute.xlu0 %3961 }
 0xa83   :  { %v4023_v26 = vsel %vm912_vm10, %v4007_v47, %v3962_v1 }
 0xa84   :  { %4040 = vst.msk [vmem:[%s7117_s22 + $0x10] sm:$0xff] %vm4037_vm5, %v4023_v26 }
 0xa8a   :  { %v3970_v63 = vpop.permute.xlu2 %3969 }
 0xa8b   :  { %v4027_v54 = vsel %vm912_vm10, %v4011_v28, %v3970_v63 }
 0xa8c   :  { %4044 = vst.msk [vmem:[%s7117_s22 + $0x30] sm:$0xff] %vm4037_vm5, %v4027_v54 }
 0xa92   :  { %v3966_v12 = vpop.permute.xlu1 %3965 }
 0xa93   :  { %v4025_v2 = vsel %vm912_vm10, %v4009_v51, %v3966_v12 }
 0xa94   :  { %4042 = vst.msk [vmem:[%s7117_s22 + $0x20] sm:$0xff] %vm4037_vm5, %v4025_v2 }
 0xa9a   :  { %v3968_v43 = vpop.permute.xlu0 %3967 }
 0xa9b   :  { %v4026_v19 = vsel %vm912_vm10, %v4010_v40, %v3968_v43 }
 0xa9c   :  { %4043 = vst.msk [vmem:[%s7117_s22 + $0x28] sm:$0xff] %vm4037_vm5, %v4026_v19 }
 0xaa2   :  { %v3976_v59 = vpop.permute.xlu2 %3975 }
 0xaa3   :  { %v4030_v11 = vsel %vm912_vm10, %v4014_v56, %v3976_v59 }
 0xaa4   :  { %4047 = vst.msk [vmem:[%s7117_s22 + $0x48] sm:$0xff] %vm4037_vm5, %v4030_v11 }
 0xaaa   :  { %v3972_v37 = vpop.permute.xlu1 %3971 }
 0xaab   :  { %v4028_v52 = vsel %vm912_vm10, %v4012_v31, %v3972_v37 }
 0xaac   :  { %4045 = vst.msk [vmem:[%s7117_s22 + $0x38] sm:$0xff] %vm4037_vm5, %v4028_v52 }
 0xab2   :  { %v3974_v5 = vpop.permute.xlu0 %3973 }
 0xab3   :  { %v4029_v55 = vsel %vm912_vm10, %v4013_v61, %v3974_v5 }
 0xab4   :  { %4046 = vst.msk [vmem:[%s7117_s22 + $0x40] sm:$0xff] %vm4037_vm5, %v4029_v55 }
 0xaba   :  { %v3982_v58 = vpop.permute.xlu2 %3981 }
 0xabb   :  { %v4033_v14 = vsel %vm912_vm10, %v4017_v38, %v3982_v58 }
 0xabc   :  { %4050 = vst.msk [vmem:[%s7117_s22 + $0x60] sm:$0xff] %vm4037_vm5, %v4033_v14 }
 0xac2   :  { %v3978_v46 = vpop.permute.xlu1 %3977 }
 0xac3   :  { %v4031_v41 = vsel %vm912_vm10, %v4015_v60, %v3978_v46 }
 0xac4   :  { %4048 = vst.msk [vmem:[%s7117_s22 + $0x50] sm:$0xff] %vm4037_vm5, %v4031_v41 }
 0xaca   :  { %v3980_v6 = vpop.permute.xlu0 %3979 }
 0xacb   :  { %v4032_v7 = vsel %vm912_vm10, %v4016_v9, %v3980_v6 }
 0xacc   :  { %4049 = vst.msk [vmem:[%s7117_s22 + $0x58] sm:$0xff] %vm4037_vm5, %v4032_v7 }
 0xad2   :  { %v3988_v15 = vpop.permute.xlu2 %3987 }
 0xad3   :  { %v4036_v20 = vsel %vm912_vm10, %v4020_v34, %v3988_v15 }
 0xad4   :  { %4054 = vst.msk [vmem:[%s7117_s22 + $0x78] sm:$0x3f] %vm4053_vm6, %v4036_v20 }
 0xada   :  { %v3984_v33 = vpop.permute.xlu1 %3983 }
 0xadb   :  { %v4034_v44 = vsel %vm912_vm10, %v4018_v16, %v3984_v33 }
 0xadc   :  { %4051 = vst.msk [vmem:[%s7117_s22 + $0x68] sm:$0xff] %vm4037_vm5, %v4034_v44 }
 0xae2   :  { %v3986_v39 = vpop.permute.xlu0 %3985 }
 0xae3   :  { %v4035_v42 = vsel %vm912_vm10, %v4019_v13, %v3986_v39 }
 0xae4   :  { %4052 = vst.msk [vmem:[%s7117_s22 + $0x70] sm:$0xff] %vm4037_vm5, %v4035_v42 }

</bundles_post_ra>
